<compile_context>
chip_gen: v6e
topology: v6e:2x2x1
jax: 0.10.0
libtpu: 0.0.40
codegen_flags: <defaults>
</compile_context>

<pallas_src>
import functools

import jax
import jax.numpy as jnp
from jax.experimental import pallas as pl
from jax.experimental.pallas import tpu as pltpu


def _round_up(a, b):
    return ((a + b - 1) // b) * b


def _resblock_kernel(xp_ref, w1c_ref, w2c_ref,
                     b1_ref, g1_ref, be1_ref, b2_ref, g2_ref, be2_ref,
                     out_ref, pad_ref,
                     *, C, N, H, W, K, Wp, Lpad, PAD0):
    CN = C * N
    KK = K * K
    LF = H * Wp                      # logical flattened (stride-Wp) image length
    P = (K - 1) // 2
    OFF = P * (Wp + 1)               # flat offset of pixel (0,0) inside a padded image
    EPS = 1e-3                       # BatchNorm2d(eps=0.001)
    inv_cnt = 1.0 / float(N * H * W)

    # ---- one-time in-kernel constants (iota-based; no extra input DMAs) ----
    # validity mask: lane belongs to a real pixel iff (lane % Wp) < W and lane < LF.
    lane_i = jax.lax.broadcasted_iota(jnp.int32, (CN, Lpad), 1)
    # row = trunc((lane + 0.5) / Wp); the +0.5 margin makes the float path exact
    # for all lane < Lpad even if the division is reciprocal-approximated.
    row_i = ((lane_i.astype(jnp.float32) + 0.5) * (1.0 / float(Wp))).astype(jnp.int32)
    col_i = lane_i - row_i * Wp
    mask = jnp.where(jnp.logical_and(col_i < W, lane_i < LF), 1.0, 0.0
                     ).astype(jnp.float32)

    # per-output-channel row selectors: 1.0 on rows [o*N, (o+1)*N), else 0.0
    rowid = jax.lax.broadcasted_iota(jnp.int32, (CN, 1), 0)
    sel = [jnp.where(jnp.logical_and(rowid >= o * N, rowid < (o + 1) * N),
                     1.0, 0.0).astype(jnp.float32) for o in range(C)]

    def cyclic_channel_sum(a):
        # rows r = ci*N + n.  Cyclic sublane rolls by multiples of N sum all rows
        # congruent to r (mod N): afterwards EVERY row holds the full sum over
        # input channels for its sample n = r % N.  Rolls land on the XLU.
        if (C & (C - 1)) == 0:                     # power-of-two C: log tree
            shift = CN // 2
            while shift >= N:
                a = a + pltpu.roll(a, shift, axis=0)
                shift //= 2
            return a
        t = a                                       # general C: linear chain
        for j in range(1, C):
            t = t + pltpu.roll(a, j * N, axis=0)
        return t

    def conv_relu_bn(src_off, wc_ref, b_ref, g_ref, be_ref, remask):
        # ---- conv: taps outermost, ONE shifted (CN, Lpad) load per tap, reused
        #      for all C output channels via per-sublane weight columns. ----
        acc = [jnp.zeros((CN, Lpad), jnp.float32) for _ in range(C)]
        t = 0
        for kh in range(K):
            for kw in range(K):
                tap = src_off(kh * Wp + kw)                 # (CN, Lpad)
                for o in range(C):
                    acc[o] = acc[o] + wc_ref[o * KK + t] * tap   # (CN,1)*(CN,Lpad)
                t += 1
        # input-channel reduction (sublane rolls) + pack each output channel's
        # rows into one (CN, Lpad) slab; conv bias via a per-sublane column.
        y = jnp.zeros((CN, Lpad), jnp.float32)
        bias_col = jnp.zeros((CN, 1), jnp.float32)
        for o in range(C):
            y = y + cyclic_channel_sum(acc[o]) * sel[o]
            bias_col = bias_col + b_ref[o] * sel[o]
        y = jnp.maximum(y + bias_col, 0.0) * mask      # ReLU; zero stride/pad cols

        # ---- train-mode BatchNorm: one lane reduce per statistic, tiny
        #      per-channel finish on (CN,1); biased variance, single pass. ----
        s1 = jnp.sum(y, axis=1, keepdims=True)         # (CN, 1) per-row sums
        s2 = jnp.sum(y * y, axis=1, keepdims=True)
        scale_col = jnp.zeros((CN, 1), jnp.float32)
        shift_col = jnp.zeros((CN, 1), jnp.float32)
        for o in range(C):
            m1 = jnp.sum(s1 * sel[o]) * inv_cnt
            m2 = jnp.sum(s2 * sel[o]) * inv_cnt
            var = m2 - m1 * m1
            sc = jax.lax.rsqrt(var + EPS) * g_ref[o]
            sh = be_ref[o] - m1 * sc
            scale_col = scale_col + sc * sel[o]
            shift_col = shift_col + sh * sel[o]
        y = y * scale_col + shift_col
        if remask:
            # keep garbage columns at 0: they land exactly on the border cells
            # of the next stage's padded buffer.
            y = y * mask
        return y

    # zero-fill the stage-2 padded scratch exactly once (full-width store);
    # only its interior is overwritten below, the border stays zero.
    pad_ref[...] = jnp.zeros(pad_ref.shape, pad_ref.dtype)

    # stage 1: bn1(relu(conv1(x))) -- taps read straight from the pre-padded input.
    y1 = conv_relu_bn(lambda off: xp_ref[:, off:off + Lpad],
                      w1c_ref, b1_ref, g1_ref, be1_ref, remask=True)

    # stage-2 padding: ONE 128-aligned, full-width, unmasked store places the
    # interior; the masked-out stride columns land on the zero border cells.
    pad_ref[:, PAD0:PAD0 + Lpad] = y1

    # stage 2: bn2(relu(conv2(y1)))
    base2 = PAD0 - OFF
    y2 = conv_relu_bn(lambda off: pad_ref[:, base2 + off:base2 + off + Lpad],
                      w2c_ref, b2_ref, g2_ref, be2_ref, remask=False)

    # residual add + final ReLU (residual = unpadded x at offset OFF);
    # full-width lane-aligned unmasked output store.
    res = xp_ref[:, OFF:OFF + Lpad]
    out_ref[...] = jnp.maximum(y2 + res, 0.0).astype(out_ref.dtype)


def resblock_forward(x, params):
    N, C, H, W = x.shape
    w1, b1, g1, be1 = params["w1"], params["b1"], params["g1"], params["be1"]
    w2, b2, g2, be2 = params["w2"], params["b2"], params["g2"], params["be2"]
    K = w1.shape[-1]
    assert K % 2 == 1
    # TODO(synk): even kernel_size would need PyTorch's asymmetric 'same' padding.
    P = (K - 1) // 2
    Hp, Wp = H + 2 * P, W + 2 * P
    CN = C * N
    LF = H * Wp
    Lpad = _round_up(LF, 128)                 # in-kernel working width (lane-dense)
    OFF = P * (Wp + 1)
    maxtap = (K - 1) * (Wp + 1)
    # input width: room for every tap slice + residual slice, lane-tile rounded.
    XW = _round_up(max(maxtap + Lpad, OFF + Lpad, Hp * Wp), 128)
    # stage-2 scratch: interior placed at a 128-aligned offset so the big store
    # is unmasked; taps read at base2 = PAD0 - OFF.
    PAD0 = _round_up(OFF, 128)
    PADW = _round_up(max(PAD0 - OFF + maxtap + Lpad, PAD0 + Lpad), 128)

    # --- wrapper layout plumbing (fuses to one copy-like fusion in XLA) ---
    # channel-major sublane packing: row r = ci*N + n, lanes = flattened (Hp,Wp).
    xp = jnp.pad(jnp.transpose(x.astype(jnp.float32), (1, 0, 2, 3)),
                 ((0, 0), (0, 0), (P, P), (P, P)))
    xp = xp.reshape(CN, Hp * Wp)
    xp = jnp.pad(xp, ((0, 0), (0, XW - Hp * Wp)))

    def wcols(w):
        # (C_out, C_in, K, K) -> (C_out*K*K, C_in*N, 1): per-sublane weight
        # columns; row r = ci*N + n carries w[o, ci, kh, kw].
        wt = jnp.transpose(w.astype(jnp.float32).reshape(C, C, K * K), (0, 2, 1))
        wt = jnp.repeat(wt, N, axis=2)
        return wt.reshape(C * K * K, CN, 1)

    w1c, w2c = wcols(w1), wcols(w2)

    vmem = pl.BlockSpec(memory_space=pltpu.MemorySpace.VMEM)
    smem = pl.BlockSpec(memory_space=pltpu.MemorySpace.SMEM)

    kernel = functools.partial(_resblock_kernel, C=C, N=N, H=H, W=W, K=K,
                               Wp=Wp, Lpad=Lpad, PAD0=PAD0)

    # No grid: single TensorCore invocation; at this size grid-step overhead
    # would dominate.  Scale-up path: "parallel" grid axis over output channels.
    out_flat = pl.pallas_call(
        kernel,
        out_shape=jax.ShapeDtypeStruct((CN, Lpad), jnp.float32),
        in_specs=[vmem, vmem, vmem] + [smem] * 6,
        out_specs=vmem,
        scratch_shapes=[pltpu.VMEM((CN, PADW), jnp.float32)],
    )(xp, w1c, w2c,
      b1.astype(jnp.float32), g1.astype(jnp.float32), be1.astype(jnp.float32),
      b2.astype(jnp.float32), g2.astype(jnp.float32), be2.astype(jnp.float32))

    # undo the layout plumbing: drop padded-stride columns, back to NCHW.
    out = out_flat[:, :LF].reshape(C, N, H, Wp)[:, :, :, :W]
    return jnp.transpose(out, (1, 0, 2, 3)).astype(x.dtype)


def resblock_reference(x, params):
    """Pure-JAX reference matching the PyTorch forward (train-mode BN)."""
    eps = 1e-3

    def conv(z, w, b):
        y = jax.lax.conv_general_dilated(
            z, w, window_strides=(1, 1), padding="SAME",
            dimension_numbers=("NCHW", "OIHW", "NCHW"),
            precision=jax.lax.Precision.HIGHEST)
        return y + b[None, :, None, None]

    def bn(z, g, be):
        mean = jnp.mean(z, axis=(0, 2, 3), keepdims=True)
        var = jnp.mean((z - mean) ** 2, axis=(0, 2, 3), keepdims=True)
        return (z - mean) / jnp.sqrt(var + eps) * g[None, :, None, None] \
            + be[None, :, None, None]

    y = bn(jax.nn.relu(conv(x, params["w1"], params["b1"])),
           params["g1"], params["be1"])
    y = bn(jax.nn.relu(conv(y, params["w2"], params["b2"])),
           params["g2"], params["be2"])
    return jax.nn.relu(y + x)


if __name__ == "__main__":
    N, C, H, W, K = 2, 4, 16, 16, 3   # batch=2, n_filters=4, spatial=16, kernel_size=3

    key = jax.random.PRNGKey(0)
    ks = jax.random.split(key, 9)
    x = jax.random.normal(ks[0], (N, C, H, W), jnp.float32)
    params = dict(
        w1=jax.random.normal(ks[1], (C, C, K, K), jnp.float32) * 0.3,
        b1=jax.random.normal(ks[2], (C,), jnp.float32) * 0.1,
        g1=1.0 + 0.1 * jax.random.normal(ks[3], (C,), jnp.float32),
        be1=0.1 * jax.random.normal(ks[4], (C,), jnp.float32),
        w2=jax.random.normal(ks[5], (C, C, K, K), jnp.float32) * 0.3,
        b2=jax.random.normal(ks[6], (C,), jnp.float32) * 0.1,
        g2=1.0 + 0.1 * jax.random.normal(ks[7], (C,), jnp.float32),
        be2=0.1 * jax.random.normal(ks[8], (C,), jnp.float32),
    )

    out = jax.block_until_ready(resblock_forward(x, params))
    ref = jax.block_until_ready(resblock_reference(x, params))

    err = float(jnp.max(jnp.abs(out - ref)))
    assert out.shape == (N, C, H, W) and out.dtype == jnp.float32
    assert err < 1e-3, f"mismatch vs reference, max abs err = {err}"
    print("KERNEL_OK")
</pallas_src>

<mosaic_0001>
module attributes {stable_mosaic.version = 11 : i64} {
  func.func @_resblock_kernel(%arg0: memref<8x512xf32, #tpu.memory_space<vmem>>, %arg1: memref<36x8x1xf32, #tpu.memory_space<vmem>>, %arg2: memref<36x8x1xf32, #tpu.memory_space<vmem>>, %arg3: memref<4xf32, #tpu.memory_space<smem>>, %arg4: memref<4xf32, #tpu.memory_space<smem>>, %arg5: memref<4xf32, #tpu.memory_space<smem>>, %arg6: memref<4xf32, #tpu.memory_space<smem>>, %arg7: memref<4xf32, #tpu.memory_space<smem>>, %arg8: memref<4xf32, #tpu.memory_space<smem>>, %arg9: memref<8x384xf32, #tpu.memory_space<vmem>>, %arg10: memref<8x640xf32, #tpu.memory_space<vmem>>) attributes {dimension_semantics = [], scalar_prefetch = 0 : i64, scratch_operands = 1 : i64, tpu.core_type = #tpu.core_type<tc>} {
    %0 = tpu.iota {dimensions = array<i32: 1>} : vector<8x384xi32>
    %1 = arith.sitofp %0 : vector<8x384xi32> to vector<8x384xf32>
    %cst = arith.constant 5.000000e-01 : f32
    %2 = vector.broadcast %cst : f32 to vector<8x384xf32>
    %3 = arith.addf %1, %2 : vector<8x384xf32>
    %cst_0 = arith.constant 0.055555556 : f32
    %4 = vector.broadcast %cst_0 : f32 to vector<8x384xf32>
    %5 = arith.mulf %3, %4 : vector<8x384xf32>
    %6 = arith.fptosi %5 : vector<8x384xf32> to vector<8x384xi32>
    %c18_i32 = arith.constant 18 : i32
    %7 = vector.broadcast %c18_i32 : i32 to vector<8x384xi32>
    %8 = arith.muli %6, %7 : vector<8x384xi32>
    %9 = arith.subi %0, %8 : vector<8x384xi32>
    %c16_i32 = arith.constant 16 : i32
    %10 = vector.broadcast %c16_i32 : i32 to vector<8x384xi32>
    %11 = arith.cmpi slt, %9, %10 : vector<8x384xi32>
    %c288_i32 = arith.constant 288 : i32
    %12 = vector.broadcast %c288_i32 : i32 to vector<8x384xi32>
    %13 = arith.cmpi slt, %0, %12 : vector<8x384xi32>
    %14 = arith.andi %11, %13 : vector<8x384xi1>
    %cst_1 = arith.constant 1.000000e+00 : f32
    %cst_2 = arith.constant 0.000000e+00 : f32
    %15 = vector.broadcast %cst_1 : f32 to vector<8x384xf32>
    %16 = vector.broadcast %cst_2 : f32 to vector<8x384xf32>
    %17 = arith.select %14, %15, %16 : vector<8x384xi1>, vector<8x384xf32>
    %18 = tpu.iota {dimensions = array<i32: 0>} : vector<8x1xi32>
    %c0_i32 = arith.constant 0 : i32
    %19 = vector.broadcast %c0_i32 : i32 to vector<8x1xi32>
    %20 = arith.cmpi sge, %18, %19 : vector<8x1xi32>
    %c2_i32 = arith.constant 2 : i32
    %21 = vector.broadcast %c2_i32 : i32 to vector<8x1xi32>
    %22 = arith.cmpi slt, %18, %21 : vector<8x1xi32>
    %23 = arith.andi %20, %22 : vector<8x1xi1>
    %cst_3 = arith.constant 1.000000e+00 : f32
    %cst_4 = arith.constant 0.000000e+00 : f32
    %24 = vector.broadcast %cst_3 : f32 to vector<8x1xf32>
    %25 = vector.broadcast %cst_4 : f32 to vector<8x1xf32>
    %26 = arith.select %23, %24, %25 : vector<8x1xi1>, vector<8x1xf32>
    %c2_i32_5 = arith.constant 2 : i32
    %27 = vector.broadcast %c2_i32_5 : i32 to vector<8x1xi32>
    %28 = arith.cmpi sge, %18, %27 : vector<8x1xi32>
    %c4_i32 = arith.constant 4 : i32
    %29 = vector.broadcast %c4_i32 : i32 to vector<8x1xi32>
    %30 = arith.cmpi slt, %18, %29 : vector<8x1xi32>
    %31 = arith.andi %28, %30 : vector<8x1xi1>
    %cst_6 = arith.constant 1.000000e+00 : f32
    %cst_7 = arith.constant 0.000000e+00 : f32
    %32 = vector.broadcast %cst_6 : f32 to vector<8x1xf32>
    %33 = vector.broadcast %cst_7 : f32 to vector<8x1xf32>
    %34 = arith.select %31, %32, %33 : vector<8x1xi1>, vector<8x1xf32>
    %c4_i32_8 = arith.constant 4 : i32
    %35 = vector.broadcast %c4_i32_8 : i32 to vector<8x1xi32>
    %36 = arith.cmpi sge, %18, %35 : vector<8x1xi32>
    %c6_i32 = arith.constant 6 : i32
    %37 = vector.broadcast %c6_i32 : i32 to vector<8x1xi32>
    %38 = arith.cmpi slt, %18, %37 : vector<8x1xi32>
    %39 = arith.andi %36, %38 : vector<8x1xi1>
    %cst_9 = arith.constant 1.000000e+00 : f32
    %cst_10 = arith.constant 0.000000e+00 : f32
    %40 = vector.broadcast %cst_9 : f32 to vector<8x1xf32>
    %41 = vector.broadcast %cst_10 : f32 to vector<8x1xf32>
    %42 = arith.select %39, %40, %41 : vector<8x1xi1>, vector<8x1xf32>
    %c6_i32_11 = arith.constant 6 : i32
    %43 = vector.broadcast %c6_i32_11 : i32 to vector<8x1xi32>
    %44 = arith.cmpi sge, %18, %43 : vector<8x1xi32>
    %c8_i32 = arith.constant 8 : i32
    %45 = vector.broadcast %c8_i32 : i32 to vector<8x1xi32>
    %46 = arith.cmpi slt, %18, %45 : vector<8x1xi32>
    %47 = arith.andi %44, %46 : vector<8x1xi1>
    %cst_12 = arith.constant 1.000000e+00 : f32
    %cst_13 = arith.constant 0.000000e+00 : f32
    %48 = vector.broadcast %cst_12 : f32 to vector<8x1xf32>
    %49 = vector.broadcast %cst_13 : f32 to vector<8x1xf32>
    %50 = arith.select %47, %48, %49 : vector<8x1xi1>, vector<8x1xf32>
    %cst_14 = arith.constant 0.000000e+00 : f32
    %51 = vector.broadcast %cst_14 : f32 to vector<8x640xf32>
    %c0 = arith.constant 0 : index
    %c0_15 = arith.constant 0 : index
    %52 = vector.load %arg10[%c0, %c0_15] : memref<8x640xf32, #tpu.memory_space<vmem>>, vector<8x640xf32>
    tpu.vector_store %arg10[%c0, %c0_15], %51 {strides = array<i32>} : memref<8x640xf32, #tpu.memory_space<vmem>>, vector<8x640xf32>,
    %cst_16 = arith.constant 0.000000e+00 : f32
    %53 = vector.broadcast %cst_16 : f32 to vector<8x384xf32>
    %cst_17 = arith.constant 0.000000e+00 : f32
    %54 = vector.broadcast %cst_17 : f32 to vector<8x384xf32>
    %cst_18 = arith.constant 0.000000e+00 : f32
    %55 = vector.broadcast %cst_18 : f32 to vector<8x384xf32>
    %cst_19 = arith.constant 0.000000e+00 : f32
    %56 = vector.broadcast %cst_19 : f32 to vector<8x384xf32>
    %c0_20 = arith.constant 0 : index
    %c0_21 = arith.constant 0 : index
    %57 = vector.load %arg0[%c0_20, %c0_21] : memref<8x512xf32, #tpu.memory_space<vmem>>, vector<8x384xf32>
    %c0_22 = arith.constant 0 : index
    %c0_23 = arith.constant 0 : index
    %c0_24 = arith.constant 0 : index
    %58 = vector.load %arg1[%c0_22, %c0_23, %c0_24] : memref<36x8x1xf32, #tpu.memory_space<vmem>>, vector<1x8x1xf32>
    %59 = vector.shape_cast %58 : vector<1x8x1xf32> to vector<8x1xf32>
    %60 = vector.broadcast %59 : vector<8x1xf32> to vector<8x384xf32>
    %61 = arith.mulf %60, %57 : vector<8x384xf32>
    %62 = arith.addf %53, %61 : vector<8x384xf32>
    %c9 = arith.constant 9 : index
    %c0_25 = arith.constant 0 : index
    %c0_26 = arith.constant 0 : index
    %63 = vector.load %arg1[%c9, %c0_25, %c0_26] : memref<36x8x1xf32, #tpu.memory_space<vmem>>, vector<1x8x1xf32>
    %64 = vector.shape_cast %63 : vector<1x8x1xf32> to vector<8x1xf32>
    %65 = vector.broadcast %64 : vector<8x1xf32> to vector<8x384xf32>
    %66 = arith.mulf %65, %57 : vector<8x384xf32>
    %67 = arith.addf %54, %66 : vector<8x384xf32>
    %c18 = arith.constant 18 : index
    %c0_27 = arith.constant 0 : index
    %c0_28 = arith.constant 0 : index
    %68 = vector.load %arg1[%c18, %c0_27, %c0_28] : memref<36x8x1xf32, #tpu.memory_space<vmem>>, vector<1x8x1xf32>
    %69 = vector.shape_cast %68 : vector<1x8x1xf32> to vector<8x1xf32>
    %70 = vector.broadcast %69 : vector<8x1xf32> to vector<8x384xf32>
    %71 = arith.mulf %70, %57 : vector<8x384xf32>
    %72 = arith.addf %55, %71 : vector<8x384xf32>
    %c27 = arith.constant 27 : index
    %c0_29 = arith.constant 0 : index
    %c0_30 = arith.constant 0 : index
    %73 = vector.load %arg1[%c27, %c0_29, %c0_30] : memref<36x8x1xf32, #tpu.memory_space<vmem>>, vector<1x8x1xf32>
    %74 = vector.shape_cast %73 : vector<1x8x1xf32> to vector<8x1xf32>
    %75 = vector.broadcast %74 : vector<8x1xf32> to vector<8x384xf32>
    %76 = arith.mulf %75, %57 : vector<8x384xf32>
    %77 = arith.addf %56, %76 : vector<8x384xf32>
    %c0_31 = arith.constant 0 : index
    %c1 = arith.constant 1 : index
    %78 = vector.load %arg0[%c0_31, %c1] : memref<8x512xf32, #tpu.memory_space<vmem>>, vector<8x384xf32>
    %c1_32 = arith.constant 1 : index
    %c0_33 = arith.constant 0 : index
    %c0_34 = arith.constant 0 : index
    %79 = vector.load %arg1[%c1_32, %c0_33, %c0_34] : memref<36x8x1xf32, #tpu.memory_space<vmem>>, vector<1x8x1xf32>
    %80 = vector.shape_cast %79 : vector<1x8x1xf32> to vector<8x1xf32>
    %81 = vector.broadcast %80 : vector<8x1xf32> to vector<8x384xf32>
    %82 = arith.mulf %81, %78 : vector<8x384xf32>
    %83 = arith.addf %62, %82 : vector<8x384xf32>
    %c10 = arith.constant 10 : index
    %c0_35 = arith.constant 0 : index
    %c0_36 = arith.constant 0 : index
    %84 = vector.load %arg1[%c10, %c0_35, %c0_36] : memref<36x8x1xf32, #tpu.memory_space<vmem>>, vector<1x8x1xf32>
    %85 = vector.shape_cast %84 : vector<1x8x1xf32> to vector<8x1xf32>
    %86 = vector.broadcast %85 : vector<8x1xf32> to vector<8x384xf32>
    %87 = arith.mulf %86, %78 : vector<8x384xf32>
    %88 = arith.addf %67, %87 : vector<8x384xf32>
    %c19 = arith.constant 19 : index
    %c0_37 = arith.constant 0 : index
    %c0_38 = arith.constant 0 : index
    %89 = vector.load %arg1[%c19, %c0_37, %c0_38] : memref<36x8x1xf32, #tpu.memory_space<vmem>>, vector<1x8x1xf32>
    %90 = vector.shape_cast %89 : vector<1x8x1xf32> to vector<8x1xf32>
    %91 = vector.broadcast %90 : vector<8x1xf32> to vector<8x384xf32>
    %92 = arith.mulf %91, %78 : vector<8x384xf32>
    %93 = arith.addf %72, %92 : vector<8x384xf32>
    %c28 = arith.constant 28 : index
    %c0_39 = arith.constant 0 : index
    %c0_40 = arith.constant 0 : index
    %94 = vector.load %arg1[%c28, %c0_39, %c0_40] : memref<36x8x1xf32, #tpu.memory_space<vmem>>, vector<1x8x1xf32>
    %95 = vector.shape_cast %94 : vector<1x8x1xf32> to vector<8x1xf32>
    %96 = vector.broadcast %95 : vector<8x1xf32> to vector<8x384xf32>
    %97 = arith.mulf %96, %78 : vector<8x384xf32>
    %98 = arith.addf %77, %97 : vector<8x384xf32>
    %c0_41 = arith.constant 0 : index
    %c2 = arith.constant 2 : index
    %99 = vector.load %arg0[%c0_41, %c2] : memref<8x512xf32, #tpu.memory_space<vmem>>, vector<8x384xf32>
    %c2_42 = arith.constant 2 : index
    %c0_43 = arith.constant 0 : index
    %c0_44 = arith.constant 0 : index
    %100 = vector.load %arg1[%c2_42, %c0_43, %c0_44] : memref<36x8x1xf32, #tpu.memory_space<vmem>>, vector<1x8x1xf32>
    %101 = vector.shape_cast %100 : vector<1x8x1xf32> to vector<8x1xf32>
    %102 = vector.broadcast %101 : vector<8x1xf32> to vector<8x384xf32>
    %103 = arith.mulf %102, %99 : vector<8x384xf32>
    %104 = arith.addf %83, %103 : vector<8x384xf32>
    %c11 = arith.constant 11 : index
    %c0_45 = arith.constant 0 : index
    %c0_46 = arith.constant 0 : index
    %105 = vector.load %arg1[%c11, %c0_45, %c0_46] : memref<36x8x1xf32, #tpu.memory_space<vmem>>, vector<1x8x1xf32>
    %106 = vector.shape_cast %105 : vector<1x8x1xf32> to vector<8x1xf32>
    %107 = vector.broadcast %106 : vector<8x1xf32> to vector<8x384xf32>
    %108 = arith.mulf %107, %99 : vector<8x384xf32>
    %109 = arith.addf %88, %108 : vector<8x384xf32>
    %c20 = arith.constant 20 : index
    %c0_47 = arith.constant 0 : index
    %c0_48 = arith.constant 0 : index
    %110 = vector.load %arg1[%c20, %c0_47, %c0_48] : memref<36x8x1xf32, #tpu.memory_space<vmem>>, vector<1x8x1xf32>
    %111 = vector.shape_cast %110 : vector<1x8x1xf32> to vector<8x1xf32>
    %112 = vector.broadcast %111 : vector<8x1xf32> to vector<8x384xf32>
    %113 = arith.mulf %112, %99 : vector<8x384xf32>
    %114 = arith.addf %93, %113 : vector<8x384xf32>
    %c29 = arith.constant 29 : index
    %c0_49 = arith.constant 0 : index
    %c0_50 = arith.constant 0 : index
    %115 = vector.load %arg1[%c29, %c0_49, %c0_50] : memref<36x8x1xf32, #tpu.memory_space<vmem>>, vector<1x8x1xf32>
    %116 = vector.shape_cast %115 : vector<1x8x1xf32> to vector<8x1xf32>
    %117 = vector.broadcast %116 : vector<8x1xf32> to vector<8x384xf32>
    %118 = arith.mulf %117, %99 : vector<8x384xf32>
    %119 = arith.addf %98, %118 : vector<8x384xf32>
    %c0_51 = arith.constant 0 : index
    %c18_52 = arith.constant 18 : index
    %120 = vector.load %arg0[%c0_51, %c18_52] : memref<8x512xf32, #tpu.memory_space<vmem>>, vector<8x384xf32>
    %c3 = arith.constant 3 : index
    %c0_53 = arith.constant 0 : index
    %c0_54 = arith.constant 0 : index
    %121 = vector.load %arg1[%c3, %c0_53, %c0_54] : memref<36x8x1xf32, #tpu.memory_space<vmem>>, vector<1x8x1xf32>
    %122 = vector.shape_cast %121 : vector<1x8x1xf32> to vector<8x1xf32>
    %123 = vector.broadcast %122 : vector<8x1xf32> to vector<8x384xf32>
    %124 = arith.mulf %123, %120 : vector<8x384xf32>
    %125 = arith.addf %104, %124 : vector<8x384xf32>
    %c12 = arith.constant 12 : index
    %c0_55 = arith.constant 0 : index
    %c0_56 = arith.constant 0 : index
    %126 = vector.load %arg1[%c12, %c0_55, %c0_56] : memref<36x8x1xf32, #tpu.memory_space<vmem>>, vector<1x8x1xf32>
    %127 = vector.shape_cast %126 : vector<1x8x1xf32> to vector<8x1xf32>
    %128 = vector.broadcast %127 : vector<8x1xf32> to vector<8x384xf32>
    %129 = arith.mulf %128, %120 : vector<8x384xf32>
    %130 = arith.addf %109, %129 : vector<8x384xf32>
    %c21 = arith.constant 21 : index
    %c0_57 = arith.constant 0 : index
    %c0_58 = arith.constant 0 : index
    %131 = vector.load %arg1[%c21, %c0_57, %c0_58] : memref<36x8x1xf32, #tpu.memory_space<vmem>>, vector<1x8x1xf32>
    %132 = vector.shape_cast %131 : vector<1x8x1xf32> to vector<8x1xf32>
    %133 = vector.broadcast %132 : vector<8x1xf32> to vector<8x384xf32>
    %134 = arith.mulf %133, %120 : vector<8x384xf32>
    %135 = arith.addf %114, %134 : vector<8x384xf32>
    %c30 = arith.constant 30 : index
    %c0_59 = arith.constant 0 : index
    %c0_60 = arith.constant 0 : index
    %136 = vector.load %arg1[%c30, %c0_59, %c0_60] : memref<36x8x1xf32, #tpu.memory_space<vmem>>, vector<1x8x1xf32>
    %137 = vector.shape_cast %136 : vector<1x8x1xf32> to vector<8x1xf32>
    %138 = vector.broadcast %137 : vector<8x1xf32> to vector<8x384xf32>
    %139 = arith.mulf %138, %120 : vector<8x384xf32>
    %140 = arith.addf %119, %139 : vector<8x384xf32>
    %c0_61 = arith.constant 0 : index
    %c19_62 = arith.constant 19 : index
    %141 = vector.load %arg0[%c0_61, %c19_62] : memref<8x512xf32, #tpu.memory_space<vmem>>, vector<8x384xf32>
    %c4 = arith.constant 4 : index
    %c0_63 = arith.constant 0 : index
    %c0_64 = arith.constant 0 : index
    %142 = vector.load %arg1[%c4, %c0_63, %c0_64] : memref<36x8x1xf32, #tpu.memory_space<vmem>>, vector<1x8x1xf32>
    %143 = vector.shape_cast %142 : vector<1x8x1xf32> to vector<8x1xf32>
    %144 = vector.broadcast %143 : vector<8x1xf32> to vector<8x384xf32>
    %145 = arith.mulf %144, %141 : vector<8x384xf32>
    %146 = arith.addf %125, %145 : vector<8x384xf32>
    %c13 = arith.constant 13 : index
    %c0_65 = arith.constant 0 : index
    %c0_66 = arith.constant 0 : index
    %147 = vector.load %arg1[%c13, %c0_65, %c0_66] : memref<36x8x1xf32, #tpu.memory_space<vmem>>, vector<1x8x1xf32>
    %148 = vector.shape_cast %147 : vector<1x8x1xf32> to vector<8x1xf32>
    %149 = vector.broadcast %148 : vector<8x1xf32> to vector<8x384xf32>
    %150 = arith.mulf %149, %141 : vector<8x384xf32>
    %151 = arith.addf %130, %150 : vector<8x384xf32>
    %c22 = arith.constant 22 : index
    %c0_67 = arith.constant 0 : index
    %c0_68 = arith.constant 0 : index
    %152 = vector.load %arg1[%c22, %c0_67, %c0_68] : memref<36x8x1xf32, #tpu.memory_space<vmem>>, vector<1x8x1xf32>
    %153 = vector.shape_cast %152 : vector<1x8x1xf32> to vector<8x1xf32>
    %154 = vector.broadcast %153 : vector<8x1xf32> to vector<8x384xf32>
    %155 = arith.mulf %154, %141 : vector<8x384xf32>
    %156 = arith.addf %135, %155 : vector<8x384xf32>
    %c31 = arith.constant 31 : index
    %c0_69 = arith.constant 0 : index
    %c0_70 = arith.constant 0 : index
    %157 = vector.load %arg1[%c31, %c0_69, %c0_70] : memref<36x8x1xf32, #tpu.memory_space<vmem>>, vector<1x8x1xf32>
    %158 = vector.shape_cast %157 : vector<1x8x1xf32> to vector<8x1xf32>
    %159 = vector.broadcast %158 : vector<8x1xf32> to vector<8x384xf32>
    %160 = arith.mulf %159, %141 : vector<8x384xf32>
    %161 = arith.addf %140, %160 : vector<8x384xf32>
    %c0_71 = arith.constant 0 : index
    %c20_72 = arith.constant 20 : index
    %162 = vector.load %arg0[%c0_71, %c20_72] : memref<8x512xf32, #tpu.memory_space<vmem>>, vector<8x384xf32>
    %c5 = arith.constant 5 : index
    %c0_73 = arith.constant 0 : index
    %c0_74 = arith.constant 0 : index
    %163 = vector.load %arg1[%c5, %c0_73, %c0_74] : memref<36x8x1xf32, #tpu.memory_space<vmem>>, vector<1x8x1xf32>
    %164 = vector.shape_cast %163 : vector<1x8x1xf32> to vector<8x1xf32>
    %165 = vector.broadcast %164 : vector<8x1xf32> to vector<8x384xf32>
    %166 = arith.mulf %165, %162 : vector<8x384xf32>
    %167 = arith.addf %146, %166 : vector<8x384xf32>
    %c14 = arith.constant 14 : index
    %c0_75 = arith.constant 0 : index
    %c0_76 = arith.constant 0 : index
    %168 = vector.load %arg1[%c14, %c0_75, %c0_76] : memref<36x8x1xf32, #tpu.memory_space<vmem>>, vector<1x8x1xf32>
    %169 = vector.shape_cast %168 : vector<1x8x1xf32> to vector<8x1xf32>
    %170 = vector.broadcast %169 : vector<8x1xf32> to vector<8x384xf32>
    %171 = arith.mulf %170, %162 : vector<8x384xf32>
    %172 = arith.addf %151, %171 : vector<8x384xf32>
    %c23 = arith.constant 23 : index
    %c0_77 = arith.constant 0 : index
    %c0_78 = arith.constant 0 : index
    %173 = vector.load %arg1[%c23, %c0_77, %c0_78] : memref<36x8x1xf32, #tpu.memory_space<vmem>>, vector<1x8x1xf32>
    %174 = vector.shape_cast %173 : vector<1x8x1xf32> to vector<8x1xf32>
    %175 = vector.broadcast %174 : vector<8x1xf32> to vector<8x384xf32>
    %176 = arith.mulf %175, %162 : vector<8x384xf32>
    %177 = arith.addf %156, %176 : vector<8x384xf32>
    %c32 = arith.constant 32 : index
    %c0_79 = arith.constant 0 : index
    %c0_80 = arith.constant 0 : index
    %178 = vector.load %arg1[%c32, %c0_79, %c0_80] : memref<36x8x1xf32, #tpu.memory_space<vmem>>, vector<1x8x1xf32>
    %179 = vector.shape_cast %178 : vector<1x8x1xf32> to vector<8x1xf32>
    %180 = vector.broadcast %179 : vector<8x1xf32> to vector<8x384xf32>
    %181 = arith.mulf %180, %162 : vector<8x384xf32>
    %182 = arith.addf %161, %181 : vector<8x384xf32>
    %c0_81 = arith.constant 0 : index
    %c36 = arith.constant 36 : index
    %183 = vector.load %arg0[%c0_81, %c36] : memref<8x512xf32, #tpu.memory_space<vmem>>, vector<8x384xf32>
    %c6 = arith.constant 6 : index
    %c0_82 = arith.constant 0 : index
    %c0_83 = arith.constant 0 : index
    %184 = vector.load %arg1[%c6, %c0_82, %c0_83] : memref<36x8x1xf32, #tpu.memory_space<vmem>>, vector<1x8x1xf32>
    %185 = vector.shape_cast %184 : vector<1x8x1xf32> to vector<8x1xf32>
    %186 = vector.broadcast %185 : vector<8x1xf32> to vector<8x384xf32>
    %187 = arith.mulf %186, %183 : vector<8x384xf32>
    %188 = arith.addf %167, %187 : vector<8x384xf32>
    %c15 = arith.constant 15 : index
    %c0_84 = arith.constant 0 : index
    %c0_85 = arith.constant 0 : index
    %189 = vector.load %arg1[%c15, %c0_84, %c0_85] : memref<36x8x1xf32, #tpu.memory_space<vmem>>, vector<1x8x1xf32>
    %190 = vector.shape_cast %189 : vector<1x8x1xf32> to vector<8x1xf32>
    %191 = vector.broadcast %190 : vector<8x1xf32> to vector<8x384xf32>
    %192 = arith.mulf %191, %183 : vector<8x384xf32>
    %193 = arith.addf %172, %192 : vector<8x384xf32>
    %c24 = arith.constant 24 : index
    %c0_86 = arith.constant 0 : index
    %c0_87 = arith.constant 0 : index
    %194 = vector.load %arg1[%c24, %c0_86, %c0_87] : memref<36x8x1xf32, #tpu.memory_space<vmem>>, vector<1x8x1xf32>
    %195 = vector.shape_cast %194 : vector<1x8x1xf32> to vector<8x1xf32>
    %196 = vector.broadcast %195 : vector<8x1xf32> to vector<8x384xf32>
    %197 = arith.mulf %196, %183 : vector<8x384xf32>
    %198 = arith.addf %177, %197 : vector<8x384xf32>
    %c33 = arith.constant 33 : index
    %c0_88 = arith.constant 0 : index
    %c0_89 = arith.constant 0 : index
    %199 = vector.load %arg1[%c33, %c0_88, %c0_89] : memref<36x8x1xf32, #tpu.memory_space<vmem>>, vector<1x8x1xf32>
    %200 = vector.shape_cast %199 : vector<1x8x1xf32> to vector<8x1xf32>
    %201 = vector.broadcast %200 : vector<8x1xf32> to vector<8x384xf32>
    %202 = arith.mulf %201, %183 : vector<8x384xf32>
    %203 = arith.addf %182, %202 : vector<8x384xf32>
    %c0_90 = arith.constant 0 : index
    %c37 = arith.constant 37 : index
    %204 = vector.load %arg0[%c0_90, %c37] : memref<8x512xf32, #tpu.memory_space<vmem>>, vector<8x384xf32>
    %c7 = arith.constant 7 : index
    %c0_91 = arith.constant 0 : index
    %c0_92 = arith.constant 0 : index
    %205 = vector.load %arg1[%c7, %c0_91, %c0_92] : memref<36x8x1xf32, #tpu.memory_space<vmem>>, vector<1x8x1xf32>
    %206 = vector.shape_cast %205 : vector<1x8x1xf32> to vector<8x1xf32>
    %207 = vector.broadcast %206 : vector<8x1xf32> to vector<8x384xf32>
    %208 = arith.mulf %207, %204 : vector<8x384xf32>
    %209 = arith.addf %188, %208 : vector<8x384xf32>
    %c16 = arith.constant 16 : index
    %c0_93 = arith.constant 0 : index
    %c0_94 = arith.constant 0 : index
    %210 = vector.load %arg1[%c16, %c0_93, %c0_94] : memref<36x8x1xf32, #tpu.memory_space<vmem>>, vector<1x8x1xf32>
    %211 = vector.shape_cast %210 : vector<1x8x1xf32> to vector<8x1xf32>
    %212 = vector.broadcast %211 : vector<8x1xf32> to vector<8x384xf32>
    %213 = arith.mulf %212, %204 : vector<8x384xf32>
    %214 = arith.addf %193, %213 : vector<8x384xf32>
    %c25 = arith.constant 25 : index
    %c0_95 = arith.constant 0 : index
    %c0_96 = arith.constant 0 : index
    %215 = vector.load %arg1[%c25, %c0_95, %c0_96] : memref<36x8x1xf32, #tpu.memory_space<vmem>>, vector<1x8x1xf32>
    %216 = vector.shape_cast %215 : vector<1x8x1xf32> to vector<8x1xf32>
    %217 = vector.broadcast %216 : vector<8x1xf32> to vector<8x384xf32>
    %218 = arith.mulf %217, %204 : vector<8x384xf32>
    %219 = arith.addf %198, %218 : vector<8x384xf32>
    %c34 = arith.constant 34 : index
    %c0_97 = arith.constant 0 : index
    %c0_98 = arith.constant 0 : index
    %220 = vector.load %arg1[%c34, %c0_97, %c0_98] : memref<36x8x1xf32, #tpu.memory_space<vmem>>, vector<1x8x1xf32>
    %221 = vector.shape_cast %220 : vector<1x8x1xf32> to vector<8x1xf32>
    %222 = vector.broadcast %221 : vector<8x1xf32> to vector<8x384xf32>
    %223 = arith.mulf %222, %204 : vector<8x384xf32>
    %224 = arith.addf %203, %223 : vector<8x384xf32>
    %c0_99 = arith.constant 0 : index
    %c38 = arith.constant 38 : index
    %225 = vector.load %arg0[%c0_99, %c38] : memref<8x512xf32, #tpu.memory_space<vmem>>, vector<8x384xf32>
    %c8 = arith.constant 8 : index
    %c0_100 = arith.constant 0 : index
    %c0_101 = arith.constant 0 : index
    %226 = vector.load %arg1[%c8, %c0_100, %c0_101] : memref<36x8x1xf32, #tpu.memory_space<vmem>>, vector<1x8x1xf32>
    %227 = vector.shape_cast %226 : vector<1x8x1xf32> to vector<8x1xf32>
    %228 = vector.broadcast %227 : vector<8x1xf32> to vector<8x384xf32>
    %229 = arith.mulf %228, %225 : vector<8x384xf32>
    %230 = arith.addf %209, %229 : vector<8x384xf32>
    %c17 = arith.constant 17 : index
    %c0_102 = arith.constant 0 : index
    %c0_103 = arith.constant 0 : index
    %231 = vector.load %arg1[%c17, %c0_102, %c0_103] : memref<36x8x1xf32, #tpu.memory_space<vmem>>, vector<1x8x1xf32>
    %232 = vector.shape_cast %231 : vector<1x8x1xf32> to vector<8x1xf32>
    %233 = vector.broadcast %232 : vector<8x1xf32> to vector<8x384xf32>
    %234 = arith.mulf %233, %225 : vector<8x384xf32>
    %235 = arith.addf %214, %234 : vector<8x384xf32>
    %c26 = arith.constant 26 : index
    %c0_104 = arith.constant 0 : index
    %c0_105 = arith.constant 0 : index
    %236 = vector.load %arg1[%c26, %c0_104, %c0_105] : memref<36x8x1xf32, #tpu.memory_space<vmem>>, vector<1x8x1xf32>
    %237 = vector.shape_cast %236 : vector<1x8x1xf32> to vector<8x1xf32>
    %238 = vector.broadcast %237 : vector<8x1xf32> to vector<8x384xf32>
    %239 = arith.mulf %238, %225 : vector<8x384xf32>
    %240 = arith.addf %219, %239 : vector<8x384xf32>
    %c35 = arith.constant 35 : index
    %c0_106 = arith.constant 0 : index
    %c0_107 = arith.constant 0 : index
    %241 = vector.load %arg1[%c35, %c0_106, %c0_107] : memref<36x8x1xf32, #tpu.memory_space<vmem>>, vector<1x8x1xf32>
    %242 = vector.shape_cast %241 : vector<1x8x1xf32> to vector<8x1xf32>
    %243 = vector.broadcast %242 : vector<8x1xf32> to vector<8x384xf32>
    %244 = arith.mulf %243, %225 : vector<8x384xf32>
    %245 = arith.addf %224, %244 : vector<8x384xf32>
    %cst_108 = arith.constant 0.000000e+00 : f32
    %246 = vector.broadcast %cst_108 : f32 to vector<8x384xf32>
    %cst_109 = arith.constant 0.000000e+00 : f32
    %247 = vector.broadcast %cst_109 : f32 to vector<8x1xf32>
    %c4_i32_110 = arith.constant 4 : i32
    %248 = tpu.dynamic_rotate %230 by %c4_i32_110 dim 0 : vector<8x384xf32>, i32 -> vector<8x384xf32>
    %249 = arith.addf %230, %248 : vector<8x384xf32>
    %c2_i32_111 = arith.constant 2 : i32
    %250 = tpu.dynamic_rotate %249 by %c2_i32_111 dim 0 : vector<8x384xf32>, i32 -> vector<8x384xf32>
    %251 = arith.addf %249, %250 : vector<8x384xf32>
    %252 = vector.broadcast %26 : vector<8x1xf32> to vector<8x384xf32>
    %253 = arith.mulf %251, %252 : vector<8x384xf32>
    %254 = arith.addf %246, %253 : vector<8x384xf32>
    %c0_112 = arith.constant 0 : index
    %255 = memref.load %arg3[%c0_112] : memref<4xf32, #tpu.memory_space<smem>>
    %256 = vector.broadcast %255 : f32 to vector<8x1xf32>
    %257 = arith.mulf %256, %26 : vector<8x1xf32>
    %258 = arith.addf %247, %257 : vector<8x1xf32>
    %c4_i32_113 = arith.constant 4 : i32
    %259 = tpu.dynamic_rotate %235 by %c4_i32_113 dim 0 : vector<8x384xf32>, i32 -> vector<8x384xf32>
    %260 = arith.addf %235, %259 : vector<8x384xf32>
    %c2_i32_114 = arith.constant 2 : i32
    %261 = tpu.dynamic_rotate %260 by %c2_i32_114 dim 0 : vector<8x384xf32>, i32 -> vector<8x384xf32>
    %262 = arith.addf %260, %261 : vector<8x384xf32>
    %263 = vector.broadcast %34 : vector<8x1xf32> to vector<8x384xf32>
    %264 = arith.mulf %262, %263 : vector<8x384xf32>
    %265 = arith.addf %254, %264 : vector<8x384xf32>
    %c1_115 = arith.constant 1 : index
    %266 = memref.load %arg3[%c1_115] : memref<4xf32, #tpu.memory_space<smem>>
    %267 = vector.broadcast %266 : f32 to vector<8x1xf32>
    %268 = arith.mulf %267, %34 : vector<8x1xf32>
    %269 = arith.addf %258, %268 : vector<8x1xf32>
    %c4_i32_116 = arith.constant 4 : i32
    %270 = tpu.dynamic_rotate %240 by %c4_i32_116 dim 0 : vector<8x384xf32>, i32 -> vector<8x384xf32>
    %271 = arith.addf %240, %270 : vector<8x384xf32>
    %c2_i32_117 = arith.constant 2 : i32
    %272 = tpu.dynamic_rotate %271 by %c2_i32_117 dim 0 : vector<8x384xf32>, i32 -> vector<8x384xf32>
    %273 = arith.addf %271, %272 : vector<8x384xf32>
    %274 = vector.broadcast %42 : vector<8x1xf32> to vector<8x384xf32>
    %275 = arith.mulf %273, %274 : vector<8x384xf32>
    %276 = arith.addf %265, %275 : vector<8x384xf32>
    %c2_118 = arith.constant 2 : index
    %277 = memref.load %arg3[%c2_118] : memref<4xf32, #tpu.memory_space<smem>>
    %278 = vector.broadcast %277 : f32 to vector<8x1xf32>
    %279 = arith.mulf %278, %42 : vector<8x1xf32>
    %280 = arith.addf %269, %279 : vector<8x1xf32>
    %c4_i32_119 = arith.constant 4 : i32
    %281 = tpu.dynamic_rotate %245 by %c4_i32_119 dim 0 : vector<8x384xf32>, i32 -> vector<8x384xf32>
    %282 = arith.addf %245, %281 : vector<8x384xf32>
    %c2_i32_120 = arith.constant 2 : i32
    %283 = tpu.dynamic_rotate %282 by %c2_i32_120 dim 0 : vector<8x384xf32>, i32 -> vector<8x384xf32>
    %284 = arith.addf %282, %283 : vector<8x384xf32>
    %285 = vector.broadcast %50 : vector<8x1xf32> to vector<8x384xf32>
    %286 = arith.mulf %284, %285 : vector<8x384xf32>
    %287 = arith.addf %276, %286 : vector<8x384xf32>
    %c3_121 = arith.constant 3 : index
    %288 = memref.load %arg3[%c3_121] : memref<4xf32, #tpu.memory_space<smem>>
    %289 = vector.broadcast %288 : f32 to vector<8x1xf32>
    %290 = arith.mulf %289, %50 : vector<8x1xf32>
    %291 = arith.addf %280, %290 : vector<8x1xf32>
    %292 = vector.broadcast %291 : vector<8x1xf32> to vector<8x384xf32>
    %293 = arith.addf %287, %292 : vector<8x384xf32>
    %cst_122 = arith.constant 0.000000e+00 : f32
    %294 = vector.broadcast %cst_122 : f32 to vector<8x384xf32>
    %295 = arith.maximumf %293, %294 : vector<8x384xf32>
    %296 = arith.mulf %295, %17 : vector<8x384xf32>
    %cst_123 = arith.constant dense<0.000000e+00> : vector<8xf32>
    %297 = vector.multi_reduction <add>, %296, %cst_123 [1] : vector<8x384xf32> to vector<8xf32>
    %298 = vector.shape_cast %297 : vector<8xf32> to vector<8x1xf32>
    %299 = arith.mulf %296, %296 : vector<8x384xf32>
    %cst_124 = arith.constant dense<0.000000e+00> : vector<8xf32>
    %300 = vector.multi_reduction <add>, %299, %cst_124 [1] : vector<8x384xf32> to vector<8xf32>
    %301 = vector.shape_cast %300 : vector<8xf32> to vector<8x1xf32>
    %cst_125 = arith.constant 0.000000e+00 : f32
    %302 = vector.broadcast %cst_125 : f32 to vector<8x1xf32>
    %cst_126 = arith.constant 0.000000e+00 : f32
    %303 = vector.broadcast %cst_126 : f32 to vector<8x1xf32>
    %304 = arith.mulf %298, %26 : vector<8x1xf32>
    %305 = vector.shape_cast %304 : vector<8x1xf32> to vector<1x8x1xf32>
    %cst_127 = arith.constant dense<0.000000e+00> : vector<1xf32>
    %306 = vector.multi_reduction <add>, %305, %cst_127 [1, 2] : vector<1x8x1xf32> to vector<1xf32>
    %307 = vector.shape_cast %306 : vector<1xf32> to vector<1x1x1xf32>
    %308 = vector.extract %307[0, 0, 0] : f32 from vector<1x1x1xf32>
    %cst_128 = arith.constant 0.001953125 : f32
    %309 = arith.mulf %308, %cst_128 : f32
    %310 = arith.mulf %301, %26 : vector<8x1xf32>
    %311 = vector.shape_cast %310 : vector<8x1xf32> to vector<1x8x1xf32>
    %cst_129 = arith.constant dense<0.000000e+00> : vector<1xf32>
    %312 = vector.multi_reduction <add>, %311, %cst_129 [1, 2] : vector<1x8x1xf32> to vector<1xf32>
    %313 = vector.shape_cast %312 : vector<1xf32> to vector<1x1x1xf32>
    %314 = vector.extract %313[0, 0, 0] : f32 from vector<1x1x1xf32>
    %cst_130 = arith.constant 0.001953125 : f32
    %315 = arith.mulf %314, %cst_130 : f32
    %316 = arith.mulf %309, %309 : f32
    %317 = arith.subf %315, %316 : f32
    %cst_131 = arith.constant 1.000000e-03 : f32
    %318 = arith.addf %317, %cst_131 : f32
    %319 = math.rsqrt %318 : f32
    %c0_132 = arith.constant 0 : index
    %320 = memref.load %arg4[%c0_132] : memref<4xf32, #tpu.memory_space<smem>>
    %321 = arith.mulf %319, %320 : f32
    %c0_133 = arith.constant 0 : index
    %322 = memref.load %arg5[%c0_133] : memref<4xf32, #tpu.memory_space<smem>>
    %323 = arith.mulf %309, %321 : f32
    %324 = arith.subf %322, %323 : f32
    %325 = vector.broadcast %321 : f32 to vector<8x1xf32>
    %326 = arith.mulf %325, %26 : vector<8x1xf32>
    %327 = arith.addf %302, %326 : vector<8x1xf32>
    %328 = vector.broadcast %324 : f32 to vector<8x1xf32>
    %329 = arith.mulf %328, %26 : vector<8x1xf32>
    %330 = arith.addf %303, %329 : vector<8x1xf32>
    %331 = arith.mulf %298, %34 : vector<8x1xf32>
    %332 = vector.shape_cast %331 : vector<8x1xf32> to vector<1x8x1xf32>
    %cst_134 = arith.constant dense<0.000000e+00> : vector<1xf32>
    %333 = vector.multi_reduction <add>, %332, %cst_134 [1, 2] : vector<1x8x1xf32> to vector<1xf32>
    %334 = vector.shape_cast %333 : vector<1xf32> to vector<1x1x1xf32>
    %335 = vector.extract %334[0, 0, 0] : f32 from vector<1x1x1xf32>
    %cst_135 = arith.constant 0.001953125 : f32
    %336 = arith.mulf %335, %cst_135 : f32
    %337 = arith.mulf %301, %34 : vector<8x1xf32>
    %338 = vector.shape_cast %337 : vector<8x1xf32> to vector<1x8x1xf32>
    %cst_136 = arith.constant dense<0.000000e+00> : vector<1xf32>
    %339 = vector.multi_reduction <add>, %338, %cst_136 [1, 2] : vector<1x8x1xf32> to vector<1xf32>
    %340 = vector.shape_cast %339 : vector<1xf32> to vector<1x1x1xf32>
    %341 = vector.extract %340[0, 0, 0] : f32 from vector<1x1x1xf32>
    %cst_137 = arith.constant 0.001953125 : f32
    %342 = arith.mulf %341, %cst_137 : f32
    %343 = arith.mulf %336, %336 : f32
    %344 = arith.subf %342, %343 : f32
    %cst_138 = arith.constant 1.000000e-03 : f32
    %345 = arith.addf %344, %cst_138 : f32
    %346 = math.rsqrt %345 : f32
    %c1_139 = arith.constant 1 : index
    %347 = memref.load %arg4[%c1_139] : memref<4xf32, #tpu.memory_space<smem>>
    %348 = arith.mulf %346, %347 : f32
    %c1_140 = arith.constant 1 : index
    %349 = memref.load %arg5[%c1_140] : memref<4xf32, #tpu.memory_space<smem>>
    %350 = arith.mulf %336, %348 : f32
    %351 = arith.subf %349, %350 : f32
    %352 = vector.broadcast %348 : f32 to vector<8x1xf32>
    %353 = arith.mulf %352, %34 : vector<8x1xf32>
    %354 = arith.addf %327, %353 : vector<8x1xf32>
    %355 = vector.broadcast %351 : f32 to vector<8x1xf32>
    %356 = arith.mulf %355, %34 : vector<8x1xf32>
    %357 = arith.addf %330, %356 : vector<8x1xf32>
    %358 = arith.mulf %298, %42 : vector<8x1xf32>
    %359 = vector.shape_cast %358 : vector<8x1xf32> to vector<1x8x1xf32>
    %cst_141 = arith.constant dense<0.000000e+00> : vector<1xf32>
    %360 = vector.multi_reduction <add>, %359, %cst_141 [1, 2] : vector<1x8x1xf32> to vector<1xf32>
    %361 = vector.shape_cast %360 : vector<1xf32> to vector<1x1x1xf32>
    %362 = vector.extract %361[0, 0, 0] : f32 from vector<1x1x1xf32>
    %cst_142 = arith.constant 0.001953125 : f32
    %363 = arith.mulf %362, %cst_142 : f32
    %364 = arith.mulf %301, %42 : vector<8x1xf32>
    %365 = vector.shape_cast %364 : vector<8x1xf32> to vector<1x8x1xf32>
    %cst_143 = arith.constant dense<0.000000e+00> : vector<1xf32>
    %366 = vector.multi_reduction <add>, %365, %cst_143 [1, 2] : vector<1x8x1xf32> to vector<1xf32>
    %367 = vector.shape_cast %366 : vector<1xf32> to vector<1x1x1xf32>
    %368 = vector.extract %367[0, 0, 0] : f32 from vector<1x1x1xf32>
    %cst_144 = arith.constant 0.001953125 : f32
    %369 = arith.mulf %368, %cst_144 : f32
    %370 = arith.mulf %363, %363 : f32
    %371 = arith.subf %369, %370 : f32
    %cst_145 = arith.constant 1.000000e-03 : f32
    %372 = arith.addf %371, %cst_145 : f32
    %373 = math.rsqrt %372 : f32
    %c2_146 = arith.constant 2 : index
    %374 = memref.load %arg4[%c2_146] : memref<4xf32, #tpu.memory_space<smem>>
    %375 = arith.mulf %373, %374 : f32
    %c2_147 = arith.constant 2 : index
    %376 = memref.load %arg5[%c2_147] : memref<4xf32, #tpu.memory_space<smem>>
    %377 = arith.mulf %363, %375 : f32
    %378 = arith.subf %376, %377 : f32
    %379 = vector.broadcast %375 : f32 to vector<8x1xf32>
    %380 = arith.mulf %379, %42 : vector<8x1xf32>
    %381 = arith.addf %354, %380 : vector<8x1xf32>
    %382 = vector.broadcast %378 : f32 to vector<8x1xf32>
    %383 = arith.mulf %382, %42 : vector<8x1xf32>
    %384 = arith.addf %357, %383 : vector<8x1xf32>
    %385 = arith.mulf %298, %50 : vector<8x1xf32>
    %386 = vector.shape_cast %385 : vector<8x1xf32> to vector<1x8x1xf32>
    %cst_148 = arith.constant dense<0.000000e+00> : vector<1xf32>
    %387 = vector.multi_reduction <add>, %386, %cst_148 [1, 2] : vector<1x8x1xf32> to vector<1xf32>
    %388 = vector.shape_cast %387 : vector<1xf32> to vector<1x1x1xf32>
    %389 = vector.extract %388[0, 0, 0] : f32 from vector<1x1x1xf32>
    %cst_149 = arith.constant 0.001953125 : f32
    %390 = arith.mulf %389, %cst_149 : f32
    %391 = arith.mulf %301, %50 : vector<8x1xf32>
    %392 = vector.shape_cast %391 : vector<8x1xf32> to vector<1x8x1xf32>
    %cst_150 = arith.constant dense<0.000000e+00> : vector<1xf32>
    %393 = vector.multi_reduction <add>, %392, %cst_150 [1, 2] : vector<1x8x1xf32> to vector<1xf32>
    %394 = vector.shape_cast %393 : vector<1xf32> to vector<1x1x1xf32>
    %395 = vector.extract %394[0, 0, 0] : f32 from vector<1x1x1xf32>
    %cst_151 = arith.constant 0.001953125 : f32
    %396 = arith.mulf %395, %cst_151 : f32
    %397 = arith.mulf %390, %390 : f32
    %398 = arith.subf %396, %397 : f32
    %cst_152 = arith.constant 1.000000e-03 : f32
    %399 = arith.addf %398, %cst_152 : f32
    %400 = math.rsqrt %399 : f32
    %c3_153 = arith.constant 3 : index
    %401 = memref.load %arg4[%c3_153] : memref<4xf32, #tpu.memory_space<smem>>
    %402 = arith.mulf %400, %401 : f32
    %c3_154 = arith.constant 3 : index
    %403 = memref.load %arg5[%c3_154] : memref<4xf32, #tpu.memory_space<smem>>
    %404 = arith.mulf %390, %402 : f32
    %405 = arith.subf %403, %404 : f32
    %406 = vector.broadcast %402 : f32 to vector<8x1xf32>
    %407 = arith.mulf %406, %50 : vector<8x1xf32>
    %408 = arith.addf %381, %407 : vector<8x1xf32>
    %409 = vector.broadcast %405 : f32 to vector<8x1xf32>
    %410 = arith.mulf %409, %50 : vector<8x1xf32>
    %411 = arith.addf %384, %410 : vector<8x1xf32>
    %412 = vector.broadcast %408 : vector<8x1xf32> to vector<8x384xf32>
    %413 = arith.mulf %296, %412 : vector<8x384xf32>
    %414 = vector.broadcast %411 : vector<8x1xf32> to vector<8x384xf32>
    %415 = arith.addf %413, %414 : vector<8x384xf32>
    %416 = arith.mulf %415, %17 : vector<8x384xf32>
    %c0_155 = arith.constant 0 : index
    %c128 = arith.constant 128 : index
    %417 = vector.load %arg10[%c0_155, %c128] : memref<8x640xf32, #tpu.memory_space<vmem>>, vector<8x384xf32>
    tpu.vector_store %arg10[%c0_155, %c128], %416 {strides = array<i32>} : memref<8x640xf32, #tpu.memory_space<vmem>>, vector<8x384xf32>,
    %cst_156 = arith.constant 0.000000e+00 : f32
    %418 = vector.broadcast %cst_156 : f32 to vector<8x384xf32>
    %cst_157 = arith.constant 0.000000e+00 : f32
    %419 = vector.broadcast %cst_157 : f32 to vector<8x384xf32>
    %cst_158 = arith.constant 0.000000e+00 : f32
    %420 = vector.broadcast %cst_158 : f32 to vector<8x384xf32>
    %cst_159 = arith.constant 0.000000e+00 : f32
    %421 = vector.broadcast %cst_159 : f32 to vector<8x384xf32>
    %c0_160 = arith.constant 0 : index
    %c109 = arith.constant 109 : index
    %422 = vector.load %arg10[%c0_160, %c109] : memref<8x640xf32, #tpu.memory_space<vmem>>, vector<8x384xf32>
    %c0_161 = arith.constant 0 : index
    %c0_162 = arith.constant 0 : index
    %c0_163 = arith.constant 0 : index
    %423 = vector.load %arg2[%c0_161, %c0_162, %c0_163] : memref<36x8x1xf32, #tpu.memory_space<vmem>>, vector<1x8x1xf32>
    %424 = vector.shape_cast %423 : vector<1x8x1xf32> to vector<8x1xf32>
    %425 = vector.broadcast %424 : vector<8x1xf32> to vector<8x384xf32>
    %426 = arith.mulf %425, %422 : vector<8x384xf32>
    %427 = arith.addf %418, %426 : vector<8x384xf32>
    %c9_164 = arith.constant 9 : index
    %c0_165 = arith.constant 0 : index
    %c0_166 = arith.constant 0 : index
    %428 = vector.load %arg2[%c9_164, %c0_165, %c0_166] : memref<36x8x1xf32, #tpu.memory_space<vmem>>, vector<1x8x1xf32>
    %429 = vector.shape_cast %428 : vector<1x8x1xf32> to vector<8x1xf32>
    %430 = vector.broadcast %429 : vector<8x1xf32> to vector<8x384xf32>
    %431 = arith.mulf %430, %422 : vector<8x384xf32>
    %432 = arith.addf %419, %431 : vector<8x384xf32>
    %c18_167 = arith.constant 18 : index
    %c0_168 = arith.constant 0 : index
    %c0_169 = arith.constant 0 : index
    %433 = vector.load %arg2[%c18_167, %c0_168, %c0_169] : memref<36x8x1xf32, #tpu.memory_space<vmem>>, vector<1x8x1xf32>
    %434 = vector.shape_cast %433 : vector<1x8x1xf32> to vector<8x1xf32>
    %435 = vector.broadcast %434 : vector<8x1xf32> to vector<8x384xf32>
    %436 = arith.mulf %435, %422 : vector<8x384xf32>
    %437 = arith.addf %420, %436 : vector<8x384xf32>
    %c27_170 = arith.constant 27 : index
    %c0_171 = arith.constant 0 : index
    %c0_172 = arith.constant 0 : index
    %438 = vector.load %arg2[%c27_170, %c0_171, %c0_172] : memref<36x8x1xf32, #tpu.memory_space<vmem>>, vector<1x8x1xf32>
    %439 = vector.shape_cast %438 : vector<1x8x1xf32> to vector<8x1xf32>
    %440 = vector.broadcast %439 : vector<8x1xf32> to vector<8x384xf32>
    %441 = arith.mulf %440, %422 : vector<8x384xf32>
    %442 = arith.addf %421, %441 : vector<8x384xf32>
    %c0_173 = arith.constant 0 : index
    %c110 = arith.constant 110 : index
    %443 = vector.load %arg10[%c0_173, %c110] : memref<8x640xf32, #tpu.memory_space<vmem>>, vector<8x384xf32>
    %c1_174 = arith.constant 1 : index
    %c0_175 = arith.constant 0 : index
    %c0_176 = arith.constant 0 : index
    %444 = vector.load %arg2[%c1_174, %c0_175, %c0_176] : memref<36x8x1xf32, #tpu.memory_space<vmem>>, vector<1x8x1xf32>
    %445 = vector.shape_cast %444 : vector<1x8x1xf32> to vector<8x1xf32>
    %446 = vector.broadcast %445 : vector<8x1xf32> to vector<8x384xf32>
    %447 = arith.mulf %446, %443 : vector<8x384xf32>
    %448 = arith.addf %427, %447 : vector<8x384xf32>
    %c10_177 = arith.constant 10 : index
    %c0_178 = arith.constant 0 : index
    %c0_179 = arith.constant 0 : index
    %449 = vector.load %arg2[%c10_177, %c0_178, %c0_179] : memref<36x8x1xf32, #tpu.memory_space<vmem>>, vector<1x8x1xf32>
    %450 = vector.shape_cast %449 : vector<1x8x1xf32> to vector<8x1xf32>
    %451 = vector.broadcast %450 : vector<8x1xf32> to vector<8x384xf32>
    %452 = arith.mulf %451, %443 : vector<8x384xf32>
    %453 = arith.addf %432, %452 : vector<8x384xf32>
    %c19_180 = arith.constant 19 : index
    %c0_181 = arith.constant 0 : index
    %c0_182 = arith.constant 0 : index
    %454 = vector.load %arg2[%c19_180, %c0_181, %c0_182] : memref<36x8x1xf32, #tpu.memory_space<vmem>>, vector<1x8x1xf32>
    %455 = vector.shape_cast %454 : vector<1x8x1xf32> to vector<8x1xf32>
    %456 = vector.broadcast %455 : vector<8x1xf32> to vector<8x384xf32>
    %457 = arith.mulf %456, %443 : vector<8x384xf32>
    %458 = arith.addf %437, %457 : vector<8x384xf32>
    %c28_183 = arith.constant 28 : index
    %c0_184 = arith.constant 0 : index
    %c0_185 = arith.constant 0 : index
    %459 = vector.load %arg2[%c28_183, %c0_184, %c0_185] : memref<36x8x1xf32, #tpu.memory_space<vmem>>, vector<1x8x1xf32>
    %460 = vector.shape_cast %459 : vector<1x8x1xf32> to vector<8x1xf32>
    %461 = vector.broadcast %460 : vector<8x1xf32> to vector<8x384xf32>
    %462 = arith.mulf %461, %443 : vector<8x384xf32>
    %463 = arith.addf %442, %462 : vector<8x384xf32>
    %c0_186 = arith.constant 0 : index
    %c111 = arith.constant 111 : index
    %464 = vector.load %arg10[%c0_186, %c111] : memref<8x640xf32, #tpu.memory_space<vmem>>, vector<8x384xf32>
    %c2_187 = arith.constant 2 : index
    %c0_188 = arith.constant 0 : index
    %c0_189 = arith.constant 0 : index
    %465 = vector.load %arg2[%c2_187, %c0_188, %c0_189] : memref<36x8x1xf32, #tpu.memory_space<vmem>>, vector<1x8x1xf32>
    %466 = vector.shape_cast %465 : vector<1x8x1xf32> to vector<8x1xf32>
    %467 = vector.broadcast %466 : vector<8x1xf32> to vector<8x384xf32>
    %468 = arith.mulf %467, %464 : vector<8x384xf32>
    %469 = arith.addf %448, %468 : vector<8x384xf32>
    %c11_190 = arith.constant 11 : index
    %c0_191 = arith.constant 0 : index
    %c0_192 = arith.constant 0 : index
    %470 = vector.load %arg2[%c11_190, %c0_191, %c0_192] : memref<36x8x1xf32, #tpu.memory_space<vmem>>, vector<1x8x1xf32>
    %471 = vector.shape_cast %470 : vector<1x8x1xf32> to vector<8x1xf32>
    %472 = vector.broadcast %471 : vector<8x1xf32> to vector<8x384xf32>
    %473 = arith.mulf %472, %464 : vector<8x384xf32>
    %474 = arith.addf %453, %473 : vector<8x384xf32>
    %c20_193 = arith.constant 20 : index
    %c0_194 = arith.constant 0 : index
    %c0_195 = arith.constant 0 : index
    %475 = vector.load %arg2[%c20_193, %c0_194, %c0_195] : memref<36x8x1xf32, #tpu.memory_space<vmem>>, vector<1x8x1xf32>
    %476 = vector.shape_cast %475 : vector<1x8x1xf32> to vector<8x1xf32>
    %477 = vector.broadcast %476 : vector<8x1xf32> to vector<8x384xf32>
    %478 = arith.mulf %477, %464 : vector<8x384xf32>
    %479 = arith.addf %458, %478 : vector<8x384xf32>
    %c29_196 = arith.constant 29 : index
    %c0_197 = arith.constant 0 : index
    %c0_198 = arith.constant 0 : index
    %480 = vector.load %arg2[%c29_196, %c0_197, %c0_198] : memref<36x8x1xf32, #tpu.memory_space<vmem>>, vector<1x8x1xf32>
    %481 = vector.shape_cast %480 : vector<1x8x1xf32> to vector<8x1xf32>
    %482 = vector.broadcast %481 : vector<8x1xf32> to vector<8x384xf32>
    %483 = arith.mulf %482, %464 : vector<8x384xf32>
    %484 = arith.addf %463, %483 : vector<8x384xf32>
    %c0_199 = arith.constant 0 : index
    %c127 = arith.constant 127 : index
    %485 = vector.load %arg10[%c0_199, %c127] : memref<8x640xf32, #tpu.memory_space<vmem>>, vector<8x384xf32>
    %c3_200 = arith.constant 3 : index
    %c0_201 = arith.constant 0 : index
    %c0_202 = arith.constant 0 : index
    %486 = vector.load %arg2[%c3_200, %c0_201, %c0_202] : memref<36x8x1xf32, #tpu.memory_space<vmem>>, vector<1x8x1xf32>
    %487 = vector.shape_cast %486 : vector<1x8x1xf32> to vector<8x1xf32>
    %488 = vector.broadcast %487 : vector<8x1xf32> to vector<8x384xf32>
    %489 = arith.mulf %488, %485 : vector<8x384xf32>
    %490 = arith.addf %469, %489 : vector<8x384xf32>
    %c12_203 = arith.constant 12 : index
    %c0_204 = arith.constant 0 : index
    %c0_205 = arith.constant 0 : index
    %491 = vector.load %arg2[%c12_203, %c0_204, %c0_205] : memref<36x8x1xf32, #tpu.memory_space<vmem>>, vector<1x8x1xf32>
    %492 = vector.shape_cast %491 : vector<1x8x1xf32> to vector<8x1xf32>
    %493 = vector.broadcast %492 : vector<8x1xf32> to vector<8x384xf32>
    %494 = arith.mulf %493, %485 : vector<8x384xf32>
    %495 = arith.addf %474, %494 : vector<8x384xf32>
    %c21_206 = arith.constant 21 : index
    %c0_207 = arith.constant 0 : index
    %c0_208 = arith.constant 0 : index
    %496 = vector.load %arg2[%c21_206, %c0_207, %c0_208] : memref<36x8x1xf32, #tpu.memory_space<vmem>>, vector<1x8x1xf32>
    %497 = vector.shape_cast %496 : vector<1x8x1xf32> to vector<8x1xf32>
    %498 = vector.broadcast %497 : vector<8x1xf32> to vector<8x384xf32>
    %499 = arith.mulf %498, %485 : vector<8x384xf32>
    %500 = arith.addf %479, %499 : vector<8x384xf32>
    %c30_209 = arith.constant 30 : index
    %c0_210 = arith.constant 0 : index
    %c0_211 = arith.constant 0 : index
    %501 = vector.load %arg2[%c30_209, %c0_210, %c0_211] : memref<36x8x1xf32, #tpu.memory_space<vmem>>, vector<1x8x1xf32>
    %502 = vector.shape_cast %501 : vector<1x8x1xf32> to vector<8x1xf32>
    %503 = vector.broadcast %502 : vector<8x1xf32> to vector<8x384xf32>
    %504 = arith.mulf %503, %485 : vector<8x384xf32>
    %505 = arith.addf %484, %504 : vector<8x384xf32>
    %c0_212 = arith.constant 0 : index
    %c128_213 = arith.constant 128 : index
    %506 = vector.load %arg10[%c0_212, %c128_213] : memref<8x640xf32, #tpu.memory_space<vmem>>, vector<8x384xf32>
    %c4_214 = arith.constant 4 : index
    %c0_215 = arith.constant 0 : index
    %c0_216 = arith.constant 0 : index
    %507 = vector.load %arg2[%c4_214, %c0_215, %c0_216] : memref<36x8x1xf32, #tpu.memory_space<vmem>>, vector<1x8x1xf32>
    %508 = vector.shape_cast %507 : vector<1x8x1xf32> to vector<8x1xf32>
    %509 = vector.broadcast %508 : vector<8x1xf32> to vector<8x384xf32>
    %510 = arith.mulf %509, %506 : vector<8x384xf32>
    %511 = arith.addf %490, %510 : vector<8x384xf32>
    %c13_217 = arith.constant 13 : index
    %c0_218 = arith.constant 0 : index
    %c0_219 = arith.constant 0 : index
    %512 = vector.load %arg2[%c13_217, %c0_218, %c0_219] : memref<36x8x1xf32, #tpu.memory_space<vmem>>, vector<1x8x1xf32>
    %513 = vector.shape_cast %512 : vector<1x8x1xf32> to vector<8x1xf32>
    %514 = vector.broadcast %513 : vector<8x1xf32> to vector<8x384xf32>
    %515 = arith.mulf %514, %506 : vector<8x384xf32>
    %516 = arith.addf %495, %515 : vector<8x384xf32>
    %c22_220 = arith.constant 22 : index
    %c0_221 = arith.constant 0 : index
    %c0_222 = arith.constant 0 : index
    %517 = vector.load %arg2[%c22_220, %c0_221, %c0_222] : memref<36x8x1xf32, #tpu.memory_space<vmem>>, vector<1x8x1xf32>
    %518 = vector.shape_cast %517 : vector<1x8x1xf32> to vector<8x1xf32>
    %519 = vector.broadcast %518 : vector<8x1xf32> to vector<8x384xf32>
    %520 = arith.mulf %519, %506 : vector<8x384xf32>
    %521 = arith.addf %500, %520 : vector<8x384xf32>
    %c31_223 = arith.constant 31 : index
    %c0_224 = arith.constant 0 : index
    %c0_225 = arith.constant 0 : index
    %522 = vector.load %arg2[%c31_223, %c0_224, %c0_225] : memref<36x8x1xf32, #tpu.memory_space<vmem>>, vector<1x8x1xf32>
    %523 = vector.shape_cast %522 : vector<1x8x1xf32> to vector<8x1xf32>
    %524 = vector.broadcast %523 : vector<8x1xf32> to vector<8x384xf32>
    %525 = arith.mulf %524, %506 : vector<8x384xf32>
    %526 = arith.addf %505, %525 : vector<8x384xf32>
    %c0_226 = arith.constant 0 : index
    %c129 = arith.constant 129 : index
    %527 = vector.load %arg10[%c0_226, %c129] : memref<8x640xf32, #tpu.memory_space<vmem>>, vector<8x384xf32>
    %c5_227 = arith.constant 5 : index
    %c0_228 = arith.constant 0 : index
    %c0_229 = arith.constant 0 : index
    %528 = vector.load %arg2[%c5_227, %c0_228, %c0_229] : memref<36x8x1xf32, #tpu.memory_space<vmem>>, vector<1x8x1xf32>
    %529 = vector.shape_cast %528 : vector<1x8x1xf32> to vector<8x1xf32>
    %530 = vector.broadcast %529 : vector<8x1xf32> to vector<8x384xf32>
    %531 = arith.mulf %530, %527 : vector<8x384xf32>
    %532 = arith.addf %511, %531 : vector<8x384xf32>
    %c14_230 = arith.constant 14 : index
    %c0_231 = arith.constant 0 : index
    %c0_232 = arith.constant 0 : index
    %533 = vector.load %arg2[%c14_230, %c0_231, %c0_232] : memref<36x8x1xf32, #tpu.memory_space<vmem>>, vector<1x8x1xf32>
    %534 = vector.shape_cast %533 : vector<1x8x1xf32> to vector<8x1xf32>
    %535 = vector.broadcast %534 : vector<8x1xf32> to vector<8x384xf32>
    %536 = arith.mulf %535, %527 : vector<8x384xf32>
    %537 = arith.addf %516, %536 : vector<8x384xf32>
    %c23_233 = arith.constant 23 : index
    %c0_234 = arith.constant 0 : index
    %c0_235 = arith.constant 0 : index
    %538 = vector.load %arg2[%c23_233, %c0_234, %c0_235] : memref<36x8x1xf32, #tpu.memory_space<vmem>>, vector<1x8x1xf32>
    %539 = vector.shape_cast %538 : vector<1x8x1xf32> to vector<8x1xf32>
    %540 = vector.broadcast %539 : vector<8x1xf32> to vector<8x384xf32>
    %541 = arith.mulf %540, %527 : vector<8x384xf32>
    %542 = arith.addf %521, %541 : vector<8x384xf32>
    %c32_236 = arith.constant 32 : index
    %c0_237 = arith.constant 0 : index
    %c0_238 = arith.constant 0 : index
    %543 = vector.load %arg2[%c32_236, %c0_237, %c0_238] : memref<36x8x1xf32, #tpu.memory_space<vmem>>, vector<1x8x1xf32>
    %544 = vector.shape_cast %543 : vector<1x8x1xf32> to vector<8x1xf32>
    %545 = vector.broadcast %544 : vector<8x1xf32> to vector<8x384xf32>
    %546 = arith.mulf %545, %527 : vector<8x384xf32>
    %547 = arith.addf %526, %546 : vector<8x384xf32>
    %c0_239 = arith.constant 0 : index
    %c145 = arith.constant 145 : index
    %548 = vector.load %arg10[%c0_239, %c145] : memref<8x640xf32, #tpu.memory_space<vmem>>, vector<8x384xf32>
    %c6_240 = arith.constant 6 : index
    %c0_241 = arith.constant 0 : index
    %c0_242 = arith.constant 0 : index
    %549 = vector.load %arg2[%c6_240, %c0_241, %c0_242] : memref<36x8x1xf32, #tpu.memory_space<vmem>>, vector<1x8x1xf32>
    %550 = vector.shape_cast %549 : vector<1x8x1xf32> to vector<8x1xf32>
    %551 = vector.broadcast %550 : vector<8x1xf32> to vector<8x384xf32>
    %552 = arith.mulf %551, %548 : vector<8x384xf32>
    %553 = arith.addf %532, %552 : vector<8x384xf32>
    %c15_243 = arith.constant 15 : index
    %c0_244 = arith.constant 0 : index
    %c0_245 = arith.constant 0 : index
    %554 = vector.load %arg2[%c15_243, %c0_244, %c0_245] : memref<36x8x1xf32, #tpu.memory_space<vmem>>, vector<1x8x1xf32>
    %555 = vector.shape_cast %554 : vector<1x8x1xf32> to vector<8x1xf32>
    %556 = vector.broadcast %555 : vector<8x1xf32> to vector<8x384xf32>
    %557 = arith.mulf %556, %548 : vector<8x384xf32>
    %558 = arith.addf %537, %557 : vector<8x384xf32>
    %c24_246 = arith.constant 24 : index
    %c0_247 = arith.constant 0 : index
    %c0_248 = arith.constant 0 : index
    %559 = vector.load %arg2[%c24_246, %c0_247, %c0_248] : memref<36x8x1xf32, #tpu.memory_space<vmem>>, vector<1x8x1xf32>
    %560 = vector.shape_cast %559 : vector<1x8x1xf32> to vector<8x1xf32>
    %561 = vector.broadcast %560 : vector<8x1xf32> to vector<8x384xf32>
    %562 = arith.mulf %561, %548 : vector<8x384xf32>
    %563 = arith.addf %542, %562 : vector<8x384xf32>
    %c33_249 = arith.constant 33 : index
    %c0_250 = arith.constant 0 : index
    %c0_251 = arith.constant 0 : index
    %564 = vector.load %arg2[%c33_249, %c0_250, %c0_251] : memref<36x8x1xf32, #tpu.memory_space<vmem>>, vector<1x8x1xf32>
    %565 = vector.shape_cast %564 : vector<1x8x1xf32> to vector<8x1xf32>
    %566 = vector.broadcast %565 : vector<8x1xf32> to vector<8x384xf32>
    %567 = arith.mulf %566, %548 : vector<8x384xf32>
    %568 = arith.addf %547, %567 : vector<8x384xf32>
    %c0_252 = arith.constant 0 : index
    %c146 = arith.constant 146 : index
    %569 = vector.load %arg10[%c0_252, %c146] : memref<8x640xf32, #tpu.memory_space<vmem>>, vector<8x384xf32>
    %c7_253 = arith.constant 7 : index
    %c0_254 = arith.constant 0 : index
    %c0_255 = arith.constant 0 : index
    %570 = vector.load %arg2[%c7_253, %c0_254, %c0_255] : memref<36x8x1xf32, #tpu.memory_space<vmem>>, vector<1x8x1xf32>
    %571 = vector.shape_cast %570 : vector<1x8x1xf32> to vector<8x1xf32>
    %572 = vector.broadcast %571 : vector<8x1xf32> to vector<8x384xf32>
    %573 = arith.mulf %572, %569 : vector<8x384xf32>
    %574 = arith.addf %553, %573 : vector<8x384xf32>
    %c16_256 = arith.constant 16 : index
    %c0_257 = arith.constant 0 : index
    %c0_258 = arith.constant 0 : index
    %575 = vector.load %arg2[%c16_256, %c0_257, %c0_258] : memref<36x8x1xf32, #tpu.memory_space<vmem>>, vector<1x8x1xf32>
    %576 = vector.shape_cast %575 : vector<1x8x1xf32> to vector<8x1xf32>
    %577 = vector.broadcast %576 : vector<8x1xf32> to vector<8x384xf32>
    %578 = arith.mulf %577, %569 : vector<8x384xf32>
    %579 = arith.addf %558, %578 : vector<8x384xf32>
    %c25_259 = arith.constant 25 : index
    %c0_260 = arith.constant 0 : index
    %c0_261 = arith.constant 0 : index
    %580 = vector.load %arg2[%c25_259, %c0_260, %c0_261] : memref<36x8x1xf32, #tpu.memory_space<vmem>>, vector<1x8x1xf32>
    %581 = vector.shape_cast %580 : vector<1x8x1xf32> to vector<8x1xf32>
    %582 = vector.broadcast %581 : vector<8x1xf32> to vector<8x384xf32>
    %583 = arith.mulf %582, %569 : vector<8x384xf32>
    %584 = arith.addf %563, %583 : vector<8x384xf32>
    %c34_262 = arith.constant 34 : index
    %c0_263 = arith.constant 0 : index
    %c0_264 = arith.constant 0 : index
    %585 = vector.load %arg2[%c34_262, %c0_263, %c0_264] : memref<36x8x1xf32, #tpu.memory_space<vmem>>, vector<1x8x1xf32>
    %586 = vector.shape_cast %585 : vector<1x8x1xf32> to vector<8x1xf32>
    %587 = vector.broadcast %586 : vector<8x1xf32> to vector<8x384xf32>
    %588 = arith.mulf %587, %569 : vector<8x384xf32>
    %589 = arith.addf %568, %588 : vector<8x384xf32>
    %c0_265 = arith.constant 0 : index
    %c147 = arith.constant 147 : index
    %590 = vector.load %arg10[%c0_265, %c147] : memref<8x640xf32, #tpu.memory_space<vmem>>, vector<8x384xf32>
    %c8_266 = arith.constant 8 : index
    %c0_267 = arith.constant 0 : index
    %c0_268 = arith.constant 0 : index
    %591 = vector.load %arg2[%c8_266, %c0_267, %c0_268] : memref<36x8x1xf32, #tpu.memory_space<vmem>>, vector<1x8x1xf32>
    %592 = vector.shape_cast %591 : vector<1x8x1xf32> to vector<8x1xf32>
    %593 = vector.broadcast %592 : vector<8x1xf32> to vector<8x384xf32>
    %594 = arith.mulf %593, %590 : vector<8x384xf32>
    %595 = arith.addf %574, %594 : vector<8x384xf32>
    %c17_269 = arith.constant 17 : index
    %c0_270 = arith.constant 0 : index
    %c0_271 = arith.constant 0 : index
    %596 = vector.load %arg2[%c17_269, %c0_270, %c0_271] : memref<36x8x1xf32, #tpu.memory_space<vmem>>, vector<1x8x1xf32>
    %597 = vector.shape_cast %596 : vector<1x8x1xf32> to vector<8x1xf32>
    %598 = vector.broadcast %597 : vector<8x1xf32> to vector<8x384xf32>
    %599 = arith.mulf %598, %590 : vector<8x384xf32>
    %600 = arith.addf %579, %599 : vector<8x384xf32>
    %c26_272 = arith.constant 26 : index
    %c0_273 = arith.constant 0 : index
    %c0_274 = arith.constant 0 : index
    %601 = vector.load %arg2[%c26_272, %c0_273, %c0_274] : memref<36x8x1xf32, #tpu.memory_space<vmem>>, vector<1x8x1xf32>
    %602 = vector.shape_cast %601 : vector<1x8x1xf32> to vector<8x1xf32>
    %603 = vector.broadcast %602 : vector<8x1xf32> to vector<8x384xf32>
    %604 = arith.mulf %603, %590 : vector<8x384xf32>
    %605 = arith.addf %584, %604 : vector<8x384xf32>
    %c35_275 = arith.constant 35 : index
    %c0_276 = arith.constant 0 : index
    %c0_277 = arith.constant 0 : index
    %606 = vector.load %arg2[%c35_275, %c0_276, %c0_277] : memref<36x8x1xf32, #tpu.memory_space<vmem>>, vector<1x8x1xf32>
    %607 = vector.shape_cast %606 : vector<1x8x1xf32> to vector<8x1xf32>
    %608 = vector.broadcast %607 : vector<8x1xf32> to vector<8x384xf32>
    %609 = arith.mulf %608, %590 : vector<8x384xf32>
    %610 = arith.addf %589, %609 : vector<8x384xf32>
    %cst_278 = arith.constant 0.000000e+00 : f32
    %611 = vector.broadcast %cst_278 : f32 to vector<8x384xf32>
    %cst_279 = arith.constant 0.000000e+00 : f32
    %612 = vector.broadcast %cst_279 : f32 to vector<8x1xf32>
    %c4_i32_280 = arith.constant 4 : i32
    %613 = tpu.dynamic_rotate %595 by %c4_i32_280 dim 0 : vector<8x384xf32>, i32 -> vector<8x384xf32>
    %614 = arith.addf %595, %613 : vector<8x384xf32>
    %c2_i32_281 = arith.constant 2 : i32
    %615 = tpu.dynamic_rotate %614 by %c2_i32_281 dim 0 : vector<8x384xf32>, i32 -> vector<8x384xf32>
    %616 = arith.addf %614, %615 : vector<8x384xf32>
    %617 = vector.broadcast %26 : vector<8x1xf32> to vector<8x384xf32>
    %618 = arith.mulf %616, %617 : vector<8x384xf32>
    %619 = arith.addf %611, %618 : vector<8x384xf32>
    %c0_282 = arith.constant 0 : index
    %620 = memref.load %arg6[%c0_282] : memref<4xf32, #tpu.memory_space<smem>>
    %621 = vector.broadcast %620 : f32 to vector<8x1xf32>
    %622 = arith.mulf %621, %26 : vector<8x1xf32>
    %623 = arith.addf %612, %622 : vector<8x1xf32>
    %c4_i32_283 = arith.constant 4 : i32
    %624 = tpu.dynamic_rotate %600 by %c4_i32_283 dim 0 : vector<8x384xf32>, i32 -> vector<8x384xf32>
    %625 = arith.addf %600, %624 : vector<8x384xf32>
    %c2_i32_284 = arith.constant 2 : i32
    %626 = tpu.dynamic_rotate %625 by %c2_i32_284 dim 0 : vector<8x384xf32>, i32 -> vector<8x384xf32>
    %627 = arith.addf %625, %626 : vector<8x384xf32>
    %628 = vector.broadcast %34 : vector<8x1xf32> to vector<8x384xf32>
    %629 = arith.mulf %627, %628 : vector<8x384xf32>
    %630 = arith.addf %619, %629 : vector<8x384xf32>
    %c1_285 = arith.constant 1 : index
    %631 = memref.load %arg6[%c1_285] : memref<4xf32, #tpu.memory_space<smem>>
    %632 = vector.broadcast %631 : f32 to vector<8x1xf32>
    %633 = arith.mulf %632, %34 : vector<8x1xf32>
    %634 = arith.addf %623, %633 : vector<8x1xf32>
    %c4_i32_286 = arith.constant 4 : i32
    %635 = tpu.dynamic_rotate %605 by %c4_i32_286 dim 0 : vector<8x384xf32>, i32 -> vector<8x384xf32>
    %636 = arith.addf %605, %635 : vector<8x384xf32>
    %c2_i32_287 = arith.constant 2 : i32
    %637 = tpu.dynamic_rotate %636 by %c2_i32_287 dim 0 : vector<8x384xf32>, i32 -> vector<8x384xf32>
    %638 = arith.addf %636, %637 : vector<8x384xf32>
    %639 = vector.broadcast %42 : vector<8x1xf32> to vector<8x384xf32>
    %640 = arith.mulf %638, %639 : vector<8x384xf32>
    %641 = arith.addf %630, %640 : vector<8x384xf32>
    %c2_288 = arith.constant 2 : index
    %642 = memref.load %arg6[%c2_288] : memref<4xf32, #tpu.memory_space<smem>>
    %643 = vector.broadcast %642 : f32 to vector<8x1xf32>
    %644 = arith.mulf %643, %42 : vector<8x1xf32>
    %645 = arith.addf %634, %644 : vector<8x1xf32>
    %c4_i32_289 = arith.constant 4 : i32
    %646 = tpu.dynamic_rotate %610 by %c4_i32_289 dim 0 : vector<8x384xf32>, i32 -> vector<8x384xf32>
    %647 = arith.addf %610, %646 : vector<8x384xf32>
    %c2_i32_290 = arith.constant 2 : i32
    %648 = tpu.dynamic_rotate %647 by %c2_i32_290 dim 0 : vector<8x384xf32>, i32 -> vector<8x384xf32>
    %649 = arith.addf %647, %648 : vector<8x384xf32>
    %650 = vector.broadcast %50 : vector<8x1xf32> to vector<8x384xf32>
    %651 = arith.mulf %649, %650 : vector<8x384xf32>
    %652 = arith.addf %641, %651 : vector<8x384xf32>
    %c3_291 = arith.constant 3 : index
    %653 = memref.load %arg6[%c3_291] : memref<4xf32, #tpu.memory_space<smem>>
    %654 = vector.broadcast %653 : f32 to vector<8x1xf32>
    %655 = arith.mulf %654, %50 : vector<8x1xf32>
    %656 = arith.addf %645, %655 : vector<8x1xf32>
    %657 = vector.broadcast %656 : vector<8x1xf32> to vector<8x384xf32>
    %658 = arith.addf %652, %657 : vector<8x384xf32>
    %cst_292 = arith.constant 0.000000e+00 : f32
    %659 = vector.broadcast %cst_292 : f32 to vector<8x384xf32>
    %660 = arith.maximumf %658, %659 : vector<8x384xf32>
    %661 = arith.mulf %660, %17 : vector<8x384xf32>
    %cst_293 = arith.constant dense<0.000000e+00> : vector<8xf32>
    %662 = vector.multi_reduction <add>, %661, %cst_293 [1] : vector<8x384xf32> to vector<8xf32>
    %663 = vector.shape_cast %662 : vector<8xf32> to vector<8x1xf32>
    %664 = arith.mulf %661, %661 : vector<8x384xf32>
    %cst_294 = arith.constant dense<0.000000e+00> : vector<8xf32>
    %665 = vector.multi_reduction <add>, %664, %cst_294 [1] : vector<8x384xf32> to vector<8xf32>
    %666 = vector.shape_cast %665 : vector<8xf32> to vector<8x1xf32>
    %cst_295 = arith.constant 0.000000e+00 : f32
    %667 = vector.broadcast %cst_295 : f32 to vector<8x1xf32>
    %cst_296 = arith.constant 0.000000e+00 : f32
    %668 = vector.broadcast %cst_296 : f32 to vector<8x1xf32>
    %669 = arith.mulf %663, %26 : vector<8x1xf32>
    %670 = vector.shape_cast %669 : vector<8x1xf32> to vector<1x8x1xf32>
    %cst_297 = arith.constant dense<0.000000e+00> : vector<1xf32>
    %671 = vector.multi_reduction <add>, %670, %cst_297 [1, 2] : vector<1x8x1xf32> to vector<1xf32>
    %672 = vector.shape_cast %671 : vector<1xf32> to vector<1x1x1xf32>
    %673 = vector.extract %672[0, 0, 0] : f32 from vector<1x1x1xf32>
    %cst_298 = arith.constant 0.001953125 : f32
    %674 = arith.mulf %673, %cst_298 : f32
    %675 = arith.mulf %666, %26 : vector<8x1xf32>
    %676 = vector.shape_cast %675 : vector<8x1xf32> to vector<1x8x1xf32>
    %cst_299 = arith.constant dense<0.000000e+00> : vector<1xf32>
    %677 = vector.multi_reduction <add>, %676, %cst_299 [1, 2] : vector<1x8x1xf32> to vector<1xf32>
    %678 = vector.shape_cast %677 : vector<1xf32> to vector<1x1x1xf32>
    %679 = vector.extract %678[0, 0, 0] : f32 from vector<1x1x1xf32>
    %cst_300 = arith.constant 0.001953125 : f32
    %680 = arith.mulf %679, %cst_300 : f32
    %681 = arith.mulf %674, %674 : f32
    %682 = arith.subf %680, %681 : f32
    %cst_301 = arith.constant 1.000000e-03 : f32
    %683 = arith.addf %682, %cst_301 : f32
    %684 = math.rsqrt %683 : f32
    %c0_302 = arith.constant 0 : index
    %685 = memref.load %arg7[%c0_302] : memref<4xf32, #tpu.memory_space<smem>>
    %686 = arith.mulf %684, %685 : f32
    %c0_303 = arith.constant 0 : index
    %687 = memref.load %arg8[%c0_303] : memref<4xf32, #tpu.memory_space<smem>>
    %688 = arith.mulf %674, %686 : f32
    %689 = arith.subf %687, %688 : f32
    %690 = vector.broadcast %686 : f32 to vector<8x1xf32>
    %691 = arith.mulf %690, %26 : vector<8x1xf32>
    %692 = arith.addf %667, %691 : vector<8x1xf32>
    %693 = vector.broadcast %689 : f32 to vector<8x1xf32>
    %694 = arith.mulf %693, %26 : vector<8x1xf32>
    %695 = arith.addf %668, %694 : vector<8x1xf32>
    %696 = arith.mulf %663, %34 : vector<8x1xf32>
    %697 = vector.shape_cast %696 : vector<8x1xf32> to vector<1x8x1xf32>
    %cst_304 = arith.constant dense<0.000000e+00> : vector<1xf32>
    %698 = vector.multi_reduction <add>, %697, %cst_304 [1, 2] : vector<1x8x1xf32> to vector<1xf32>
    %699 = vector.shape_cast %698 : vector<1xf32> to vector<1x1x1xf32>
    %700 = vector.extract %699[0, 0, 0] : f32 from vector<1x1x1xf32>
    %cst_305 = arith.constant 0.001953125 : f32
    %701 = arith.mulf %700, %cst_305 : f32
    %702 = arith.mulf %666, %34 : vector<8x1xf32>
    %703 = vector.shape_cast %702 : vector<8x1xf32> to vector<1x8x1xf32>
    %cst_306 = arith.constant dense<0.000000e+00> : vector<1xf32>
    %704 = vector.multi_reduction <add>, %703, %cst_306 [1, 2] : vector<1x8x1xf32> to vector<1xf32>
    %705 = vector.shape_cast %704 : vector<1xf32> to vector<1x1x1xf32>
    %706 = vector.extract %705[0, 0, 0] : f32 from vector<1x1x1xf32>
    %cst_307 = arith.constant 0.001953125 : f32
    %707 = arith.mulf %706, %cst_307 : f32
    %708 = arith.mulf %701, %701 : f32
    %709 = arith.subf %707, %708 : f32
    %cst_308 = arith.constant 1.000000e-03 : f32
    %710 = arith.addf %709, %cst_308 : f32
    %711 = math.rsqrt %710 : f32
    %c1_309 = arith.constant 1 : index
    %712 = memref.load %arg7[%c1_309] : memref<4xf32, #tpu.memory_space<smem>>
    %713 = arith.mulf %711, %712 : f32
    %c1_310 = arith.constant 1 : index
    %714 = memref.load %arg8[%c1_310] : memref<4xf32, #tpu.memory_space<smem>>
    %715 = arith.mulf %701, %713 : f32
    %716 = arith.subf %714, %715 : f32
    %717 = vector.broadcast %713 : f32 to vector<8x1xf32>
    %718 = arith.mulf %717, %34 : vector<8x1xf32>
    %719 = arith.addf %692, %718 : vector<8x1xf32>
    %720 = vector.broadcast %716 : f32 to vector<8x1xf32>
    %721 = arith.mulf %720, %34 : vector<8x1xf32>
    %722 = arith.addf %695, %721 : vector<8x1xf32>
    %723 = arith.mulf %663, %42 : vector<8x1xf32>
    %724 = vector.shape_cast %723 : vector<8x1xf32> to vector<1x8x1xf32>
    %cst_311 = arith.constant dense<0.000000e+00> : vector<1xf32>
    %725 = vector.multi_reduction <add>, %724, %cst_311 [1, 2] : vector<1x8x1xf32> to vector<1xf32>
    %726 = vector.shape_cast %725 : vector<1xf32> to vector<1x1x1xf32>
    %727 = vector.extract %726[0, 0, 0] : f32 from vector<1x1x1xf32>
    %cst_312 = arith.constant 0.001953125 : f32
    %728 = arith.mulf %727, %cst_312 : f32
    %729 = arith.mulf %666, %42 : vector<8x1xf32>
    %730 = vector.shape_cast %729 : vector<8x1xf32> to vector<1x8x1xf32>
    %cst_313 = arith.constant dense<0.000000e+00> : vector<1xf32>
    %731 = vector.multi_reduction <add>, %730, %cst_313 [1, 2] : vector<1x8x1xf32> to vector<1xf32>
    %732 = vector.shape_cast %731 : vector<1xf32> to vector<1x1x1xf32>
    %733 = vector.extract %732[0, 0, 0] : f32 from vector<1x1x1xf32>
    %cst_314 = arith.constant 0.001953125 : f32
    %734 = arith.mulf %733, %cst_314 : f32
    %735 = arith.mulf %728, %728 : f32
    %736 = arith.subf %734, %735 : f32
    %cst_315 = arith.constant 1.000000e-03 : f32
    %737 = arith.addf %736, %cst_315 : f32
    %738 = math.rsqrt %737 : f32
    %c2_316 = arith.constant 2 : index
    %739 = memref.load %arg7[%c2_316] : memref<4xf32, #tpu.memory_space<smem>>
    %740 = arith.mulf %738, %739 : f32
    %c2_317 = arith.constant 2 : index
    %741 = memref.load %arg8[%c2_317] : memref<4xf32, #tpu.memory_space<smem>>
    %742 = arith.mulf %728, %740 : f32
    %743 = arith.subf %741, %742 : f32
    %744 = vector.broadcast %740 : f32 to vector<8x1xf32>
    %745 = arith.mulf %744, %42 : vector<8x1xf32>
    %746 = arith.addf %719, %745 : vector<8x1xf32>
    %747 = vector.broadcast %743 : f32 to vector<8x1xf32>
    %748 = arith.mulf %747, %42 : vector<8x1xf32>
    %749 = arith.addf %722, %748 : vector<8x1xf32>
    %750 = arith.mulf %663, %50 : vector<8x1xf32>
    %751 = vector.shape_cast %750 : vector<8x1xf32> to vector<1x8x1xf32>
    %cst_318 = arith.constant dense<0.000000e+00> : vector<1xf32>
    %752 = vector.multi_reduction <add>, %751, %cst_318 [1, 2] : vector<1x8x1xf32> to vector<1xf32>
    %753 = vector.shape_cast %752 : vector<1xf32> to vector<1x1x1xf32>
    %754 = vector.extract %753[0, 0, 0] : f32 from vector<1x1x1xf32>
    %cst_319 = arith.constant 0.001953125 : f32
    %755 = arith.mulf %754, %cst_319 : f32
    %756 = arith.mulf %666, %50 : vector<8x1xf32>
    %757 = vector.shape_cast %756 : vector<8x1xf32> to vector<1x8x1xf32>
    %cst_320 = arith.constant dense<0.000000e+00> : vector<1xf32>
    %758 = vector.multi_reduction <add>, %757, %cst_320 [1, 2] : vector<1x8x1xf32> to vector<1xf32>
    %759 = vector.shape_cast %758 : vector<1xf32> to vector<1x1x1xf32>
    %760 = vector.extract %759[0, 0, 0] : f32 from vector<1x1x1xf32>
    %cst_321 = arith.constant 0.001953125 : f32
    %761 = arith.mulf %760, %cst_321 : f32
    %762 = arith.mulf %755, %755 : f32
    %763 = arith.subf %761, %762 : f32
    %cst_322 = arith.constant 1.000000e-03 : f32
    %764 = arith.addf %763, %cst_322 : f32
    %765 = math.rsqrt %764 : f32
    %c3_323 = arith.constant 3 : index
    %766 = memref.load %arg7[%c3_323] : memref<4xf32, #tpu.memory_space<smem>>
    %767 = arith.mulf %765, %766 : f32
    %c3_324 = arith.constant 3 : index
    %768 = memref.load %arg8[%c3_324] : memref<4xf32, #tpu.memory_space<smem>>
    %769 = arith.mulf %755, %767 : f32
    %770 = arith.subf %768, %769 : f32
    %771 = vector.broadcast %767 : f32 to vector<8x1xf32>
    %772 = arith.mulf %771, %50 : vector<8x1xf32>
    %773 = arith.addf %746, %772 : vector<8x1xf32>
    %774 = vector.broadcast %770 : f32 to vector<8x1xf32>
    %775 = arith.mulf %774, %50 : vector<8x1xf32>
    %776 = arith.addf %749, %775 : vector<8x1xf32>
    %777 = vector.broadcast %773 : vector<8x1xf32> to vector<8x384xf32>
    %778 = arith.mulf %661, %777 : vector<8x384xf32>
    %779 = vector.broadcast %776 : vector<8x1xf32> to vector<8x384xf32>
    %780 = arith.addf %778, %779 : vector<8x384xf32>
    %c0_325 = arith.constant 0 : index
    %c19_326 = arith.constant 19 : index
    %781 = vector.load %arg0[%c0_325, %c19_326] : memref<8x512xf32, #tpu.memory_space<vmem>>, vector<8x384xf32>
    %782 = arith.addf %780, %781 : vector<8x384xf32>
    %cst_327 = arith.constant 0.000000e+00 : f32
    %783 = vector.broadcast %cst_327 : f32 to vector<8x384xf32>
    %784 = arith.maximumf %782, %783 : vector<8x384xf32>
    %c0_328 = arith.constant 0 : index
    %c0_329 = arith.constant 0 : index
    %785 = vector.load %arg9[%c0_328, %c0_329] : memref<8x384xf32, #tpu.memory_space<vmem>>, vector<8x384xf32>
    tpu.vector_store %arg9[%c0_328, %c0_329], %784 {strides = array<i32>} : memref<8x384xf32, #tpu.memory_space<vmem>>, vector<8x384xf32>,
    return
  }
}

</mosaic_0001>

<bundles_post_ra>
// kernel: tpu_custom_call.1
= control target key start
LH: loop header
LB: loop body
LE: loop exit
PB: predicated region body
PF: predicated region fallthrough
CT: control target
= control target key end

     0   :  { %14 = vsyncpa [#allocation5], 0  ;;  %s6434_s0 = inlined_call_operand.vmem [shape: f32[8,512], index: 0, kind: input, shape index: {}]   ;;  %s6435_s1 = inlined_call_operand.vmem [shape: f32[36,8,1], index: 1, kind: input, shape index: {}]   ;;  %s6436_s2 = inlined_call_operand.vmem [shape: f32[36,8,1], index: 2, kind: input, shape index: {}]   ;;  %s6437_s3 = inlined_call_operand.vmem [shape: f32[4], index: 3, kind: input, shape index: {}]   ;;  %s6438_s4 = inlined_call_operand.vmem [shape: f32[4], index: 4, kind: input, shape index: {}]   ;;  %s6439_s5 = inlined_call_operand.vmem [shape: f32[4], index: 5, kind: input, shape index: {}]   ;;  %s6440_s6 = inlined_call_operand.vmem [shape: f32[4], index: 6, kind: input, shape index: {}]   ;;  %s6441_s7 = inlined_call_operand.vmem [shape: f32[4], index: 7, kind: input, shape index: {}]   ;;  %s6442_s8 = inlined_call_operand.vmem [shape: f32[4], index: 8, kind: input, shape index: {}]   ;;  %s6443_s9 = inlined_call_operand.hbm [shape: f32[8,384], index: 9, kind: output, shape index: {}]  }
   0x1   :  { %15 = vsyncpa [#allocation7], 0 }
   0x2   :  { %16 = vsyncpa [#allocation10], 0 }
   0x3   :  { %17 = vsyncpa [#allocation13], 0  ;;  %s41_s11 = sshll.u32 %s6438_s4, 4  ;;  %s42_s11 = int_to_ptr.vmem [resolvable:$true] %s41_s11 }
   0x4   :  { %18 = vsyncpa [#allocation4], 0  ;;  %s61_s14 = sshll.u32 %s6440_s6, 4  ;;  %s3540_s15 = scalar_lea.vmem %s42_s11, 16  ;;  %s62_s14 = int_to_ptr.vmem [resolvable:$true] %s61_s14 }
   0x5   :  { %p3541_p0 = scmp.ne.s32.totalorder %s42_s11, %s3540_s15  ;;  %p3545_p1 = scmp.lt.s32.totalorder %s42_s11, %s42_s11 }
   0x6   :  { %p3546_p2 = scmp.lt.s32.totalorder %s3540_s15, %s3540_s15 }
   0x8   :  { %p3547_p3 = por %p3546_p2, %p3545_p1 }
   0xa   :  { %p3548_p4 = pnand %p3547_p3, %p3541_p0 }
   0xc   :  { %3551 = shalt.err (!%p3548_p4)
}
   0xd   :  { %s3642_s16 = smov [#allocation6]   ;;  %s3552_s17 = scalar_lea.vmem %s62_s14, 16 }
   0xe   :  { %44 = dma.vmem_to_smem %s42_s11, 16, %s3642_s16, [#allocation7]  }
   0xf   :  { %p3553_p5 = scmp.ne.s32.totalorder %s62_s14, %s3552_s17  ;;  %p3557_p6 = scmp.lt.s32.totalorder %s62_s14, %s62_s14 }
  0x10   :  { %p3558_p7 = scmp.lt.s32.totalorder %s3552_s17, %s3552_s17 }
  0x12   :  { %p3559_p8 = por %p3558_p7, %p3557_p6 }
  0x14   :  { %p3560_p9 = pnand %p3559_p8, %p3553_p5 }
  0x16   :  { %3563 = shalt.err (!%p3560_p9)
}
  0x17   :  { %s3643_s4 = smov [#allocation9]   ;;  %s31_s19 = sshll.u32 %s6437_s3, 4  ;;  %s32_s19 = int_to_ptr.vmem [resolvable:$true] %s31_s19 }
  0x18   :  { %64 = dma.vmem_to_smem %s62_s14, 16, %s3643_s4, [#allocation10]  }
  0x19   :  { %s51_s22 = sshll.u32 %s6439_s5, 4  ;;  %s3564_s23 = scalar_lea.vmem %s32_s19, 16  ;;  %s52_s22 = int_to_ptr.vmem [resolvable:$true] %s51_s22 }
  0x1a   :  { %p3565_p10 = scmp.ne.s32.totalorder %s32_s19, %s3564_s23  ;;  %p3569_p11 = scmp.lt.s32.totalorder %s32_s19, %s32_s19 }
  0x1b   :  { %p3570_p12 = scmp.lt.s32.totalorder %s3564_s23, %s3564_s23 }
  0x1d   :  { %p3571_p13 = por %p3570_p12, %p3569_p11 }
  0x1f   :  { %p3572_p0 = pnand %p3571_p13, %p3565_p10 }
  0x21   :  { %3575 = shalt.err (!%p3572_p0)
}
  0x22   :  { %s3644_s24 = smov [#allocation3]   ;;  %s3576_s25 = scalar_lea.vmem %s52_s22, 16 }
  0x23   :  { %34 = dma.vmem_to_smem %s32_s19, 16, %s3644_s24, [#allocation5]  }
  0x24   :  { %p3577_p1 = scmp.ne.s32.totalorder %s52_s22, %s3576_s25  ;;  %p3581_p2 = scmp.lt.s32.totalorder %s52_s22, %s52_s22 }
  0x25   :  { %p3582_p3 = scmp.lt.s32.totalorder %s3576_s25, %s3576_s25 }
  0x27   :  { %p3583_p4 = por %p3582_p3, %p3581_p2 }
  0x29   :  { %p3584_p5 = pnand %p3583_p4, %p3577_p1 }
  0x2b   :  { %3587 = shalt.err (!%p3584_p5)
}
  0x2c   :  { %s3645_s3 = smov [#allocation8]   ;;  %s71_s27 = sshll.u32 %s6441_s7, 4  ;;  %s72_s27 = int_to_ptr.vmem [resolvable:$true] %s71_s27 }
  0x2d   :  { %54 = dma.vmem_to_smem %s52_s22, 16, %s3645_s3, [#allocation7]  }
  0x2e   :  { %s81_s30 = sshll.u32 %s6442_s8, 4  ;;  %s3588_s10 = scalar_lea.vmem %s72_s27, 16  ;;  %s82_s30 = int_to_ptr.vmem [resolvable:$true] %s81_s30 }
  0x2f   :  { %p3589_p6 = scmp.ne.s32.totalorder %s72_s27, %s3588_s10  ;;  %p3593_p7 = scmp.lt.s32.totalorder %s72_s27, %s72_s27 }
  0x30   :  { %p3594_p8 = scmp.lt.s32.totalorder %s3588_s10, %s3588_s10 }
  0x32   :  { %p3595_p9 = por %p3594_p8, %p3593_p7 }
  0x34   :  { %p3596_p10 = pnand %p3595_p9, %p3589_p6 }
  0x36   :  { %3599 = shalt.err (!%p3596_p10)
}
  0x37   :  { %s3646_s11 = smov [#allocation11]   ;;  %s3600_s12 = scalar_lea.vmem %s82_s30, 16 }
  0x38   :  { %74 = dma.vmem_to_smem %s72_s27, 16, %s3646_s11, [#allocation10]  }
  0x39   :  { %p3601_p11 = scmp.ne.s32.totalorder %s82_s30, %s3600_s12  ;;  %p3605_p12 = scmp.lt.s32.totalorder %s82_s30, %s82_s30 }
  0x3a   :  { %p3606_p13 = scmp.lt.s32.totalorder %s3600_s12, %s3600_s12 }
  0x3c   :  { %p3607_p0 = por %p3606_p13, %p3605_p12 }
  0x3e   :  { %p3608_p1 = pnand %p3607_p0, %p3601_p11 }
  0x40   :  { %3611 = shalt.err (!%p3608_p1)
}
  0x41   :  { %s3647_s7 = smov [#allocation12]  }
  0x42   :  { %84 = dma.vmem_to_smem %s82_s30, 16, %s3647_s7, [#allocation13]  }
  0x43   :  { %3632 = dma.done.wait [#allocation5], 16  }
  0x44   :  { %3633 = vsyncadd [#allocation5], 4294967280 }
  0x45   :  { %3634 = dma.done.wait [#allocation7], 32  }
  0x46   :  { %3635 = vsyncadd [#allocation7], 4294967264 }
  0x47   :  { %3636 = dma.done.wait [#allocation10], 32  }
  0x48   :  { %3637 = vsyncadd [#allocation10], 4294967264 }
  0x49   :  { %3638 = dma.done.wait [#allocation13], 16  }
  0x4a   :  { %3639 = vsyncadd [#allocation13], 4294967280 }
  0x4b   :  { %103 = sfence }
  0x4c   :  { %v3362_v0 = vld [vmem:[%s6435_s1 + $0x98] sm:$0xff]  ;;  %v3360_v1 = vld [vmem:[%s6435_s1 + $0x8] sm:$0xff]  ;;  %v3648_v2 = vmov 0   ;;  %v3364_v3 = vld [vmem:[%s6435_s1 + $0x10] sm:$0xff]  ;;  %s3650_s7 = smov 126   ;;  %s3651_s8 = smov 110  }
  0x4d   :  { %3518 = vset.pattern.permute.xlu1 %v3648_v2  ;;  %3517 = vset.pattern.permute.xlu0 %v3648_v2  ;;  %v3361_v4 = vld [vmem:[%s6435_s1 + $0x50] sm:$0xff]  ;;  %v3363_v5 = vld [vmem:[%s6435_s1 + $0xe0] sm:$0xff]  ;;  %v3365_v6 = vld [vmem:[%s6435_s1 + $0x58] sm:$0xff]  ;;  %s3652_s13 = smov 109   ;;  %s3653_s14 = smov 108   ;;  %vm242_vm0 = vcmask 1039360  }
  0x4e   :  { %288 = vperm.xlu1 %3518, %v3362_v0   ;;  %223 = vperm.xlu0 %3517, %v3360_v1   ;;  %v3368_v7 = vld [vmem:[%s6435_s1 + $0x18] sm:$0xff]  ;;  %v3366_v8 = vld [vmem:[%s6435_s1 + $0xa0] sm:$0xff]  ;;  %v3367_v9 = vld [vmem:[%s6435_s1 + $0xe8] sm:$0xff]  ;;  %s3654_s15 = smov 92   ;;  %s3655_s16 = smov 91   ;;  %vm371_vm1 = vcmask 1031168  }
  0x4f   :  { %v3369_v10 = vld [vmem:[%s6435_s1 + $0x60] sm:$0xff]  ;;  %v3370_v12 = vld [vmem:[%s6435_s1 + $0xa8] sm:$0xff]  ;;  %v3371_v13 = vld [vmem:[%s6435_s1 + $0xf0] sm:$0xff]  ;;  %s3656_s17 = smov 90   ;;  %vm500_vm2 = vcmask 900096   ;;  %vm629_vm3 = vcmask 891904  }
  0x50   :  { %v3372_v11 = vld [vmem:[%s6435_s1 + $0x20] sm:$0xff]  ;;  %v3373_v14 = vld [vmem:[%s6435_s1 + $0x68] sm:$0xff]  ;;  %v3374_v16 = vld [vmem:[%s6435_s1 + $0xb0] sm:$0xff]  ;;  %s4565_s4 = sld [smem:[#allocation3]]  ;;  %vm758_vm7 = vcmask 883712   ;;  %vm887_vm12 = vcmask 752640  }
  0x51   :  { %v3376_v15 = vld [vmem:[%s6435_s1 + $0x28] sm:$0xff]  ;;  %v3375_v17 = vld [vmem:[%s6435_s1 + $0xf8] sm:$0xff]  ;;  %v3377_v18 = vld [vmem:[%s6435_s1 + $0x70] sm:$0xff]  ;;  %s4576_s6 = sld [smem:[#allocation3 + $0x1]]  ;;  %vm1016_vm14 = vcmask 744448   ;;  %vm1145_vm15 = vcmask 736256  }
  0x52   :  { %352 = vperm.xlu1 %3518, %v3364_v3   ;;  %256 = vperm.xlu0 %3517, %v3361_v4   ;;  %v3380_v19 = vld [vmem:[%s6435_s1 + $0x30] sm:$0xff]  ;;  %v3378_v20 = vld [vmem:[%s6435_s1 + $0xb8] sm:$0xff]  ;;  %v3379_v21 = vld [vmem:[%s6435_s1 + $0x100] sm:$0xff]  ;;  %s4603_s18 = sld [smem:[#allocation3 + $0x2]] }
  0x53   :  { %v3381_v22 = vld [vmem:[%s6435_s1 + $0x78] sm:$0xff]  ;;  %v3382_v24 = vld [vmem:[%s6435_s1 + $0xc0] sm:$0xff]  ;;  %v3383_v25 = vld [vmem:[%s6435_s1 + $0x108] sm:$0xff]  ;;  %s4640_s19 = sld [smem:[#allocation3 + $0x3]] }
  0x54   :  { %v3384_v23 = vld [vmem:[%s6435_s1 + $0x38] sm:$0xff]  ;;  %v3385_v26 = vld [vmem:[%s6435_s1 + $0x80] sm:$0xff]  ;;  %v3386_v28 = vld [vmem:[%s6435_s1 + $0xc8] sm:$0xff]  ;;  %s1390_s3 = sld [smem:[#allocation6]] }
  0x55   :  { %v3388_v27 = vld [vmem:[%s6435_s1 + $0x40] sm:$0xff]  ;;  %v3387_v29 = vld [vmem:[%s6435_s1 + $0x110] sm:$0xff]  ;;  %v3389_v30 = vld [vmem:[%s6435_s1 + $0x88] sm:$0xff]  ;;  %s1392_s26 = sld [smem:[#allocation8]] }
  0x56   :  { %320 = vperm.xlu1 %3518, %v3363_v5   ;;  %385 = vperm.xlu0 %3517, %v3365_v6   ;;  %v3391_v31 = vld [vmem:[%s6435_s1 + $0x118] sm:$0xff]  ;;  %v3390_v32 = vld [vmem:[%s6435_s1 + $0xd0] sm:$0xff]  ;;  %v3357_v33 = vld [vmem:[%s6435_s1 + $0x48] sm:$0xff]  ;;  %s3395_s27 = sld [smem:[#allocation6 + $0x1]] }
  0x57   :  { %v164_v34 = vld [vmem:[%s6435_s1] sm:$0xff]  ;;  %v3359_v35 = vld [vmem:[%s6435_s1 + $0xd8] sm:$0xff]  ;;  %v3358_v36 = vld [vmem:[%s6435_s1 + $0x90] sm:$0xff]  ;;  %s3649_s1 = smov 127   ;;  %s3396_s29 = sld [smem:[#allocation8 + $0x1]] }
  0x58   :  { %v3839_v37 = vld [vmem:[%s6434_s0 + $0x8] sm:$0xff]  ;;  %v3844_v38 = vld [vmem:[%s6434_s0] sm:$0xff]  ;;  %v3851_v42 = vld [vmem:[%s6434_s0 + $0x10] sm:$0xff] }
  0x59   :  { %v3864_v48 = vld [vmem:[%s6434_s0 + $0x18] sm:$0xff] }
  0x5a   :  { %481 = vperm.xlu1 %3518, %v3368_v7   ;;  %417 = vperm.xlu0 %3517, %v3366_v8  }
  0x5e   :  { %449 = vperm.xlu1 %3518, %v3367_v9   ;;  %514 = vperm.xlu0 %3517, %v3369_v10  }
  0x62   :  { %610 = vperm.xlu1 %3518, %v3372_v11   ;;  %546 = vperm.xlu0 %3517, %v3370_v12  }
  0x66   :  { %578 = vperm.xlu1 %3518, %v3371_v13   ;;  %643 = vperm.xlu0 %3517, %v3373_v14  }
  0x6a   :  { %739 = vperm.xlu1 %3518, %v3376_v15   ;;  %675 = vperm.xlu0 %3517, %v3374_v16  }
  0x6e   :  { %707 = vperm.xlu1 %3518, %v3375_v17   ;;  %772 = vperm.xlu0 %3517, %v3377_v18  }
  0x72   :  { %868 = vperm.xlu1 %3518, %v3380_v19   ;;  %804 = vperm.xlu0 %3517, %v3378_v20  }
  0x76   :  { %836 = vperm.xlu1 %3518, %v3379_v21   ;;  %901 = vperm.xlu0 %3517, %v3381_v22  }
  0x7a   :  { %997 = vperm.xlu1 %3518, %v3384_v23   ;;  %933 = vperm.xlu0 %3517, %v3382_v24  }
  0x7e   :  { %965 = vperm.xlu1 %3518, %v3383_v25   ;;  %1030 = vperm.xlu0 %3517, %v3385_v26  }
  0x82   :  { %1126 = vperm.xlu1 %3518, %v3388_v27   ;;  %1062 = vperm.xlu0 %3517, %v3386_v28  }
  0x86   :  { %1094 = vperm.xlu1 %3518, %v3387_v29   ;;  %1159 = vperm.xlu0 %3517, %v3389_v30  }
  0x8a   :  { %1223 = vperm.xlu1 %3518, %v3391_v31   ;;  %1191 = vperm.xlu0 %3517, %v3390_v32  }
  0x8e   :  { %180 = vperm.xlu1 %3518, %v3357_v33   ;;  %167 = vperm.xlu0 %3517, %v164_v34  }
  0x92   :  { %206 = vperm.xlu1 %3518, %v3359_v35   ;;  %193 = vperm.xlu0 %3517, %v3358_v36  }
  0xc9   :  { %v224_v39 = vpop.permute.xlu0 %223  ;;  %v289_v49 = vpop.permute.xlu1 %288 }
  0xca   :  { %v227_v40 = vmul.f32 %v224_v39, %v3839_v37  ;;  %v226_v41 = vmul.f32 %v224_v39, %v3844_v38  ;;  %v228_v45 = vmul.f32 %v224_v39, %v3851_v42  ;;  %v229_v51 = vmul.f32 %v224_v39, %v3864_v48 }
  0xcb   :  { %v292_v52 = vmul.f32 %v289_v49, %v3839_v37  ;;  %v291_v53 = vmul.f32 %v289_v49, %v3844_v38  ;;  %v293_v56 = vmul.f32 %v289_v49, %v3851_v42  ;;  %v294_v1 = vmul.f32 %v289_v49, %v3864_v48 }
  0xcc   :  { %236 = vrot.lane.b32.xlu1 %v227_v40, %s3649_s1  ;;  %234 = vrot.lane.b32.xlu0 %v226_v41, %s3649_s1 }
  0xcd   :  { %v257_v43 = vpop.permute.xlu0 %256  ;;  %v353_v54 = vpop.permute.xlu1 %352 }
  0xce   :  { %v259_v44 = vmul.f32 %v257_v43, %v3844_v38  ;;  %v261_v46 = vmul.f32 %v257_v43, %v3851_v42  ;;  %v260_v47 = vmul.f32 %v257_v43, %v3839_v37  ;;  %v262_v50 = vmul.f32 %v257_v43, %v3864_v48 }
  0xcf   :  { %v355_v55 = vmul.f32 %v353_v54, %v3844_v38  ;;  %v357_v59 = vmul.f32 %v353_v54, %v3851_v42  ;;  %v356_v60 = vmul.f32 %v353_v54, %v3839_v37  ;;  %v358_v9 = vmul.f32 %v353_v54, %v3864_v48 }
  0xd0   :  { %267 = vrot.lane.b32.xlu1 %v259_v44, %s3649_s1  ;;  %238 = vrot.lane.b32.xlu0 %v228_v45, %s3649_s1 }
  0xd1   :  { %v321_v57 = vpop.permute.xlu1 %320  ;;  %v386_v58 = vpop.permute.xlu0 %385 }
  0xd2   :  { %v389_v63 = vmul.f32 %v386_v58, %v3839_v37  ;;  %v388_v0 = vmul.f32 %v386_v58, %v3844_v38  ;;  %v390_v2 = vmul.f32 %v386_v58, %v3851_v42  ;;  %v324_v5 = vmul.f32 %v321_v57, %v3839_v37 }
  0xd3   :  { %v323_v6 = vmul.f32 %v321_v57, %v3844_v38  ;;  %v325_v10 = vmul.f32 %v321_v57, %v3851_v42  ;;  %v391_v12 = vmul.f32 %v386_v58, %v3864_v48  ;;  %v326_v30 = vmul.f32 %v321_v57, %v3864_v48 }
  0xd4   :  { %271 = vrot.lane.b32.xlu1 %v261_v46, %s3649_s1  ;;  %269 = vrot.lane.b32.xlu0 %v260_v47, %s3649_s1 }
  0xd5   :  { %v482_v61 = vpop.permute.xlu1 %481  ;;  %v418_v62 = vpop.permute.xlu0 %417 }
  0xd6   :  { %v420_v11 = vmul.f32 %v418_v62, %v3844_v38  ;;  %v422_v15 = vmul.f32 %v418_v62, %v3851_v42  ;;  %v421_v16 = vmul.f32 %v418_v62, %v3839_v37  ;;  %v485_v19 = vmul.f32 %v482_v61, %v3839_v37 }
  0xd7   :  { %v484_v20 = vmul.f32 %v482_v61, %v3844_v38  ;;  %v486_v22 = vmul.f32 %v482_v61, %v3851_v42  ;;  %v423_v29 = vmul.f32 %v418_v62, %v3864_v48  ;;  %v487_v35 = vmul.f32 %v482_v61, %v3864_v48 }
  0xd8   :  { %273 = vrot.lane.b32.xlu1 %v262_v50, %s3649_s1  ;;  %240 = vrot.lane.b32.xlu0 %v229_v51, %s3649_s1 }
  0xd9   :  { %v3890_v3 = vpop.permute.xlu1 %449  ;;  %v515_v4 = vpop.permute.xlu0 %514 }
  0xda   :  { %v517_v21 = vmul.f32 %v515_v4, %v3844_v38  ;;  %v519_v25 = vmul.f32 %v515_v4, %v3851_v42  ;;  %v518_v26 = vmul.f32 %v515_v4, %v3839_v37  ;;  %v453_v31 = vmul.f32 %v3890_v3, %v3839_v37 }
  0xdb   :  { %v452_v32 = vmul.f32 %v3890_v3, %v3844_v38  ;;  %v454_v36 = vmul.f32 %v3890_v3, %v3851_v42  ;;  %v520_v43 = vmul.f32 %v515_v4, %v3864_v48 }
  0xdc   :  { %301 = vrot.lane.b32.xlu1 %v292_v52, %s3649_s1  ;;  %299 = vrot.lane.b32.xlu0 %v291_v53, %s3649_s1 }
  0xdd   :  { %v3898_v7 = vpop.permute.xlu1 %610  ;;  %v3900_v8 = vpop.permute.xlu0 %546 }
  0xde   :  { %v549_v41 = vmul.f32 %v3900_v8, %v3844_v38  ;;  %v551_v44 = vmul.f32 %v3900_v8, %v3851_v42  ;;  %v550_v45 = vmul.f32 %v3900_v8, %v3839_v37  ;;  %v614_v49 = vmul.f32 %v3898_v7, %v3839_v37 }
  0xdf   :  { %v613_v50 = vmul.f32 %v3898_v7, %v3844_v38  ;;  %v615_v54 = vmul.f32 %v3898_v7, %v3851_v42 }
  0xe0   :  { %363 = vrot.lane.b32.xlu1 %v355_v55, %s3650_s7  ;;  %303 = vrot.lane.b32.xlu0 %v293_v56, %s3649_s1 }
  0xe1   :  { %v3908_v13 = vpop.permute.xlu1 %578  ;;  %v3910_v14 = vpop.permute.xlu0 %643 }
  0xe2   :  { %v646_v53 = vmul.f32 %v3910_v14, %v3844_v38  ;;  %v648_v55 = vmul.f32 %v3910_v14, %v3851_v42  ;;  %v647_v56 = vmul.f32 %v3910_v14, %v3839_v37 }
  0xe4   :  { %367 = vrot.lane.b32.xlu1 %v357_v59, %s3650_s7  ;;  %365 = vrot.lane.b32.xlu0 %v356_v60, %s3650_s7  ;;  %v552_v59 = vmul.f32 %v3900_v8, %v3864_v48  ;;  %v455_v60 = vmul.f32 %v3890_v3, %v3864_v48 }
  0xe5   :  { %v3918_v17 = vpop.permute.xlu1 %739  ;;  %v3920_v18 = vpop.permute.xlu0 %675 }
  0xe8   :  { %398 = vrot.lane.b32.xlu1 %v389_v63, %s3650_s7  ;;  %396 = vrot.lane.b32.xlu0 %v388_v0, %s3650_s7  ;;  %v582_v63 = vmul.f32 %v3908_v13, %v3839_v37  ;;  %v581_v0 = vmul.f32 %v3908_v13, %v3844_v38 }
  0xe9   :  { %v3928_v23 = vpop.permute.xlu1 %707  ;;  %v3930_v24 = vpop.permute.xlu0 %772 }
  0xec   :  { %305 = vrot.lane.b32.xlu1 %v294_v1, %s3649_s1  ;;  %400 = vrot.lane.b32.xlu0 %v390_v2, %s3650_s7  ;;  %v616_v1 = vmul.f32 %v3898_v7, %v3864_v48  ;;  %v583_v2 = vmul.f32 %v3908_v13, %v3851_v42 }
  0xed   :  { %v3938_v27 = vpop.permute.xlu1 %868  ;;  %v3940_v28 = vpop.permute.xlu0 %804 }
  0xf0   :  { %333 = vrot.lane.b32.xlu1 %v324_v5, %s3649_s1  ;;  %331 = vrot.lane.b32.xlu0 %v323_v6, %s3649_s1  ;;  %v678_v5 = vmul.f32 %v3920_v18, %v3844_v38  ;;  %v649_v6 = vmul.f32 %v3910_v14, %v3864_v48  ;;  %v743_v14 = vmul.f32 %v3918_v17, %v3839_v37 }
  0xf1   :  { %v3950_v33 = vpop.permute.xlu1 %836  ;;  %v3952_v34 = vpop.permute.xlu0 %901 }
  0xf4   :  { %369 = vrot.lane.b32.xlu1 %v358_v9, %s3650_s7  ;;  %335 = vrot.lane.b32.xlu0 %v325_v10, %s3649_s1  ;;  %v680_v9 = vmul.f32 %v3920_v18, %v3851_v42  ;;  %v679_v10 = vmul.f32 %v3920_v18, %v3839_v37 }
  0xf5   :  { %v3961_v39 = vpop.permute.xlu1 %997  ;;  %v3963_v40 = vpop.permute.xlu0 %933 }
  0xf8   :  { %428 = vrot.lane.b32.xlu1 %v420_v11, %s3650_s7  ;;  %402 = vrot.lane.b32.xlu0 %v391_v12, %s3650_s7 }
  0xf9   :  { %v3974_v46 = vpop.permute.xlu1 %965  ;;  %v3976_v47 = vpop.permute.xlu0 %1030 }
  0xfc   :  { %432 = vrot.lane.b32.xlu1 %v422_v15, %s3650_s7  ;;  %430 = vrot.lane.b32.xlu0 %v421_v16, %s3650_s7  ;;  %v742_v15 = vmul.f32 %v3918_v17, %v3844_v38 }
  0xfd   :  { %v3986_v51 = vpop.permute.xlu1 %1126  ;;  %v3988_v52 = vpop.permute.xlu0 %1062 }
 0x100   :  { %494 = vrot.lane.b32.xlu1 %v485_v19, %s3651_s8  ;;  %492 = vrot.lane.b32.xlu0 %v484_v20, %s3651_s8  ;;  %v775_v20 = vmul.f32 %v3930_v24, %v3844_v38 }
 0x101   :  { %v4000_v57 = vpop.permute.xlu1 %1094  ;;  %v4002_v58 = vpop.permute.xlu0 %1159 }
 0x104   :  { %525 = vrot.lane.b32.xlu1 %v517_v21, %s3651_s8  ;;  %496 = vrot.lane.b32.xlu0 %v486_v22, %s3651_s8  ;;  %v744_v21 = vmul.f32 %v3918_v17, %v3851_v42 }
 0x105   :  { %v4012_v61 = vpop.permute.xlu1 %1223  ;;  %v4014_v62 = vpop.permute.xlu0 %1191 }
 0x108   :  { %529 = vrot.lane.b32.xlu1 %v519_v25, %s3651_s8  ;;  %527 = vrot.lane.b32.xlu0 %v518_v26, %s3651_s8  ;;  %v777_v26 = vmul.f32 %v3930_v24, %v3851_v42 }
 0x109   :  { %v4026_v3 = vpop.permute.xlu1 %180  ;;  %v4028_v4 = vpop.permute.xlu0 %167 }
 0x10c   :  { %434 = vrot.lane.b32.xlu1 %v423_v29, %s3650_s7  ;;  %337 = vrot.lane.b32.xlu0 %v326_v30, %s3649_s1  ;;  %v776_v29 = vmul.f32 %v3930_v24, %v3839_v37 }
 0x10d   :  { %v4038_v7 = vpop.permute.xlu1 %206  ;;  %v4040_v8 = vpop.permute.xlu0 %193 }
 0x110   :  { %462 = vrot.lane.b32.xlu1 %v453_v31, %s3650_s7  ;;  %460 = vrot.lane.b32.xlu0 %v452_v32, %s3650_s7  ;;  %v681_v32 = vmul.f32 %v3920_v18, %v3864_v48 }
 0x114   :  { %498 = vrot.lane.b32.xlu1 %v487_v35, %s3651_s8  ;;  %464 = vrot.lane.b32.xlu0 %v454_v36, %s3650_s7  ;;  %v584_v35 = vmul.f32 %v3908_v13, %v3864_v48 }
 0x118   :  { %557 = vrot.lane.b32.xlu1 %v549_v41, %s3651_s8  ;;  %531 = vrot.lane.b32.xlu0 %v520_v43, %s3651_s8  ;;  %v711_v43 = vmul.f32 %v3928_v23, %v3839_v37 }
 0x11c   :  { %561 = vrot.lane.b32.xlu1 %v551_v44, %s3651_s8  ;;  %559 = vrot.lane.b32.xlu0 %v550_v45, %s3651_s8  ;;  %v710_v44 = vmul.f32 %v3928_v23, %v3844_v38  ;;  %v745_v45 = vmul.f32 %v3918_v17, %v3864_v48 }
 0x120   :  { %623 = vrot.lane.b32.xlu1 %v614_v49, %s3652_s13  ;;  %621 = vrot.lane.b32.xlu0 %v613_v50, %s3652_s13  ;;  %v712_v49 = vmul.f32 %v3928_v23, %v3851_v42 }
 0x124   :  { %654 = vrot.lane.b32.xlu1 %v646_v53, %s3652_s13  ;;  %625 = vrot.lane.b32.xlu0 %v615_v54, %s3652_s13  ;;  %v807_v54 = vmul.f32 %v3940_v28, %v3844_v38 }
 0x128   :  { %658 = vrot.lane.b32.xlu1 %v648_v55, %s3652_s13  ;;  %656 = vrot.lane.b32.xlu0 %v647_v56, %s3652_s13  ;;  %v778_v55 = vmul.f32 %v3930_v24, %v3864_v48 }
 0x12c   :  { %563 = vrot.lane.b32.xlu1 %v552_v59, %s3651_s8  ;;  %466 = vrot.lane.b32.xlu0 %v455_v60, %s3650_s7  ;;  %v809_v59 = vmul.f32 %v3940_v28, %v3851_v42  ;;  %v808_v60 = vmul.f32 %v3940_v28, %v3839_v37 }
 0x130   :  { %591 = vrot.lane.b32.xlu1 %v582_v63, %s3651_s8  ;;  %589 = vrot.lane.b32.xlu0 %v581_v0, %s3651_s8  ;;  %v872_v0 = vmul.f32 %v3938_v27, %v3839_v37 }
 0x134   :  { %627 = vrot.lane.b32.xlu1 %v616_v1, %s3652_s13  ;;  %593 = vrot.lane.b32.xlu0 %v583_v2, %s3651_s8  ;;  %v871_v1 = vmul.f32 %v3938_v27, %v3844_v38 }
 0x138   :  { %686 = vrot.lane.b32.xlu1 %v678_v5, %s3652_s13  ;;  %660 = vrot.lane.b32.xlu0 %v649_v6, %s3652_s13  ;;  %v904_v6 = vmul.f32 %v3952_v34, %v3844_v38 }
 0x13c   :  { %690 = vrot.lane.b32.xlu1 %v680_v9, %s3652_s13  ;;  %688 = vrot.lane.b32.xlu0 %v679_v10, %s3652_s13  ;;  %v873_v9 = vmul.f32 %v3938_v27, %v3851_v42 }
 0x13e   :  { %v4048_v11 = vpop.permute.xlu1 %236  ;;  %v4050_v12 = vpop.permute.xlu0 %234 }
 0x140   :  { %752 = vrot.lane.b32.xlu1 %v743_v14, %s3653_s14  ;;  %750 = vrot.lane.b32.xlu0 %v742_v15, %s3653_s14  ;;  %v906_v15 = vmul.f32 %v3952_v34, %v3851_v42 }
 0x142   :  { %v4058_v16 = vpop.permute.xlu1 %267  ;;  %v4060_v19 = vpop.permute.xlu0 %238 }
 0x144   :  { %783 = vrot.lane.b32.xlu1 %v775_v20, %s3653_s14  ;;  %754 = vrot.lane.b32.xlu0 %v744_v21, %s3653_s14  ;;  %v905_v20 = vmul.f32 %v3952_v34, %v3839_v37 }
 0x146   :  { %v4068_v22 = vpop.permute.xlu1 %271  ;;  %v4070_v25 = vpop.permute.xlu0 %269 }
 0x148   :  { %787 = vrot.lane.b32.xlu1 %v777_v26, %s3653_s14  ;;  %785 = vrot.lane.b32.xlu0 %v776_v29, %s3653_s14  ;;  %v810_v29 = vmul.f32 %v3940_v28, %v3864_v48 }
 0x14a   :  { %v4078_v30 = vpop.permute.xlu1 %273  ;;  %v4080_v31 = vpop.permute.xlu0 %240 }
 0x14c   :  { %692 = vrot.lane.b32.xlu1 %v681_v32, %s3652_s13  ;;  %595 = vrot.lane.b32.xlu0 %v584_v35, %s3651_s8  ;;  %v713_v32 = vmul.f32 %v3928_v23, %v3864_v48 }
 0x14e   :  { %v4088_v36 = vpop.permute.xlu1 %301  ;;  %v4090_v41 = vpop.permute.xlu0 %299 }
 0x150   :  { %720 = vrot.lane.b32.xlu1 %v711_v43, %s3652_s13  ;;  %718 = vrot.lane.b32.xlu0 %v710_v44, %s3652_s13  ;;  %v840_v44 = vmul.f32 %v3950_v33, %v3839_v37 }
 0x152   :  { %v4098_v18 = vpop.permute.xlu1 %363  ;;  %v4100_v13 = vpop.permute.xlu0 %303 }
 0x154   :  { %756 = vrot.lane.b32.xlu1 %v745_v45, %s3653_s14  ;;  %722 = vrot.lane.b32.xlu0 %v712_v49, %s3652_s13  ;;  %v839_v45 = vmul.f32 %v3950_v33, %v3844_v38  ;;  %v874_v49 = vmul.f32 %v3938_v27, %v3864_v48 }
 0x156   :  { %v4108_v50 = vpop.permute.xlu1 %367  ;;  %v4110_v53 = vpop.permute.xlu0 %365 }
 0x158   :  { %815 = vrot.lane.b32.xlu1 %v807_v54, %s3653_s14  ;;  %789 = vrot.lane.b32.xlu0 %v778_v55, %s3653_s14  ;;  %v841_v54 = vmul.f32 %v3950_v33, %v3851_v42 }
 0x15a   :  { %v4118_v17 = vpop.permute.xlu1 %398  ;;  %v4120_v56 = vpop.permute.xlu0 %396 }
 0x15c   :  { %819 = vrot.lane.b32.xlu1 %v809_v59, %s3653_s14  ;;  %817 = vrot.lane.b32.xlu0 %v808_v60, %s3653_s14  ;;  %v936_v60 = vmul.f32 %v3963_v40, %v3844_v38 }
 0x15e   :  { %v4128_v63 = vpop.permute.xlu1 %305  ;;  %v4130_v24 = vpop.permute.xlu0 %400 }
 0x160   :  { %881 = vrot.lane.b32.xlu1 %v872_v0, %s3654_s15  ;;  %879 = vrot.lane.b32.xlu0 %v871_v1, %s3654_s15  ;;  %v907_v0 = vmul.f32 %v3952_v34, %v3864_v48 }
 0x162   :  { %v4138_v2 = vpop.permute.xlu1 %333  ;;  %v4140_v5 = vpop.permute.xlu0 %331 }
 0x164   :  { %912 = vrot.lane.b32.xlu1 %v904_v6, %s3654_s15  ;;  %883 = vrot.lane.b32.xlu0 %v873_v9, %s3654_s15  ;;  %v938_v6 = vmul.f32 %v3963_v40, %v3851_v42  ;;  %v937_v9 = vmul.f32 %v3963_v40, %v3839_v37 }
 0x166   :  { %v4148_v10 = vpop.permute.xlu1 %369  ;;  %v4150_v14 = vpop.permute.xlu0 %335 }
 0x168   :  { %916 = vrot.lane.b32.xlu1 %v906_v15, %s3654_s15  ;;  %914 = vrot.lane.b32.xlu0 %v905_v20, %s3654_s15  ;;  %v1001_v20 = vmul.f32 %v3961_v39, %v3839_v37 }
 0x16a   :  { %v4158_v21 = vpop.permute.xlu1 %428  ;;  %v4160_v26 = vpop.permute.xlu0 %402 }
 0x16c   :  { %821 = vrot.lane.b32.xlu1 %v810_v29, %s3653_s14  ;;  %724 = vrot.lane.b32.xlu0 %v713_v32, %s3652_s13  ;;  %v1000_v29 = vmul.f32 %v3961_v39, %v3844_v38 }
 0x16e   :  { %v4168_v35 = vpop.permute.xlu1 %432  ;;  %v4170_v43 = vpop.permute.xlu0 %430 }
 0x170   :  { %849 = vrot.lane.b32.xlu1 %v840_v44, %s3653_s14  ;;  %847 = vrot.lane.b32.xlu0 %v839_v45, %s3653_s14  ;;  %v1033_v45 = vmul.f32 %v3976_v47, %v3844_v38 }
 0x172   :  { %v4178_v28 = vpop.permute.xlu1 %494  ;;  %v4180_v23 = vpop.permute.xlu0 %492 }
 0x174   :  { %885 = vrot.lane.b32.xlu1 %v874_v49, %s3654_s15  ;;  %851 = vrot.lane.b32.xlu0 %v841_v54, %s3653_s14  ;;  %v1002_v49 = vmul.f32 %v3961_v39, %v3851_v42 }
 0x176   :  { %v4188_v55 = vpop.permute.xlu1 %525  ;;  %v4190_v59 = vpop.permute.xlu0 %496 }
 0x178   :  { %944 = vrot.lane.b32.xlu1 %v936_v60, %s3654_s15  ;;  %918 = vrot.lane.b32.xlu0 %v907_v0, %s3654_s15  ;;  %v1035_v0 = vmul.f32 %v3976_v47, %v3851_v42 }
 0x17a   :  { %v4198_v27 = vpop.permute.xlu1 %529  ;;  %v4200_v1 = vpop.permute.xlu0 %527 }
 0x17c   :  { %948 = vrot.lane.b32.xlu1 %v938_v6, %s3654_s15  ;;  %946 = vrot.lane.b32.xlu0 %v937_v9, %s3654_s15  ;;  %v1034_v6 = vmul.f32 %v3976_v47, %v3839_v37 }
 0x17e   :  { %v4208_v15 = vpop.permute.xlu1 %434  ;;  %v4210_v34 = vpop.permute.xlu0 %337 }
 0x180   :  { %1010 = vrot.lane.b32.xlu1 %v1001_v20, %s3655_s16  ;;  %1008 = vrot.lane.b32.xlu0 %v1000_v29, %s3655_s16  ;;  %v939_v29 = vmul.f32 %v3963_v40, %v3864_v48 }
 0x182   :  { %v4218_v32 = vpop.permute.xlu1 %462  ;;  %v4220_v44 = vpop.permute.xlu0 %460 }
 0x184   :  { %1041 = vrot.lane.b32.xlu1 %v1033_v45, %s3655_s16  ;;  %1012 = vrot.lane.b32.xlu0 %v1002_v49, %s3655_s16  ;;  %v842_v45 = vmul.f32 %v3950_v33, %v3864_v48 }
 0x186   :  { %v4228_v54 = vpop.permute.xlu1 %498  ;;  %v4230_v60 = vpop.permute.xlu0 %464 }
 0x187   :  { %6533 = vst [vmem:[#allocation20_spill] sm:$0xff] %v4230_v60 }
 0x188   :  { %1045 = vrot.lane.b32.xlu1 %v1035_v0, %s3655_s16  ;;  %1043 = vrot.lane.b32.xlu0 %v1034_v6, %s3655_s16  ;;  %v969_v0 = vmul.f32 %v3974_v46, %v3839_v37  ;;  %v968_v6 = vmul.f32 %v3974_v46, %v3844_v38 }
 0x18a   :  { %v4238_v9 = vpop.permute.xlu1 %557  ;;  %v4240_v20 = vpop.permute.xlu0 %531 }
 0x18b   :  { %6534 = vst [vmem:[#allocation21_spill] sm:$0xff] %v4238_v9 }
 0x18c   :  { %950 = vrot.lane.b32.xlu1 %v939_v29, %s3654_s15  ;;  %853 = vrot.lane.b32.xlu0 %v842_v45, %s3653_s14  ;;  %v1003_v29 = vmul.f32 %v3961_v39, %v3864_v48  ;;  %v970_v45 = vmul.f32 %v3974_v46, %v3851_v42 }
 0x18e   :  { %v4248_v49 = vpop.permute.xlu1 %561  ;;  %v4250_v60 = vpop.permute.xlu0 %559 }
 0x18f   :  { %6535 = vst [vmem:[#allocation22_spill] sm:$0xff] %v4248_v49 }
 0x190   :  { %978 = vrot.lane.b32.xlu1 %v969_v0, %s3654_s15  ;;  %976 = vrot.lane.b32.xlu0 %v968_v6, %s3654_s15  ;;  %v1065_v0 = vmul.f32 %v3988_v52, %v3844_v38  ;;  %v1036_v6 = vmul.f32 %v3976_v47, %v3864_v48 }
 0x192   :  { %v4258_v40 = vpop.permute.xlu1 %623  ;;  %v4260_v33 = vpop.permute.xlu0 %621 }
 0x193   :  { %6536 = vst [vmem:[#allocation23_spill] sm:$0xff] %v4260_v33 }
 0x194   :  { %1014 = vrot.lane.b32.xlu1 %v1003_v29, %s3655_s16  ;;  %980 = vrot.lane.b32.xlu0 %v970_v45, %s3654_s15  ;;  %v1067_v29 = vmul.f32 %v3988_v52, %v3851_v42  ;;  %v1066_v45 = vmul.f32 %v3988_v52, %v3839_v37 }
 0x196   :  { %v4268_v49 = vpop.permute.xlu1 %654  ;;  %v4270_v9 = vpop.permute.xlu0 %625 }
 0x197   :  { %6537 = vst [vmem:[#allocation24_spill] sm:$0xff] %v4268_v49 }
 0x198   :  { %1073 = vrot.lane.b32.xlu1 %v1065_v0, %s3655_s16  ;;  %1047 = vrot.lane.b32.xlu0 %v1036_v6, %s3655_s16  ;;  %v1130_v0 = vmul.f32 %v3986_v51, %v3839_v37  ;;  %v1129_v6 = vmul.f32 %v3986_v51, %v3844_v38 }
 0x19a   :  { %v4278_v39 = vpop.permute.xlu1 %658  ;;  %v4280_v33 = vpop.permute.xlu0 %656 }
 0x19b   :  { %6538 = vst [vmem:[#allocation25_spill] sm:$0xff] %v4278_v39  ;;  %6539 = vst [vmem:[#allocation26_spill] sm:$0xff] %v4280_v33 }
 0x19c   :  { %1077 = vrot.lane.b32.xlu1 %v1067_v29, %s3655_s16  ;;  %1075 = vrot.lane.b32.xlu0 %v1066_v45, %s3655_s16  ;;  %v1162_v45 = vmul.f32 %v4002_v58, %v3844_v38 }
 0x19e   :  { %v4288_v49 = vpop.permute.xlu1 %563  ;;  %v4290_v47 = vpop.permute.xlu0 %466 }
 0x19f   :  { %6540 = vst [vmem:[#allocation27_spill] sm:$0xff] %v4288_v49  ;;  %6541 = vst [vmem:[#allocation28_spill] sm:$0xff] %v4290_v47  ;;  %v1131_v47 = vmul.f32 %v3986_v51, %v3851_v42 }
 0x1a0   :  { %1139 = vrot.lane.b32.xlu1 %v1130_v0, %s3656_s17  ;;  %1137 = vrot.lane.b32.xlu0 %v1129_v6, %s3656_s17  ;;  %v1164_v0 = vmul.f32 %v4002_v58, %v3851_v42  ;;  %v1163_v6 = vmul.f32 %v4002_v58, %v3839_v37 }
 0x1a2   :  { %v4298_v39 = vpop.permute.xlu1 %591  ;;  %v4300_v29 = vpop.permute.xlu0 %589 }
 0x1a3   :  { %6542 = vst [vmem:[#allocation29_spill] sm:$0xff] %v4298_v39  ;;  %6543 = vst [vmem:[#allocation30_spill] sm:$0xff] %v4300_v29 }
 0x1a4   :  { %1170 = vrot.lane.b32.xlu1 %v1162_v45, %s3656_s17  ;;  %1141 = vrot.lane.b32.xlu0 %v1131_v47, %s3656_s17  ;;  %v1068_v47 = vmul.f32 %v3988_v52, %v3864_v48  ;;  %v971_v45 = vmul.f32 %v3974_v46, %v3864_v48 }
 0x1a6   :  { %v4308_v49 = vpop.permute.xlu1 %627  ;;  %v4310_v33 = vpop.permute.xlu0 %593 }
 0x1a7   :  { %6544 = vst [vmem:[#allocation31_spill] sm:$0xff] %v4308_v49  ;;  %6545 = vst [vmem:[#allocation32_spill] sm:$0xff] %v4310_v33 }
 0x1a8   :  { %1174 = vrot.lane.b32.xlu1 %v1164_v0, %s3656_s17  ;;  %1172 = vrot.lane.b32.xlu0 %v1163_v6, %s3656_s17  ;;  %v1098_v0 = vmul.f32 %v4000_v57, %v3839_v37  ;;  %v1097_v6 = vmul.f32 %v4000_v57, %v3844_v38 }
 0x1aa   :  { %v4318_v29 = vpop.permute.xlu1 %686  ;;  %v4320_v39 = vpop.permute.xlu0 %660 }
 0x1ab   :  { %6546 = vst [vmem:[#allocation33_spill] sm:$0xff] %v4318_v29  ;;  %6547 = vst [vmem:[#allocation34_spill] sm:$0xff] %v4320_v39 }
 0x1ac   :  { %1079 = vrot.lane.b32.xlu1 %v1068_v47, %s3655_s16  ;;  %982 = vrot.lane.b32.xlu0 %v971_v45, %s3654_s15  ;;  %v1132_v47 = vmul.f32 %v3986_v51, %v3864_v48  ;;  %v1099_v45 = vmul.f32 %v4000_v57, %v3851_v42 }
 0x1ae   :  { %v4328_v33 = vpop.permute.xlu1 %690  ;;  %v4330_v49 = vpop.permute.xlu0 %688 }
 0x1af   :  { %6548 = vst [vmem:[#allocation35_spill] sm:$0xff] %v4328_v33  ;;  %6549 = vst [vmem:[#allocation36_spill] sm:$0xff] %v4330_v49 }
 0x1b0   :  { %1107 = vrot.lane.b32.xlu1 %v1098_v0, %s3655_s16  ;;  %1105 = vrot.lane.b32.xlu0 %v1097_v6, %s3655_s16  ;;  %v1194_v0 = vmul.f32 %v4014_v62, %v3844_v38  ;;  %v1165_v6 = vmul.f32 %v4002_v58, %v3864_v48 }
 0x1b2   :  { %v4338_v52 = vpop.permute.xlu1 %752  ;;  %v4340_v46 = vpop.permute.xlu0 %750 }
 0x1b3   :  { %6550 = vst [vmem:[#allocation37_spill] sm:$0xff] %v4338_v52  ;;  %6551 = vst [vmem:[#allocation38_spill] sm:$0xff] %v4340_v46 }
 0x1b4   :  { %1143 = vrot.lane.b32.xlu1 %v1132_v47, %s3656_s17  ;;  %1109 = vrot.lane.b32.xlu0 %v1099_v45, %s3655_s16  ;;  %v1196_v47 = vmul.f32 %v4014_v62, %v3851_v42  ;;  %v1195_v45 = vmul.f32 %v4014_v62, %v3839_v37 }
 0x1b6   :  { %v4348_v33 = vpop.permute.xlu1 %783  ;;  %v4350_v29 = vpop.permute.xlu0 %754 }
 0x1b7   :  { %6552 = vst [vmem:[#allocation39_spill] sm:$0xff] %v4348_v33  ;;  %6553 = vst [vmem:[#allocation40_spill] sm:$0xff] %v4350_v29 }
 0x1b8   :  { %1202 = vrot.lane.b32.xlu1 %v1194_v0, %s3656_s17  ;;  %1176 = vrot.lane.b32.xlu0 %v1165_v6, %s3656_s17  ;;  %v1197_v0 = vmul.f32 %v4014_v62, %v3864_v48  ;;  %v1100_v6 = vmul.f32 %v4000_v57, %v3864_v48 }
 0x1ba   :  { %v4358_v51 = vpop.permute.xlu1 %787  ;;  %v4360_v46 = vpop.permute.xlu0 %785 }
 0x1bb   :  { %6554 = vst [vmem:[#allocation41_spill] sm:$0xff] %v4358_v51  ;;  %6555 = vst [vmem:[#allocation42_spill] sm:$0xff] %v4360_v46 }
 0x1bc   :  { %1206 = vrot.lane.b32.xlu1 %v1196_v47, %s3656_s17  ;;  %1204 = vrot.lane.b32.xlu0 %v1195_v45, %s3656_s17  ;;  %v1227_v47 = vmul.f32 %v4012_v61, %v3839_v37  ;;  %v1226_v45 = vmul.f32 %v4012_v61, %v3844_v38 }
 0x1be   :  { %v4368_v33 = vpop.permute.xlu1 %692  ;;  %v4370_v58 = vpop.permute.xlu0 %595 }
 0x1bf   :  { %6556 = vst [vmem:[#allocation43_spill] sm:$0xff] %v4368_v33  ;;  %6557 = vst [vmem:[#allocation44_spill] sm:$0xff] %v4370_v58  ;;  %v211_v33 = vmul.f32 %v3851_v42, %v4038_v7 }
 0x1c0   :  { %1208 = vrot.lane.b32.xlu1 %v1197_v0, %s3656_s17  ;;  %1111 = vrot.lane.b32.xlu0 %v1100_v6, %s3655_s16  ;;  %v1229_v0 = vmul.f32 %v4012_v61, %v3864_v48  ;;  %v1228_v6 = vmul.f32 %v4012_v61, %v3851_v42 }
 0x1c2   :  { %v4378_v51 = vpop.permute.xlu1 %720  ;;  %v4380_v46 = vpop.permute.xlu0 %718 }
 0x1c3   :  { %6558 = vst [vmem:[#allocation45_spill] sm:$0xff] %v4378_v51  ;;  %6559 = vst [vmem:[#allocation46_spill] sm:$0xff] %v4380_v46 }
 0x1c4   :  { %1236 = vrot.lane.b32.xlu1 %v1227_v47, %s3656_s17  ;;  %1234 = vrot.lane.b32.xlu0 %v1226_v45, %s3656_s17 }
 0x1c6   :  { %v4388_v62 = vpop.permute.xlu1 %756  ;;  %v4390_v57 = vpop.permute.xlu0 %722 }
 0x1c7   :  { %6560 = vst [vmem:[#allocation47_spill] sm:$0xff] %v4388_v62  ;;  %6561 = vst [vmem:[#allocation48_spill] sm:$0xff] %v4390_v57 }
 0x1c8   :  { %1240 = vrot.lane.b32.xlu1 %v1229_v0, %s3656_s17  ;;  %1238 = vrot.lane.b32.xlu0 %v1228_v6, %s3656_s17 }
 0x1ca   :  { %v4398_v46 = vpop.permute.xlu1 %815  ;;  %v4400_v51 = vpop.permute.xlu0 %789 }
 0x1cb   :  { %6562 = vst [vmem:[#allocation49_spill] sm:$0xff] %v4398_v46  ;;  %6563 = vst [vmem:[#allocation50_spill] sm:$0xff] %v4400_v51 }
 0x1ce   :  { %v4402_v47 = vpop.permute.xlu1 %819  ;;  %v4404_v45 = vpop.permute.xlu0 %817 }
 0x1cf   :  { %6564 = vst [vmem:[#allocation51_spill] sm:$0xff] %v4402_v47  ;;  %6565 = vst [vmem:[#allocation52_spill] sm:$0xff] %v4404_v45 }
 0x1d2   :  { %v4406_v62 = vpop.permute.xlu1 %881  ;;  %v4408_v57 = vpop.permute.xlu0 %879 }
 0x1d3   :  { %6566 = vst [vmem:[#allocation53_spill] sm:$0xff] %v4406_v62  ;;  %6567 = vst [vmem:[#allocation54_spill] sm:$0xff] %v4408_v57 }
 0x1d6   :  { %v4410_v48 = vpop.permute.xlu1 %912  ;;  %v4412_v58 = vpop.permute.xlu0 %883 }
 0x1d7   :  { %6568 = vst [vmem:[#allocation55_spill] sm:$0xff] %v4410_v48  ;;  %6569 = vst [vmem:[#allocation56_spill] sm:$0xff] %v4412_v58 }
 0x1da   :  { %v4414_v61 = vpop.permute.xlu1 %916  ;;  %v4416_v0 = vpop.permute.xlu0 %914 }
 0x1db   :  { %6570 = vst [vmem:[#allocation57_spill] sm:$0xff] %v4414_v61  ;;  %6571 = vst [vmem:[#allocation58_spill] sm:$0xff] %v4416_v0 }
 0x1de   :  { %v4418_v6 = vpop.permute.xlu1 %821  ;;  %v4420_v46 = vpop.permute.xlu0 %724 }
 0x1df   :  { %6572 = vst [vmem:[#allocation59_spill] sm:$0xff] %v4418_v6  ;;  %6573 = vst [vmem:[#allocation60_spill] sm:$0xff] %v4420_v46  ;;  %v276_v46 = vsel %vm242_vm0, %v4070_v25, %v4068_v22 }
 0x1e2   :  { %v4422_v51 = vpop.permute.xlu1 %849  ;;  %v4424_v47 = vpop.permute.xlu0 %847 }
 0x1e3   :  { %6574 = vst [vmem:[#allocation61_spill] sm:$0xff] %v4422_v51  ;;  %6575 = vst [vmem:[#allocation62_spill] sm:$0xff] %v4424_v47  ;;  %v183_v47 = vmul.f32 %v3844_v38, %v4026_v3  ;;  %v243_v51 = vsel %vm242_vm0, %v4050_v12, %v4048_v11  ;;  %v172_v12 = vmul.f32 %v3851_v42, %v4028_v4 }
 0x1e6   :  { %v4426_v45 = vpop.permute.xlu1 %885  ;;  %v4428_v62 = vpop.permute.xlu0 %851 }
 0x1e7   :  { %6576 = vst [vmem:[#allocation63_spill] sm:$0xff] %v4426_v45  ;;  %6577 = vst [vmem:[#allocation64_spill] sm:$0xff] %v4428_v62 }
 0x1ea   :  { %v4430_v57 = vpop.permute.xlu1 %944  ;;  %v4432_v48 = vpop.permute.xlu0 %918 }
 0x1eb   :  { %6578 = vst [vmem:[#allocation65_spill] sm:$0xff] %v4430_v57  ;;  %6579 = vst [vmem:[#allocation66_spill] sm:$0xff] %v4432_v48  ;;  %v184_v57 = vmul.f32 %v3839_v37, %v4026_v3  ;;  %v185_v48 = vmul.f32 %v3851_v42, %v4026_v3  ;;  %v210_v3 = vmul.f32 %v3839_v37, %v4038_v7 }
 0x1ed   :  { %v282_v39 = vadd.f32 %v276_v46, %v184_v57 }
 0x1ee   :  { %v4434_v58 = vpop.permute.xlu1 %948  ;;  %v4436_v61 = vpop.permute.xlu0 %946 }
 0x1ef   :  { %6580 = vst [vmem:[#allocation67_spill] sm:$0xff] %v4434_v58  ;;  %6581 = vst [vmem:[#allocation68_spill] sm:$0xff] %v4436_v61  ;;  %v171_v58 = vmul.f32 %v3839_v37, %v4028_v4  ;;  %v170_v61 = vmul.f32 %v3844_v38, %v4028_v4 }
 0x1f1   :  { %v249_v4 = vadd.f32 %v243_v51, %v170_v61 }
 0x1f2   :  { %v4438_v0 = vpop.permute.xlu1 %1010  ;;  %v4440_v6 = vpop.permute.xlu0 %1008 }
 0x1f3   :  { %6582 = vst [vmem:[#allocation69_spill] sm:$0xff] %v4438_v0  ;;  %6583 = vst [vmem:[#allocation70_spill] sm:$0xff] %v4440_v6  ;;  %v197_v6 = vmul.f32 %v3839_v37, %v4040_v8  ;;  %v198_v0 = vmul.f32 %v3851_v42, %v4040_v8  ;;  %v372_v42 = vsel %vm371_vm1, %v4098_v18, %v4110_v53 }
 0x1f4   :  { %v374_v18 = vsel %vm371_vm1, %v4108_v50, %v4148_v10  ;;  %v378_v51 = vadd.f32 %v372_v42, %v249_v4 }
 0x1f6   :  { %v4444_v45 = vpop.permute.xlu1 %1041  ;;  %v4446_v62 = vpop.permute.xlu0 %1012 }
 0x1f7   :  { %6584 = vst [vmem:[#allocation71_spill] sm:$0xff] %v4444_v45  ;;  %6585 = vst [vmem:[#allocation72_spill] sm:$0xff] %v4446_v62  ;;  %v244_v62 = vsel %vm242_vm0, %v4048_v11, %v4060_v19  ;;  %v275_v45 = vsel %vm242_vm0, %v4058_v16, %v4070_v25  ;;  %v196_v11 = vmul.f32 %v3844_v38, %v4040_v8 }
 0x1f8   :  { %v277_v16 = vsel %vm242_vm0, %v4068_v22, %v4078_v30  ;;  %v209_v25 = vmul.f32 %v3844_v38, %v4038_v7  ;;  %v250_v52 = vadd.f32 %v244_v62, %v171_v58  ;;  %v281_v49 = vadd.f32 %v275_v45, %v183_v47 }
 0x1f9   :  { %v245_v22 = vsel %vm242_vm0, %v4060_v19, %v4080_v31  ;;  %v307_v8 = vsel %vm242_vm0, %v4090_v41, %v4088_v36  ;;  %v308_v38 = vsel %vm242_vm0, %v4088_v36, %v4100_v13  ;;  %v283_v7 = vadd.f32 %v277_v16, %v185_v48 }
 0x1fa   :  { %v4485_v37 = vpop.permute.xlu1 %1045  ;;  %v4487_v29 = vpop.permute.xlu0 %1043  ;;  %v373_v30 = vsel %vm371_vm1, %v4110_v53, %v4108_v50  ;;  %v404_v19 = vsel %vm371_vm1, %v4120_v56, %v4118_v17  ;;  %v309_v31 = vsel %vm242_vm0, %v4100_v13, %v4128_v63  ;;  %v405_v36 = vsel %vm371_vm1, %v4118_v17, %v4130_v24 }
 0x1fb   :  { %v339_v41 = vsel %vm242_vm0, %v4140_v5, %v4138_v2  ;;  %v340_v53 = vsel %vm242_vm0, %v4138_v2, %v4150_v14  ;;  %v251_v63 = vadd.f32 %v245_v22, %v172_v12  ;;  %v313_v46 = vadd.f32 %v307_v8, %v196_v11  ;;  %v6586_v11 = vld [vmem:[#allocation20_spill] sm:$0xff] }
 0x1fc   :  { %v314_v17 = vadd.f32 %v308_v38, %v197_v6  ;;  %v379_v58 = vadd.f32 %v373_v30, %v250_v52  ;;  %v410_v62 = vadd.f32 %v404_v19, %v281_v49  ;;  %v315_v5 = vadd.f32 %v309_v31, %v198_v0  ;;  %v6587_v38 = vld [vmem:[#allocation21_spill] sm:$0xff]  ;;  %v6589_v30 = vld [vmem:[#allocation22_spill] sm:$0xff] }
 0x1fd   :  { %v406_v50 = vsel %vm371_vm1, %v4130_v24, %v4160_v26  ;;  %v411_v10 = vadd.f32 %v405_v36, %v282_v39  ;;  %v345_v57 = vadd.f32 %v339_v41, %v209_v25  ;;  %v380_v47 = vadd.f32 %v374_v18, %v251_v63 }
 0x1fe   :  { %v4522_v56 = vpop.permute.xlu1 %950  ;;  %v4524_v13 = vpop.permute.xlu0 %853  ;;  %v346_v2 = vadd.f32 %v340_v53, %v210_v3  ;;  %v436_v45 = vsel %vm371_vm1, %v4158_v21, %v4170_v43  ;;  %v437_v48 = vsel %vm371_vm1, %v4170_v43, %v4168_v35  ;;  %v501_v49 = vsel %vm500_vm2, %v4180_v23, %v4178_v28 }
 0x1ff   :  { %v104_v24 = vlaneseq  ;;  %v412_v26 = vadd.f32 %v406_v50, %v283_v7  ;;  %v502_v39 = vsel %vm500_vm2, %v4178_v28, %v4190_v59  ;;  %v533_v21 = vsel %vm500_vm2, %v4188_v55, %v4200_v1 }
 0x200   :  { %v534_v43 = vsel %vm500_vm2, %v4200_v1, %v4198_v27  ;;  %v438_v23 = vsel %vm371_vm1, %v4168_v35, %v4208_v15  ;;  %v341_v0 = vsel %vm242_vm0, %v4150_v14, %v4210_v34  ;;  %v468_v28 = vsel %vm371_vm1, %v4220_v44, %v4218_v32 }
 0x201   :  { %v4560_v6 = vand.u32 127, %v104_v24  ;;  %v442_v3 = vadd.f32 %v436_v45, %v313_v46  ;;  %v443_v55 = vadd.f32 %v437_v48, %v314_v17  ;;  %v507_v12 = vadd.f32 %v501_v49, %v378_v51  ;;  %v6592_v46 = vld [vmem:[#allocation26_spill] sm:$0xff]  ;;  %v6593_v17 = vld [vmem:[#allocation24_spill] sm:$0xff] }
 0x202   :  { %v4538_v52 = vpop.permute.xlu1 %978  ;;  %v4540_v61 = vpop.permute.xlu0 %976  ;;  %v503_v1 = vsel %vm500_vm2, %v4190_v59, %v4228_v54  ;;  %v508_v35 = vadd.f32 %v502_v39, %v379_v58  ;;  %v539_v15 = vadd.f32 %v533_v21, %v410_v62  ;;  %v469_v14 = vsel %vm371_vm1, %v4218_v32, %v6586_v11  ;;  %v6597_v39 = vld [vmem:[#allocation28_spill] sm:$0xff] }
 0x203   :  { %v4574_v16 = vshrl.u32 %v104_v24, 7  ;;  %v540_v25 = vadd.f32 %v534_v43, %v411_v10  ;;  %v444_v4 = vadd.f32 %v438_v23, %v315_v5  ;;  %v347_v22 = vadd.f32 %v341_v0, %v211_v33  ;;  %v6590_v33 = vld [vmem:[#allocation23_spill] sm:$0xff]  ;;  %v6594_v5 = vld [vmem:[#allocation25_spill] sm:$0xff] }
 0x204   :  { %v474_v59 = vadd.f32 %v468_v28, %v345_v57  ;;  %v509_v54 = vadd.f32 %v503_v1, %v380_v47  ;;  %v535_v8 = vsel %vm500_vm2, %v4198_v27, %v4240_v20  ;;  %v565_v32 = vsel %vm500_vm2, %v6587_v38, %v4250_v60  ;;  %v6595_v10 = vld [vmem:[#allocation27_spill] sm:$0xff]  ;;  %v6600_v1 = vld [vmem:[#allocation30_spill] sm:$0xff]  ;;  %v6604_v38 = vld [vmem:[#allocation32_spill] sm:$0xff] }
 0x205   :  { %v4585_v42 = vadd.s32 256, %v4560_v6  ;;  %v475_v7 = vadd.f32 %v469_v14, %v346_v2  ;;  %v566_v19 = vsel %vm500_vm2, %v4250_v60, %v6589_v30  ;;  %v630_v31 = vsel %vm629_vm3, %v6590_v33, %v4258_v40  ;;  %v6601_v14 = vld [vmem:[#allocation31_spill] sm:$0xff] }
 0x206   :  { %v4570_v34 = vpop.permute.xlu1 %1014  ;;  %v4572_v44 = vpop.permute.xlu0 %980  ;;  %v631_v27 = vsel %vm629_vm3, %v4258_v40, %v4270_v9  ;;  %vm141_vm4 = vcmp.lt.s32.totalorder %v4574_v16, 2  ;;  %vm144_vm5 = vcmp.ge.s32.totalorder %v4574_v16, 2  ;;  %vm145_vm6 = vcmp.lt.s32.totalorder %v4574_v16, 4 }
 0x207   :  { %6588 = vst [vmem:[#allocation20_spill] sm:$0xff] %v4585_v42  ;;  %v541_v60 = vadd.f32 %v535_v8, %v412_v26  ;;  %v571_v41 = vadd.f32 %v565_v32, %v442_v3  ;;  %v4606_v18 = vadd.s32 128, %v4560_v6  ;;  %v108_v53 = vcvt.s32.f32 %v4560_v6  ;;  %vm146_vm8 = vmand %vm144_vm5, %vm145_vm6 }
 0x208   :  { %v572_v40 = vadd.f32 %v566_v19, %v443_v55  ;;  %v4609_v63 = vadd.f32 %v630_v31, %v507_v12  ;;  %v662_v51 = vsel %vm629_vm3, %v6593_v17, %v6592_v46  ;;  %v110_v58 = vcvt.s32.f32 %v4585_v42  ;;  %v6599_v12 = vld [vmem:[#allocation29_spill] sm:$0xff]  ;;  %v6640_v42 = vld [vmem:[#allocation62_spill] sm:$0xff] }
 0x209   :  { %6591 = vst [vmem:[#allocation21_spill] sm:$0xff] %v4606_v18  ;;  %v4615_v62 = vadd.f32 %v631_v27, %v508_v35  ;;  %v663_v50 = vsel %vm629_vm3, %v6592_v46, %v6594_v5  ;;  %v567_v57 = vsel %vm500_vm2, %v6589_v30, %v6595_v10  ;;  %v6470_v47 = vmov 0.0   ;;  %v6605_v30 = vld [vmem:[#allocation34_spill] sm:$0xff]  ;;  %v6606_v27 = vld [vmem:[#allocation36_spill] sm:$0xff] }
 0x20a   :  { %v4596_v20 = vpop.permute.xlu1 %1073  ;;  %v4598_v36 = vpop.permute.xlu0 %1047  ;;  %v4626_v2 = vsel %vm141_vm4, 1.0, %v6470_v47  ;;  %vm148_vm9 = vcmp.ge.s32.totalorder %v4574_v16, 4  ;;  %vm149_vm10 = vcmp.lt.s32.totalorder %v4574_v16, 6  ;;  %v1270_v49 = vstv %s4565_s4 }
 0x20b   :  { %6596 = vst [vmem:[#allocation22_spill] sm:$0xff] %v4626_v2  ;;  %v1292_v24 = vstv %s4576_s6  ;;  %v668_v26 = vadd.f32 %v662_v51, %v539_v15  ;;  %v470_v21 = vsel %vm371_vm1, %v6586_v11, %v6597_v39  ;;  %v109_v43 = vcvt.s32.f32 %v4606_v18  ;;  %vm4657_vm11 = vmand %vm148_vm9, %vm149_vm10  ;;  %v6614_v11 = vld [vmem:[#allocation42_spill] sm:$0xff]  ;;  %v6626_v18 = vld [vmem:[#allocation49_spill] sm:$0xff] }
 0x20c   :  { %v111_v23 = vadd.f32 0.5, %v108_v53  ;;  %v669_v0 = vadd.f32 %v663_v50, %v540_v25  ;;  %v573_v28 = vadd.f32 %v567_v57, %v444_v4  ;;  %v4647_v3 = vsel %vm146_vm8, 1.0, %v6470_v47  ;;  %v6607_v53 = vld [vmem:[#allocation33_spill] sm:$0xff]  ;;  %v6609_v57 = vld [vmem:[#allocation35_spill] sm:$0xff] }
 0x20d   :  { %6598 = vst [vmem:[#allocation23_spill] sm:$0xff] %v4647_v3  ;;  %v113_v55 = vadd.f32 0.5, %v110_v58  ;;  %v597_v35 = vsel %vm500_vm2, %v6600_v1, %v6599_v12  ;;  %v632_v15 = vsel %vm629_vm3, %v4270_v9, %v6601_v14  ;;  %v1271_v25 = vmul.f32 %v1270_v49, %v4626_v2 }
 0x20e   :  { %v4632_v45 = vpop.permute.xlu1 %1077  ;;  %v4634_v48 = vpop.permute.xlu0 %1075  ;;  %v1293_v4 = vmul.f32 %v1292_v24, %v4647_v3  ;;  %v476_v8 = vadd.f32 %v470_v21, %v347_v22  ;;  %v598_v32 = vsel %vm500_vm2, %v6599_v12, %v6604_v38  ;;  %v664_v19 = vsel %vm629_vm3, %v6594_v5, %v6605_v30 }
 0x20f   :  { %v1314_v31 = vstv %s4603_s18  ;;  %v694_v46 = vsel %vm629_vm3, %v6607_v53, %v6606_v27  ;;  %vm152_vm13 = vcmp.ge.s32.totalorder %v4574_v16, 6  ;;  %v112_v22 = vadd.f32 0.5, %v109_v43 }
 0x210   :  { %v114_v17 = vmul.f32 0.055555556, %v111_v23  ;;  %v603_v51 = vadd.f32 %v597_v35, %v474_v59  ;;  %v638_v58 = vadd.f32 %v632_v15, %v509_v54  ;;  %v4681_v5 = vsel %vm4657_vm11, 1.0, %v6470_v47  ;;  %v6613_v35 = vld [vmem:[#allocation40_spill] sm:$0xff] }
 0x211   :  { %6608 = vst [vmem:[#allocation26_spill] sm:$0xff] %v4681_v5  ;;  %v116_v50 = vmul.f32 0.055555556, %v113_v55  ;;  %v604_v10 = vadd.f32 %v598_v32, %v475_v7  ;;  %v695_v49 = vsel %vm629_vm3, %v6606_v27, %v6609_v57  ;;  %v1294_v24 = vadd.f32 %v1293_v4, %v1271_v25  ;;  %v6611_v7 = vld [vmem:[#allocation37_spill] sm:$0xff]  ;;  %v6612_v55 = vld [vmem:[#allocation38_spill] sm:$0xff]  ;;  %v6615_v25 = vld [vmem:[#allocation39_spill] sm:$0xff] }
 0x212   :  { %v4669_v9 = vpop.permute.xlu1 %1139  ;;  %v4671_v33 = vpop.permute.xlu0 %1137  ;;  %v1315_v39 = vmul.f32 %v1314_v31, %v4681_v5  ;;  %v670_v21 = vadd.f32 %v664_v19, %v541_v60  ;;  %v700_v12 = vadd.f32 %v694_v46, %v571_v41  ;;  %v1336_v54 = vstv %s4640_s19  ;;  %v6616_v32 = vld [vmem:[#allocation41_spill] sm:$0xff]  ;;  %v6617_v19 = vld [vmem:[#allocation43_spill] sm:$0xff]  ;;  %v6618_v27 = vld [vmem:[#allocation44_spill] sm:$0xff] }
 0x213   :  { %v4695_v23 = vsel %vm152_vm13, 1.0, %v6470_v47  ;;  %v759_v1 = vsel %vm758_vm7, %v6612_v55, %v6611_v7  ;;  %v760_v60 = vsel %vm758_vm7, %v6611_v7, %v6613_v35  ;;  %v115_v41 = vmul.f32 0.055555556, %v112_v22  ;;  %v6620_v7 = vld [vmem:[#allocation46_spill] sm:$0xff] }
 0x214   :  { %6610 = vst [vmem:[#allocation24_spill] sm:$0xff] %v4695_v23  ;;  %v3445_v14 = vtrunc.f32 %v114_v17  ;;  %v701_v15 = vadd.f32 %v695_v49, %v572_v40  ;;  %v791_v4 = vsel %vm758_vm7, %v6615_v25, %v6614_v11  ;;  %v792_v16 = vsel %vm758_vm7, %v6614_v11, %v6616_v32  ;;  %v6619_v49 = vld [vmem:[#allocation45_spill] sm:$0xff] }
 0x215   :  { %v3449_v30 = vtrunc.f32 %v116_v50  ;;  %v696_v31 = vsel %vm629_vm3, %v6609_v57, %v6617_v19  ;;  %v599_v53 = vsel %vm500_vm2, %v6604_v38, %v6618_v27  ;;  %v1316_v46 = vadd.f32 %v1315_v39, %v1294_v24  ;;  %v6621_v50 = vld [vmem:[#allocation47_spill] sm:$0xff]  ;;  %v6622_v24 = vld [vmem:[#allocation48_spill] sm:$0xff] }
 0x216   :  { %v4687_v43 = vpop.permute.xlu1 %1170  ;;  %v4689_v59 = vpop.permute.xlu0 %1141  ;;  %v1337_v40 = vmul.f32 %v1336_v54, %v4695_v23  ;;  %v765_v22 = vadd.f32 %v759_v1, %v4609_v63  ;;  %v766_v17 = vadd.f32 %v760_v60, %v4615_v62  ;;  %v726_v55 = vsel %vm629_vm3, %v6620_v7, %v6619_v49 }
 0x217   :  { %v761_v11 = vsel %vm758_vm7, %v6613_v35, %v6621_v50  ;;  %v797_v38 = vadd.f32 %v791_v4, %v668_v26  ;;  %v727_v39 = vsel %vm629_vm3, %v6619_v49, %v6622_v24  ;;  %v4731_v63 = vcvt.f32.s32 %v3445_v14  ;;  %v6623_v35 = vld [vmem:[#allocation50_spill] sm:$0xff]  ;;  %v6625_v4 = vld [vmem:[#allocation52_spill] sm:$0xff]  ;;  %v6627_v49 = vld [vmem:[#allocation51_spill] sm:$0xff] }
 0x218   :  { %v3447_v62 = vtrunc.f32 %v115_v41  ;;  %v798_v54 = vadd.f32 %v792_v16, %v669_v0  ;;  %v702_v1 = vadd.f32 %v696_v31, %v573_v28  ;;  %v605_v60 = vadd.f32 %v599_v53, %v476_v8  ;;  %v6628_v28 = vld [vmem:[#allocation53_spill] sm:$0xff]  ;;  %v6629_v8 = vld [vmem:[#allocation54_spill] sm:$0xff] }
 0x219   :  { %v4733_v19 = vcvt.f32.s32 %v3449_v30  ;;  %v732_v27 = vadd.f32 %v726_v55, %v603_v51  ;;  %v767_v7 = vadd.f32 %v761_v11, %v638_v58  ;;  %v793_v50 = vsel %vm758_vm7, %v6616_v32, %v6623_v35  ;;  %v6630_v32 = vld [vmem:[#allocation56_spill] sm:$0xff]  ;;  %v6631_v16 = vld [vmem:[#allocation58_spill] sm:$0xff]  ;;  %v6632_v30 = vld [vmem:[#allocation55_spill] sm:$0xff] }
 0x21a   :  { %v4724_v57 = vpop.permute.xlu1 %1174  ;;  %v4726_v25 = vpop.permute.xlu0 %1172  ;;  %v4738_v47 = vadd.f32 %v1337_v40, %v1316_v46  ;;  %v733_v26 = vadd.f32 %v727_v39, %v604_v10  ;;  %v823_v14 = vsel %vm758_vm7, %v6626_v18, %v6625_v4  ;;  %v824_v0 = vsel %vm758_vm7, %v6625_v4, %v6627_v49  ;;  %v6634_v40 = vld [vmem:[#allocation57_spill] sm:$0xff]  ;;  %v6635_v11 = vld [vmem:[#allocation59_spill] sm:$0xff] }
 0x21b   :  { %v888_v51 = vsel %vm887_vm12, %v6629_v8, %v6628_v28  ;;  %v889_v10 = vsel %vm887_vm12, %v6628_v28, %v6630_v32  ;;  %v920_v18 = vsel %vm887_vm12, %v6632_v30, %v6631_v16  ;;  %v4759_v31 = vcvt.f32.s32 %v3447_v62  ;;  %v6637_v30 = vld [vmem:[#allocation70_spill] sm:$0xff] }
 0x21c   :  { %6624 = vst [vmem:[#allocation25_spill] sm:$0xff] %v4738_v47  ;;  %v799_v46 = vadd.f32 %v793_v50, %v670_v21  ;;  %v921_v55 = vsel %vm887_vm12, %v6631_v16, %v6634_v40  ;;  %v825_v39 = vsel %vm758_vm7, %v6627_v49, %v6635_v11  ;;  %v122_v35 = vmul.u32 18, %v4733_v19  ;;  %v6636_v47 = vld [vmem:[#allocation69_spill] sm:$0xff]  ;;  %v6638_v21 = vld [vmem:[#allocation60_spill] sm:$0xff] }
 0x21d   :  { %6633 = vst [vmem:[#allocation27_spill] sm:$0xff] %v4759_v31  ;;  %v829_v4 = vadd.f32 %v823_v14, %v700_v12  ;;  %v830_v28 = vadd.f32 %v824_v0, %v701_v15  ;;  %v894_v8 = vadd.f32 %v888_v51, %v765_v22  ;;  %v1017_v62 = vsel %vm1016_vm14, %v6637_v30, %v6636_v47  ;;  %v6639_v16 = vld [vmem:[#allocation61_spill] sm:$0xff]  ;;  %v6641_v22 = vld [vmem:[#allocation63_spill] sm:$0xff]  ;;  %v6643_v0 = vld [vmem:[#allocation66_spill] sm:$0xff] }
 0x21e   :  { %v4749_v58 = vpop.permute.xlu1 %1079  ;;  %v4751_v41 = vpop.permute.xlu0 %982  ;;  %v895_v23 = vadd.f32 %v889_v10, %v766_v17  ;;  %v926_v53 = vadd.f32 %v920_v18, %v797_v38  ;;  %v728_v50 = vsel %vm629_vm3, %v6622_v24, %v6638_v21  ;;  %v855_v31 = vsel %vm758_vm7, %v6640_v42, %v6639_v16  ;;  %v6642_v38 = vld [vmem:[#allocation64_spill] sm:$0xff] }
 0x21f   :  { %v927_v12 = vadd.f32 %v921_v55, %v798_v54  ;;  %v831_v15 = vadd.f32 %v825_v39, %v702_v1  ;;  %v890_v14 = vsel %vm887_vm12, %v6630_v32, %v6641_v22  ;;  %v1146_v17 = vsel %vm1145_vm15, %v4671_v33, %v4669_v9  ;;  %v6644_v54 = vld [vmem:[#allocation71_spill] sm:$0xff]  ;;  %v6645_v32 = vld [vmem:[#allocation68_spill] sm:$0xff]  ;;  %v6646_v55 = vld [vmem:[#allocation65_spill] sm:$0xff] }
 0x220   :  { %v856_v24 = vsel %vm758_vm7, %v6639_v16, %v6642_v38  ;;  %v922_v42 = vsel %vm887_vm12, %v6634_v40, %v6643_v0  ;;  %v1023_v51 = vadd.f32 %v1017_v62, %v894_v8  ;;  %v1049_v1 = vsel %vm1016_vm14, %v6644_v54, %v4487_v29  ;;  %v6647_v33 = vld [vmem:[#allocation72_spill] sm:$0xff] }
 0x221   :  { %v734_v10 = vadd.f32 %v728_v50, %v605_v60  ;;  %v861_v18 = vadd.f32 %v855_v31, %v732_v27  ;;  %v952_v39 = vsel %vm887_vm12, %v6646_v55, %v6645_v32  ;;  %v1018_v30 = vsel %vm1016_vm14, %v6636_v47, %v6647_v33 }
 0x222   :  { %v4778_v49 = vpop.permute.xlu1 %1107  ;;  %v4780_v11 = vpop.permute.xlu0 %1105  ;;  %v896_v21 = vadd.f32 %v890_v14, %v767_v7  ;;  %v1050_v40 = vsel %vm1016_vm14, %v4487_v29, %v4485_v37  ;;  %v1152_v8 = vadd.f32 %v1146_v17, %v1023_v51  ;;  %v1178_v62 = vsel %vm1145_vm15, %v4687_v43, %v4726_v25  ;;  %v6648_v7 = vld [vmem:[#allocation67_spill] sm:$0xff] }
 0x223   :  { %v862_v31 = vadd.f32 %v856_v24, %v733_v26  ;;  %v928_v50 = vadd.f32 %v922_v42, %v799_v46  ;;  %v1055_v16 = vadd.f32 %v1049_v1, %v926_v53  ;;  %v1051_v47 = vsel %vm1016_vm14, %v4485_v37, %v4598_v36 }
 0x224   :  { %v953_v22 = vsel %vm887_vm12, %v6645_v32, %v6648_v7  ;;  %v958_v29 = vadd.f32 %v952_v39, %v829_v4  ;;  %v1024_v14 = vadd.f32 %v1018_v30, %v895_v23  ;;  %v1147_v43 = vsel %vm1145_vm15, %v4669_v9, %v4689_v59 }
 0x225   :  { %v1056_v17 = vadd.f32 %v1050_v40, %v927_v12  ;;  %v1019_v26 = vsel %vm1016_vm14, %v6647_v33, %v4570_v34  ;;  %v1179_v53 = vsel %vm1145_vm15, %v4726_v25, %v4724_v57  ;;  %v1184_v37 = vadd.f32 %v1178_v62, %v1055_v16 }
 0x226   :  { %v1144_v60 = vpop.permute.xlu1 %1143  ;;  %v4809_v27 = vpop.permute.xlu0 %1109  ;;  %v954_v36 = vsel %vm887_vm12, %v6648_v7, %v4522_v56  ;;  %v1057_v46 = vadd.f32 %v1051_v47, %v928_v50  ;;  %v1081_v23 = vsel %vm1016_vm14, %v4596_v20, %v4634_v48  ;;  %v1251_v9 = vrot.slane %v1152_v8, 4 }
 0x227   :  { %v1082_v34 = vsel %vm1016_vm14, %v4634_v48, %v4632_v45  ;;  %v1153_v24 = vadd.f32 %v1147_v43, %v1024_v14  ;;  %v1148_v25 = vsel %vm1145_vm15, %v4689_v59, %v1144_v60  ;;  %v959_v56 = vadd.f32 %v953_v22, %v830_v28 }
 0x228   :  { %v857_v42 = vsel %vm758_vm7, %v6642_v38, %v4524_v13  ;;  %v1025_v20 = vadd.f32 %v1019_v26, %v896_v21  ;;  %v1185_v51 = vadd.f32 %v1179_v53, %v1056_v17  ;;  %v960_v54 = vadd.f32 %v954_v36, %v831_v15 }
 0x229   :  { %v984_v1 = vsel %vm887_vm12, %v4540_v61, %v4538_v52  ;;  %v1273_v48 = vrot.slane %v1184_v37, 4  ;;  %v1087_v55 = vadd.f32 %v1081_v23, %v958_v29  ;;  %v1088_v39 = vadd.f32 %v1082_v34, %v959_v56 }
 0x22a   :  { %v1203_v4 = vpop.permute.xlu1 %1202  ;;  %v1177_v12 = vpop.permute.xlu0 %1176  ;;  %v1254_v59 = vadd.f32 %v1251_v9, %v1152_v8  ;;  %v1154_v33 = vadd.f32 %v1148_v25, %v1025_v20  ;;  %v1252_v28 = vrot.slane %v1153_v24, 4  ;;  %v1083_v13 = vsel %vm1016_vm14, %v4632_v45, %v4749_v58 }
 0x22b   :  { %v1180_v0 = vsel %vm1145_vm15, %v4724_v57, %v1177_v12  ;;  %v985_v61 = vsel %vm887_vm12, %v4538_v52, %v4572_v44  ;;  %v1274_v21 = vrot.slane %v1185_v51, 4  ;;  %v863_v8 = vadd.f32 %v857_v42, %v734_v10 }
 0x22c   :  { %v1186_v32 = vadd.f32 %v1180_v0, %v1057_v46  ;;  %v990_v60 = vadd.f32 %v984_v1, %v861_v18  ;;  %v1276_v50 = vadd.f32 %v1273_v48, %v1184_v37  ;;  %v1089_v47 = vadd.f32 %v1083_v13, %v960_v54 }
 0x22d   :  { %v1253_v7 = vrot.slane %v1154_v33, 4  ;;  %v991_v14 = vadd.f32 %v985_v61, %v862_v31  ;;  %v1257_v43 = vrot.slane %v1254_v59, 6  ;;  %v1255_v17 = vadd.f32 %v1252_v28, %v1153_v24 }
 0x22e   :  { %v1207_v30 = vpop.permute.xlu1 %1206  ;;  %v1205_v57 = vpop.permute.xlu0 %1204  ;;  %v1275_v16 = vrot.slane %v1186_v32, 4  ;;  %v1277_v53 = vadd.f32 %v1274_v21, %v1185_v51  ;;  %v1113_v52 = vsel %vm1016_vm14, %v4780_v11, %v4778_v49  ;;  %v1279_v37 = vrot.slane %v1276_v50, 6 }
 0x22f   :  { %v1210_v38 = vsel %vm1145_vm15, %v1203_v4, %v1205_v57  ;;  %v1211_v15 = vsel %vm1145_vm15, %v1205_v57, %v1207_v30  ;;  %v986_v36 = vsel %vm887_vm12, %v4572_v44, %v4751_v41  ;;  %v1114_v31 = vsel %vm1016_vm14, %v4778_v49, %v4809_v27 }
 0x230   :  { %v1216_v40 = vadd.f32 %v1210_v38, %v1087_v55  ;;  %v1217_v62 = vadd.f32 %v1211_v15, %v1088_v39  ;;  %v1278_v46 = vadd.f32 %v1275_v16, %v1186_v32  ;;  %v1256_v23 = vadd.f32 %v1253_v7, %v1154_v33 }
 0x231   :  { %v1260_v25 = vadd.f32 %v1257_v43, %v1254_v59  ;;  %v1119_v11 = vadd.f32 %v1113_v52, %v990_v60  ;;  %v1258_v42 = vrot.slane %v1255_v17, 6  ;;  %v1280_v44 = vrot.slane %v1277_v53, 6 }
 0x232   :  { %v1295_v22 = vrot.slane %v1216_v40, 4  ;;  %v1296_v29 = vrot.slane %v1217_v62, 4  ;;  %v1209_v45 = vpop.permute.xlu1 %1208  ;;  %v1112_v58 = vpop.permute.xlu0 %1111  ;;  %v992_v41 = vadd.f32 %v986_v36, %v863_v8  ;;  %v1282_v51 = vadd.f32 %v1279_v37, %v1276_v50 }
 0x233   :  { %v1212_v26 = vsel %vm1145_vm15, %v1207_v30, %v1209_v45  ;;  %v1115_v0 = vsel %vm1016_vm14, %v4809_v27, %v1112_v58  ;;  %v1120_v49 = vadd.f32 %v1114_v31, %v991_v14  ;;  %v1281_v54 = vrot.slane %v1278_v46, 6 }
 0x234   :  { %v1298_v10 = vadd.f32 %v1295_v22, %v1216_v40  ;;  %v1218_v18 = vadd.f32 %v1212_v26, %v1089_v47  ;;  %v1299_v9 = vadd.f32 %v1296_v29, %v1217_v62  ;;  %v1259_v48 = vrot.slane %v1256_v23, 6 }
 0x235   :  { %v1121_v39 = vadd.f32 %v1115_v0, %v992_v41  ;;  %v1263_v13 = vmul.f32 %v1260_v25, %v4626_v2  ;;  %v1283_v38 = vadd.f32 %v1280_v44, %v1277_v53  ;;  %v6649_v61 = vmul.u32 18, %v4731_v63  ;;  %v6650_v63 = vld [vmem:[#allocation27_spill] sm:$0xff] }
 0x236   :  { %v1301_v4 = vrot.slane %v1298_v10, 6  ;;  %v1297_v12 = vrot.slane %v1218_v18, 4  ;;  %v1237_v34 = vpop.permute.xlu1 %1236  ;;  %v1235_v24 = vpop.permute.xlu0 %1234  ;;  %v1302_v32 = vrot.slane %v1299_v9, 6  ;;  %v1285_v40 = vmul.f32 %v1282_v51, %v4647_v3 }
 0x237   :  { %v1242_v56 = vsel %vm1145_vm15, %v1235_v24, %v1237_v34  ;;  %v123_v21 = vsub.s32 %v4560_v6, %v6649_v61  ;;  %v1284_v62 = vadd.f32 %v1281_v54, %v1278_v46  ;;  %v1261_v50 = vadd.f32 %v1258_v42, %v1255_v17  ;;  %v6651_v6 = vld [vmem:[#allocation20_spill] sm:$0xff]  ;;  %v6653_v24 = vld [vmem:[#allocation21_spill] sm:$0xff] }
 0x238   :  { %v1300_v20 = vadd.f32 %v1297_v12, %v1218_v18  ;;  %v1248_v1 = vadd.f32 %v1242_v56, %v1119_v11  ;;  %v1304_v55 = vadd.f32 %v1301_v4, %v1298_v10  ;;  %v1262_v16 = vadd.f32 %v1259_v48, %v1256_v23  ;;  %v6652_v4 = vld [vmem:[#allocation24_spill] sm:$0xff] }
 0x239   :  { %v1305_v47 = vadd.f32 %v1302_v32, %v1299_v9  ;;  %v1286_v14 = vmul.f32 %v1283_v38, %v4647_v3  ;;  %v121_v26 = vmul.u32 18, %v6650_v63  ;;  %v125_v53 = vsub.s32 %v6651_v6, %v122_v35 }
 0x23a   :  { %v1241_v33 = vpop.permute.xlu1 %1240  ;;  %v1239_v59 = vpop.permute.xlu0 %1238  ;;  %v1303_v30 = vrot.slane %v1300_v20, 6  ;;  %v1317_v57 = vrot.slane %v1248_v1, 4  ;;  %v1307_v22 = vmul.f32 %v1304_v55, %v4681_v5  ;;  %v1288_v52 = vadd.f32 %v1285_v40, %v1263_v13 }
 0x23b   :  { %v1243_v27 = vsel %vm1145_vm15, %v1237_v34, %v1239_v59  ;;  %v1244_v28 = vsel %vm1145_vm15, %v1239_v59, %v1241_v33  ;;  %v1287_v17 = vmul.f32 %v1284_v62, %v4647_v3  ;;  %v1264_v37 = vmul.f32 %v1261_v50, %v4626_v2 }
 0x23c   :  { %v1249_v15 = vadd.f32 %v1243_v27, %v1120_v49  ;;  %v1320_v8 = vadd.f32 %v1317_v57, %v1248_v1  ;;  %v1250_v60 = vadd.f32 %v1244_v28, %v1121_v39  ;;  %v1306_v29 = vadd.f32 %v1303_v30, %v1300_v20  ;;  %v6654_v20 = vld [vmem:[#allocation25_spill] sm:$0xff] }
 0x23d   :  { %v1265_v36 = vmul.f32 %v1262_v16, %v4626_v2  ;;  %v1308_v31 = vmul.f32 %v1305_v47, %v4681_v5  ;;  %v1310_v23 = vadd.f32 %v1307_v22, %v1288_v52  ;;  %v1289_v34 = vadd.f32 %v1286_v14, %v1264_v37  ;;  %v3406_v52 = vld [vmem:[%s6436_s2 + $0x98] sm:$0xff]  ;;  %v3407_v37 = vld [vmem:[%s6436_s2 + $0xe0] sm:$0xff] }
 0x23e   :  { %v1318_v7 = vrot.slane %v1249_v15, 4  ;;  %v1323_v45 = vrot.slane %v1320_v8, 6  ;;  %v1319_v58 = vrot.slane %v1250_v60, 4  ;;  %v1309_v9 = vmul.f32 %v1306_v29, %v4681_v5 }
 0x23f   :  { %v124_v25 = vsub.s32 %v6653_v24, %v121_v26  ;;  %v1290_v11 = vadd.f32 %v1287_v17, %v1265_v36  ;;  %vm131_vm4 = vcmp.lt.s32.totalorder %v6651_v6, 288  ;;  %v1311_v42 = vadd.f32 %v1308_v31, %v1289_v34  ;;  %v3404_v6 = vld [vmem:[%s6436_s2 + $0x8] sm:$0xff]  ;;  %v3409_v17 = vld [vmem:[%s6436_s2 + $0x58] sm:$0xff]  ;;  %v3413_v36 = vld [vmem:[%s6436_s2 + $0x60] sm:$0xff] }
 0x240   :  { %v1321_v43 = vadd.f32 %v1318_v7, %v1249_v15  ;;  %v1326_v10 = vadd.f32 %v1323_v45, %v1320_v8  ;;  %v1322_v18 = vadd.f32 %v1319_v58, %v1250_v60  ;;  %vm126_vm5 = vcmp.lt.s32.totalorder %v123_v21, 16  ;;  %v3412_v31 = vld [vmem:[%s6436_s2 + $0x18] sm:$0xff]  ;;  %v3424_v34 = vld [vmem:[%s6436_s2 + $0x30] sm:$0xff]  ;;  %v3423_v24 = vld [vmem:[%s6436_s2 + $0x100] sm:$0xff] }
 0x241   :  { %vm128_vm6 = vcmp.lt.s32.totalorder %v125_v53, 16  ;;  %v1312_v41 = vadd.f32 %v1309_v9, %v1290_v11  ;;  %vm127_vm8 = vcmp.lt.s32.totalorder %v124_v25, 16  ;;  %v6655_v48 = vmov 0.0   ;;  %v3405_v53 = vld [vmem:[%s6436_s2 + $0x50] sm:$0xff]  ;;  %v3428_v11 = vld [vmem:[%s6436_s2 + $0x38] sm:$0xff] }
 0x242   :  { %v1324_v46 = vrot.slane %v1321_v43, 6  ;;  %v1329_v12 = vmul.f32 %v1326_v10, %v6652_v4  ;;  %v1325_v19 = vrot.slane %v1322_v18, 6  ;;  %vm134_vm9 = vmand %vm128_vm6, %vm131_vm4  ;;  %v4891_v32 = vsel %vm126_vm5, 1.0, %v6655_v48  ;;  %v3408_v10 = vld [vmem:[%s6436_s2 + $0x10] sm:$0xff] }
 0x243   :  { %6656 = vst [vmem:[#allocation28_spill] sm:$0xff] %v4891_v32  ;;  %v4895_v33 = vsel %vm127_vm8, 1.0, %v6655_v48  ;;  %v4899_v30 = vsel %vm134_vm9, 1.0, %v6655_v48  ;;  %vm1360_vm10 = vcmask 7168   ;;  %v3415_v9 = vld [vmem:[%s6436_s2 + $0xf0] sm:$0xff]  ;;  %v3422_v48 = vld [vmem:[%s6436_s2 + $0xb8] sm:$0xff] }
 0x244   :  { %v1327_v35 = vadd.f32 %v1324_v46, %v1321_v43  ;;  %v1332_v0 = vadd.f32 %v1329_v12, %v1310_v23  ;;  %v1328_v56 = vadd.f32 %v1325_v19, %v1322_v18  ;;  %6657 = vst [vmem:[#allocation29_spill] sm:$0xff] %v4895_v33  ;;  %6658 = vst [vmem:[#allocation30_spill] sm:$0xff] %v4899_v30  ;;  %v3410_v18 = vld [vmem:[%s6436_s2 + $0xa0] sm:$0xff]  ;;  %v3411_v46 = vld [vmem:[%s6436_s2 + $0xe8] sm:$0xff] }
 0x245   :  { %v3416_v23 = vld [vmem:[%s6436_s2 + $0x20] sm:$0xff]  ;;  %v3420_v12 = vld [vmem:[%s6436_s2 + $0x28] sm:$0xff]  ;;  %v3419_v19 = vld [vmem:[%s6436_s2 + $0xf8] sm:$0xff] }
 0x246   :  { %v1330_v44 = vmul.f32 %v1327_v35, %v6652_v4  ;;  %v1339_v51 = vadd.f32 %v6654_v20, %v1332_v0  ;;  %v1331_v49 = vmul.f32 %v1328_v56, %v6652_v4  ;;  %v3427_v0 = vld [vmem:[%s6436_s2 + $0x108] sm:$0xff]  ;;  %v3432_v56 = vld [vmem:[%s6436_s2 + $0x40] sm:$0xff] }
 0x248   :  { %v1333_v54 = vadd.f32 %v1330_v44, %v1311_v42  ;;  %v1334_v1 = vadd.f32 %v1331_v49, %v1312_v41  ;;  %v1342_v55 = vmax.f32 %v1339_v51, 0.0  ;;  %v3431_v42 = vld [vmem:[%s6436_s2 + $0x110] sm:$0xff]  ;;  %v3435_v44 = vld [vmem:[%s6436_s2 + $0x118] sm:$0xff]  ;;  %v3414_v41 = vld [vmem:[%s6436_s2 + $0xa8] sm:$0xff] }
 0x249   :  { %v3417_v51 = vld [vmem:[%s6436_s2 + $0x68] sm:$0xff]  ;;  %v3403_v49 = vld [vmem:[%s6436_s2 + $0xd8] sm:$0xff] }
 0x24a   :  { %v1340_v39 = vadd.f32 %v6654_v20, %v1333_v54  ;;  %v1341_v59 = vadd.f32 %v6654_v20, %v1334_v1  ;;  %v4902_v27 = vmul.f32 %v1342_v55, %v4891_v32  ;;  %v3401_v20 = vld [vmem:[%s6436_s2 + $0x48] sm:$0xff]  ;;  %v3418_v54 = vld [vmem:[%s6436_s2 + $0xb0] sm:$0xff] }
 0x24b   :  { %v3421_v1 = vld [vmem:[%s6436_s2 + $0x70] sm:$0xff] }
 0x24c   :  { %v1343_v57 = vmax.f32 %v1340_v39, 0.0  ;;  %v1344_v28 = vmax.f32 %v1341_v59, 0.0  ;;  %v1352_v61 = vmul.f32 %v4902_v27, %v4902_v27 }
 0x24e   :  { %v4905_v13 = vmul.f32 %v1343_v57, %v4895_v33  ;;  %v4908_v38 = vmul.f32 %v1344_v28, %v4899_v30 }
 0x250   :  { %v1348_v15 = vadd.f32 %v4905_v13, %v4902_v27  ;;  %v1353_v21 = vmul.f32 %v4905_v13, %v4905_v13  ;;  %v1354_v62 = vmul.f32 %v4908_v38, %v4908_v38 }
 0x252   :  { %v1349_v40 = vadd.f32 %v1348_v15, %v4908_v38  ;;  %v1355_v8 = vadd.f32 %v1353_v21, %v1352_v61 }
 0x254   :  { %1350 = vadd.xlane.f32.xlu0 %v1349_v40  ;;  %v1356_v60 = vadd.f32 %v1355_v8, %v1354_v62 }
 0x256   :  { %1357 = vadd.xlane.f32.xlu1 %v1356_v60 }
 0x2dd   :  { %v1351_v50 = vpop.xlane.xlu0 %1350 }
 0x2de   :  { %v1401_v16 = vmul.f32 %v1351_v50, %v4647_v3  ;;  %v1359_v47 = vmul.f32 %v1351_v50, %v4626_v2  ;;  %v1442_v45 = vmul.f32 %v1351_v50, %v4681_v5  ;;  %v1483_v63 = vmul.f32 %v1351_v50, %v6652_v4 }
 0x2df   :  { %v4921_v7 = vpop.xlane.xlu1 %1357 }
 0x2e0   :  { %v1402_v22 = vsel %vm1360_vm10, %v1401_v16, 0.0  ;;  %v1361_v29 = vsel %vm1360_vm10, %v1359_v47, 0.0  ;;  %v1372_v58 = vmul.f32 %v4921_v7, %v4626_v2  ;;  %v1443_v14 = vsel %vm1360_vm10, %v1442_v45, 0.0 }
 0x2e1   :  { %1403 = vadd.xlane.f32.xlu1 %v1402_v22  ;;  %1362 = vadd.xlane.f32.xlu0 %v1361_v29  ;;  %v1484_v26 = vsel %vm1360_vm10, %v1483_v63, 0.0  ;;  %v1413_v35 = vmul.f32 %v4921_v7, %v4647_v3  ;;  %v1454_v55 = vmul.f32 %v4921_v7, %v4681_v5  ;;  %v1495_v57 = vmul.f32 %v4921_v7, %v6652_v4 }
 0x2e2   :  { %v1373_v43 = vsel %vm1360_vm10, %v1372_v58, 0.0 }
 0x2e3   :  { %v1414_v25 = vsel %vm1360_vm10, %v1413_v35, 0.0  ;;  %v1455_v59 = vsel %vm1360_vm10, %v1454_v55, 0.0  ;;  %v1496_v21 = vsel %vm1360_vm10, %v1495_v57, 0.0 }
 0x2e5   :  { %1444 = vadd.xlane.f32.xlu1 %v1443_v14  ;;  %1374 = vadd.xlane.f32.xlu0 %v1373_v43  ;;  %v3425_v14 = vld [vmem:[%s6436_s2 + $0x78] sm:$0xff]  ;;  %v3426_v43 = vld [vmem:[%s6436_s2 + $0xc0] sm:$0xff] }
 0x2e9   :  { %1485 = vadd.xlane.f32.xlu1 %v1484_v26  ;;  %v3429_v26 = vld [vmem:[%s6436_s2 + $0x80] sm:$0xff] }
 0x2fa   :  { %1603 = vperm.xlu1 %3518, %v3404_v6  }
 0x2fb   :  { %1637 = vperm.xlu0 %3517, %v3405_v53   ;;  %v3430_v53 = vld [vmem:[%s6436_s2 + $0xc8] sm:$0xff] }
 0x2fe   :  { %1671 = vperm.xlu1 %3518, %v3406_v52   ;;  %v3433_v52 = vld [vmem:[%s6436_s2 + $0x88] sm:$0xff] }
 0x2ff   :  { %1773 = vperm.xlu0 %3517, %v3409_v17  }
 0x302   :  { %1739 = vperm.xlu1 %3518, %v3408_v10   ;;  %v3434_v10 = vld [vmem:[%s6436_s2 + $0xd0] sm:$0xff] }
 0x303   :  { %1807 = vperm.xlu0 %3517, %v3410_v18  }
 0x306   :  { %1705 = vperm.xlu1 %3518, %v3407_v37  }
 0x307   :  { %1909 = vperm.xlu0 %3517, %v3413_v36   ;;  %v1540_v36 = vld [vmem:[%s6436_s2] sm:$0xff] }
 0x30a   :  { %1875 = vperm.xlu1 %3518, %v3412_v31   ;;  %v3402_v31 = vld [vmem:[%s6436_s2 + $0x90] sm:$0xff] }
 0x30e   :  { %1841 = vperm.xlu1 %3518, %v3411_v46  }
 0x312   :  { %2011 = vperm.xlu1 %3518, %v3416_v23  }
 0x316   :  { %1977 = vperm.xlu1 %3518, %v3415_v9  }
 0x31a   :  { %2131 = vperm.xlu1 %3518, %v3420_v12  }
 0x31e   :  { %2098 = vperm.xlu1 %3518, %v3419_v19  }
 0x322   :  { %2267 = vperm.xlu1 %3518, %v3424_v34  }
 0x326   :  { %2233 = vperm.xlu1 %3518, %v3423_v24   ;;  %1415 = vadd.xlane.f32.xlu0 %v1414_v25 }
 0x32a   :  { %2403 = vperm.xlu1 %3518, %v3428_v11  }
 0x32e   :  { %2369 = vperm.xlu1 %3518, %v3427_v0  }
 0x332   :  { %2539 = vperm.xlu1 %3518, %v3432_v56  }
 0x336   :  { %2505 = vperm.xlu1 %3518, %v3431_v42  }
 0x33a   :  { %2641 = vperm.xlu1 %3518, %v3435_v44  }
 0x33c   :  { %1943 = vperm.xlu0 %3517, %v3414_v41  }
 0x33e   :  { %1558 = vperm.xlu1 %3518, %v3401_v20  }
 0x340   :  { %2040 = vperm.xlu0 %3517, %v3417_v51  }
 0x342   :  { %1588 = vperm.xlu1 %3518, %v3403_v49  }
 0x344   :  { %2069 = vperm.xlu0 %3517, %v3418_v54  }
 0x348   :  { %2165 = vperm.xlu0 %3517, %v3421_v1  }
 0x34c   :  { %2199 = vperm.xlu0 %3517, %v3422_v48  }
 0x36a   :  { %v1363_v39 = vpop.xlane.xlu0 %1362  ;;  %v1404_v58 = vpop.xlane.xlu1 %1403 }
 0x36b   :  { %v1364_v28 = vrot.slane %v1363_v39, 4  ;;  %1456 = vadd.xlane.f32.xlu0 %v1455_v59  ;;  %v1405_v11 = vrot.slane %v1404_v58, 4 }
 0x36d   :  { %v1365_v15 = vadd.f32 %v1364_v28, %v1363_v39  ;;  %v1406_v44 = vadd.f32 %v1405_v11, %v1404_v58 }
 0x36e   :  { %v1375_v61 = vpop.xlane.xlu0 %1374  ;;  %v5025_v7 = vpop.xlane.xlu1 %1444 }
 0x36f   :  { %v1376_v40 = vrot.slane %v1375_v61, 4  ;;  %1497 = vadd.xlane.f32.xlu0 %v1496_v21  ;;  %v1366_v62 = vrot.slane %v1365_v15, 2  ;;  %v1407_v54 = vrot.slane %v1406_v44, 2 }
 0x371   :  { %v1377_v8 = vadd.f32 %v1376_v40, %v1375_v61  ;;  %v1367_v60 = vadd.f32 %v1366_v62, %v1365_v15  ;;  %v1408_v59 = vadd.f32 %v1407_v54, %v1406_v44 }
 0x372   :  { %v5033_v63 = vpop.xlane.xlu1 %1485 }
 0x373   :  { %v1368_v50 = vrot.slane %v1367_v60, 1  ;;  %v1378_v16 = vrot.slane %v1377_v8, 2  ;;  %v1409_v21 = vrot.slane %v1408_v59, 1 }
 0x375   :  { %v1369_v47 = vadd.f32 %v1368_v50, %v1367_v60  ;;  %v1379_v22 = vadd.f32 %v1378_v16, %v1377_v8  ;;  %v1410_v50 = vadd.f32 %v1409_v21, %v1408_v59 }
 0x376   :  { %v5038_v6 = vpop.permute.xlu1 %1603  ;;  %v5051_v18 = vpop.permute.xlu0 %1637 }
 0x377   :  { %3451 = vpush %v1369_v47  ;;  %v1380_v29 = vrot.slane %v1379_v22, 1  ;;  %v1606_v9 = vmul.f32 0.0, %v5038_v6  ;;  %v1640_v34 = vmul.f32 0.0, %v5051_v18 }
 0x379   :  { %v1381_v45 = vadd.f32 %v1380_v29, %v1379_v22 }
 0x37a   :  { %v5046_v17 = vpop.permute.xlu1 %1671  ;;  %v5061_v46 = vpop.permute.xlu0 %1773 }
 0x37b   :  { %3453 = vpush %v1381_v45  ;;  %v1674_v25 = vmul.f32 0.0, %v5046_v17  ;;  %v1776_v49 = vmul.f32 0.0, %v5061_v46 }
 0x37e   :  { %v5053_v37 = vpop.permute.xlu1 %1739  ;;  %v5066_v12 = vpop.permute.xlu0 %1807 }
 0x37f   :  { %v1742_v56 = vmul.f32 0.0, %v5053_v37  ;;  %v1810_v15 = vmul.f32 0.0, %v5066_v12 }
 0x382   :  { %v5063_v23 = vpop.permute.xlu1 %1705  ;;  %v5075_v35 = vpop.permute.xlu0 %1909 }
 0x383   :  { %v1708_v39 = vmul.f32 0.0, %v5063_v23  ;;  %v1912_v29 = vmul.f32 0.0, %v5075_v35 }
 0x385   :  { %2301 = vperm.xlu0 %3517, %v3425_v14  }
 0x386   :  { %v5068_v19 = vpop.permute.xlu1 %1875 }
 0x387   :  { %v1878_v8 = vmul.f32 0.0, %v5068_v19 }
 0x389   :  { %2335 = vperm.xlu0 %3517, %v3426_v43  }
 0x38a   :  { %v5077_v24 = vpop.permute.xlu1 %1841 }
 0x38b   :  { %v1844_v58 = vmul.f32 0.0, %v5077_v24 }
 0x38d   :  { %2437 = vperm.xlu0 %3517, %v3429_v26  }
 0x38e   :  { %v5084_v41 = vpop.permute.xlu1 %2011 }
 0x391   :  { %2471 = vperm.xlu0 %3517, %v3430_v53  }
 0x392   :  { %v5089_v48 = vpop.permute.xlu1 %1977 }
 0x395   :  { %2573 = vperm.xlu0 %3517, %v3433_v52   ;;  %v1980_v52 = vmul.f32 0.0, %v5089_v48 }
 0x396   :  { %v5098_v61 = vpop.permute.xlu1 %2131 }
 0x399   :  { %2607 = vperm.xlu0 %3517, %v3434_v10   ;;  %v2137_v10 = vmul.f32 0.0, %v5098_v61 }
 0x39a   :  { %v5105_v47 = vpop.permute.xlu1 %2098 }
 0x39d   :  { %1543 = vperm.xlu0 %3517, %v1540_v36  }
 0x39e   :  { %v5115_v43 = vpop.permute.xlu1 %2267 }
 0x39f   :  { %v2273_v53 = vmul.f32 0.0, %v5115_v43 }
 0x3a1   :  { %1573 = vperm.xlu0 %3517, %v3402_v31  }
 0x3a5   :  { %1614 = vrot.lane.b32.xlu0 %v1606_v9, %s3649_s1  ;;  %v1446_v9 = vrot.slane %v5025_v7, 4 }
 0x3a8   :  { %s3452_s30 = spop %3451 }
 0x3a9   :  { %s5072_s10 = smul.f32 0.001953125, %s3452_s30  ;;  %1648 = vrot.lane.b32.xlu0 %v1640_v34, %s3649_s1 }
 0x3ab   :  { %s1384_s2 = smul.f32 %s5072_s10, %s5072_s10 }
 0x3ac   :  { %s3454_s11 = spop %3453 }
 0x3ad   :  { %s1383_s12 = smul.f32 0.001953125, %s3454_s11  ;;  %1682 = vrot.lane.b32.xlu0 %v1674_v25, %s3649_s1  ;;  %v1447_v25 = vadd.f32 %v1446_v9, %v5025_v7 }
 0x3af   :  { %s1385_s4 = ssub.f32 %s1383_s12, %s1384_s2  ;;  %v1416_v0 = vpop.xlane.xlu0 %1415  ;;  %v1448_v44 = vrot.slane %v1447_v25, 2 }
 0x3b0   :  { %v1417_v42 = vrot.slane %v1416_v0, 4 }
 0x3b1   :  { %s1386_s6 = sadd.f32 0.001, %s1385_s4  ;;  %1750 = vrot.lane.b32.xlu0 %v1742_v56, %s3650_s7  ;;  %v1449_v54 = vadd.f32 %v1448_v44, %v1447_v25 }
 0x3b2   :  { %v1418_v20 = vadd.f32 %v1417_v42, %v1416_v0 }
 0x3b3   :  { %v1387_v51 = vstv %s1386_s6  ;;  %v1450_v59 = vrot.slane %v1449_v54, 1 }
 0x3b4   :  { %3524 = vrsqrt.f32 %v1387_v51  ;;  %v1419_v1 = vrot.slane %v1418_v20, 2 }
 0x3b5   :  { %1784 = vrot.lane.b32.xlu0 %v1776_v49, %s3650_s7  ;;  %v5142_v49 = vpop.permute.xlu1 %2233 }
 0x3b6   :  { %v1420_v57 = vadd.f32 %v1419_v1, %v1418_v20  ;;  %v2239_v1 = vmul.f32 0.0, %v5142_v49 }
 0x3b7   :  { %v5091_v55 = vpop.permute.xlu0 %1943 }
 0x3b8   :  { %v1421_v40 = vrot.slane %v1420_v57, 1  ;;  %v1946_v26 = vmul.f32 0.0, %v5091_v55 }
 0x3b9   :  { %1716 = vrot.lane.b32.xlu0 %v1708_v39, %s3649_s1  ;;  %v5150_v21 = vpop.permute.xlu1 %2403 }
 0x3ba   :  { %v1422_v16 = vadd.f32 %v1421_v40, %v1420_v57 }
 0x3bb   :  { %v5095_v28 = vpop.permute.xlu0 %2040 }
 0x3bd   :  { %1818 = vrot.lane.b32.xlu0 %v1810_v15, %s3650_s7 }
 0x3bf   :  { %v5101_v62 = vpop.permute.xlu0 %2069 }
 0x3c1   :  { %v3525_v60 = vpop.eup %3524  ;;  %1886 = vrot.lane.b32.xlu0 %v1878_v8, %s3651_s8  ;;  %v1451_v8 = vadd.f32 %v1450_v59, %v1449_v54  ;;  %v1487_v54 = vrot.slane %v5033_v63, 4 }
 0x3c2   :  { %3455 = vpush %v3525_v60 }
 0x3c3   :  { %3457 = vpush %v1410_v50  ;;  %v5107_v22 = vpop.permute.xlu0 %2165  ;;  %v2409_v50 = vmul.f32 0.0, %v5150_v21 }
 0x3c4   :  { %3459 = vpush %v1422_v16  ;;  %v2171_v36 = vmul.f32 0.0, %v5107_v22 }
 0x3c5   :  { %1920 = vrot.lane.b32.xlu0 %v1912_v29, %s3651_s8 }
 0x3c7   :  { %v5111_v45 = vpop.permute.xlu0 %2199 }
 0x3c8   :  { %v2205_v14 = vmul.f32 0.0, %v5111_v45 }
 0x3c9   :  { %1852 = vrot.lane.b32.xlu0 %v1844_v58, %s3650_s7  ;;  %v5158_v58 = vpop.permute.xlu1 %2369 }
 0x3ca   :  { %2216 = vrot.lane.b32.xlu1 %v2205_v14, %s3653_s14  ;;  %v2375_v14 = vmul.f32 0.0, %v5158_v58 }
 0x3cd   :  { %1954 = vrot.lane.b32.xlu0 %v1946_v26, %s3651_s8 }
 0x3ce   :  { %2284 = vrot.lane.b32.xlu1 %v2273_v53, %s3654_s15 }
 0x3d1   :  { %1988 = vrot.lane.b32.xlu0 %v1980_v52, %s3651_s8  ;;  %v5166_v52 = vpop.permute.xlu1 %2539 }
 0x3d5   :  { %2148 = vrot.lane.b32.xlu0 %v2137_v10, %s3653_s14  ;;  %v2545_v10 = vmul.f32 0.0, %v5166_v52  ;;  %v5174_v9 = vpop.permute.xlu1 %2505 }
 0x3d9   :  { %2182 = vrot.lane.b32.xlu0 %v2171_v36, %s3653_s14 }
 0x3f3   :  { %s5129_s18 = spop %3455 }
 0x3f4   :  { %s3458_s19 = spop %3457  ;;  %v1457_v31 = vpop.xlane.xlu0 %1456  ;;  %s1391_s5 = smul.f32 %s5129_s18, %s1390_s3 }
 0x3f5   :  { %s5131_s20 = smul.f32 0.001953125, %s3458_s19  ;;  %s3460_s21 = spop %3459  ;;  %v1458_v34 = vrot.slane %v1457_v31, 4 }
 0x3f6   :  { %s1424_s23 = smul.f32 0.001953125, %s3460_s21 }
 0x3f7   :  { %s1425_s22 = smul.f32 %s5131_s20, %s5131_s20  ;;  %v1459_v0 = vadd.f32 %v1458_v34, %v1457_v31  ;;  %v2511_v34 = vmul.f32 0.0, %v5174_v9 }
 0x3f8   :  { %v5137_v11 = vpop.xlane.xlu0 %1497  ;;  %s1393_s28 = smul.f32 %s1391_s5, %s5072_s10 }
 0x3f9   :  { %s1426_s24 = ssub.f32 %s1424_s23, %s1425_s22  ;;  %v1460_v51 = vrot.slane %v1459_v0, 2 }
 0x3fa   :  { %s1394_s30 = ssub.f32 %s1392_s26, %s1393_s28 }
 0x3fb   :  { %s1427_s25 = sadd.f32 0.001, %s1426_s24  ;;  %v1461_v7 = vadd.f32 %v1460_v51, %v1459_v0 }
 0x3fc   :  { %s3397_s23 = sld [smem:[#allocation6 + $0x2]] }
 0x3fd   :  { %v1428_v56 = vstv %s1427_s25  ;;  %v1462_v57 = vrot.slane %v1461_v7, 1  ;;  %s3398_s24 = sld [smem:[#allocation8 + $0x2]] }
 0x3fe   :  { %3526 = vrsqrt.f32 %v1428_v56  ;;  %v1395_v56 = vstv %s1391_s5 }
 0x3ff   :  { %v1463_v60 = vadd.f32 %v1462_v57, %v1461_v7  ;;  %v1499_v7 = vrot.slane %v5137_v11, 4 }
 0x400   :  { %v5139_v42 = vpop.permute.xlu0 %2301 }
 0x401   :  { %v2307_v20 = vmul.f32 0.0, %v5139_v42 }
 0x403   :  { %2318 = vrot.lane.b32.xlu1 %v2307_v20, %s3654_s15  ;;  %v1396_v20 = vmul.f32 %v1395_v56, %v4626_v2 }
 0x404   :  { %v5146_v39 = vpop.permute.xlu0 %2335 }
 0x405   :  { %v2341_v15 = vmul.f32 0.0, %v5146_v39 }
 0x407   :  { %2250 = vrot.lane.b32.xlu1 %v2239_v1, %s3653_s14  ;;  %v1398_v1 = vstv %s1394_s30 }
 0x408   :  { %v5154_v16 = vpop.permute.xlu0 %2437 }
 0x409   :  { %v2443_v29 = vmul.f32 0.0, %v5154_v16 }
 0x40b   :  { %2352 = vrot.lane.b32.xlu1 %v2341_v15, %s3654_s15  ;;  %v3527_v40 = vpop.eup %3526  ;;  %v1399_v15 = vmul.f32 %v1398_v1, %v4626_v2 }
 0x40c   :  { %3461 = vpush %v3527_v40  ;;  %v5162_v26 = vpop.permute.xlu0 %2471 }
 0x40d   :  { %3463 = vpush %v1451_v8  ;;  %v2477_v53 = vmul.f32 0.0, %v5162_v26  ;;  %v1488_v8 = vadd.f32 %v1487_v54, %v5033_v63 }
 0x40e   :  { %3465 = vpush %v1463_v60  ;;  %v1500_v60 = vadd.f32 %v1499_v7, %v5137_v11 }
 0x40f   :  { %2420 = vrot.lane.b32.xlu1 %v2409_v50, %s3655_s16 }
 0x410   :  { %v5170_v36 = vpop.permute.xlu0 %2573 }
 0x411   :  { %v2579_v31 = vmul.f32 0.0, %v5170_v36 }
 0x413   :  { %2454 = vrot.lane.b32.xlu1 %v2443_v29, %s3655_s16 }
 0x414   :  { %v5178_v25 = vpop.permute.xlu0 %2607 }
 0x415   :  { %v2613_v0 = vmul.f32 0.0, %v5178_v25 }
 0x417   :  { %2386 = vrot.lane.b32.xlu1 %v2375_v14, %s3654_s15  ;;  %v1489_v14 = vrot.slane %v1488_v8, 2 }
 0x41b   :  { %2488 = vrot.lane.b32.xlu1 %v2477_v53, %s3655_s16  ;;  %v1501_v53 = vrot.slane %v1500_v60, 2 }
 0x41f   :  { %2556 = vrot.lane.b32.xlu1 %v2545_v10, %s3656_s17  ;;  %v1490_v10 = vadd.f32 %v1489_v14, %v1488_v8 }
 0x423   :  { %2590 = vrot.lane.b32.xlu1 %v2579_v31, %s3656_s17  ;;  %v1502_v31 = vadd.f32 %v1501_v53, %v1500_v60 }
 0x427   :  { %2522 = vrot.lane.b32.xlu1 %v2511_v34, %s3655_s16  ;;  %v1491_v34 = vrot.slane %v1490_v10, 1 }
 0x42b   :  { %2624 = vrot.lane.b32.xlu1 %v2613_v0, %s3656_s17  ;;  %v1503_v0 = vrot.slane %v1502_v31, 1 }
 0x43d   :  { %s3462_s2 = spop %3461 }
 0x43e   :  { %s1432_s11 = smul.f32 %s3462_s2, %s3395_s27  ;;  %s3464_s12 = spop %3463 }
 0x43f   :  { %s5185_s4 = smul.f32 0.001953125, %s3464_s12  ;;  %s3466_s6 = spop %3465 }
 0x440   :  { %s1434_s19 = smul.f32 %s1432_s11, %s5131_s20  ;;  %v1436_v44 = vstv %s1432_s11 }
 0x441   :  { %v1437_v51 = vmul.f32 %v1436_v44, %v4647_v3  ;;  %s1466_s18 = smul.f32 %s5185_s4, %s5185_s4  ;;  %v1492_v44 = vadd.f32 %v1491_v34, %v1490_v10 }
 0x442   :  { %s1435_s10 = ssub.f32 %s3396_s29, %s1434_s19  ;;  %s1465_s21 = smul.f32 0.001953125, %s3466_s6 }
 0x443   :  { %v1438_v59 = vadd.f32 %v1437_v51, %v1396_v20  ;;  %v1504_v20 = vadd.f32 %v1503_v0, %v1502_v31  ;;  %s3399_s6 = sld [smem:[#allocation6 + $0x3]] }
 0x444   :  { %v1439_v57 = vstv %s1435_s10  ;;  %s1467_s22 = ssub.f32 %s1465_s21, %s1466_s18 }
 0x445   :  { %v1440_v40 = vmul.f32 %v1439_v57, %v4647_v3  ;;  %s3400_s19 = sld [smem:[#allocation8 + $0x3]] }
 0x446   :  { %s1468_s20 = sadd.f32 0.001, %s1467_s22 }
 0x447   :  { %v1441_v50 = vadd.f32 %v1440_v40, %v1399_v15 }
 0x448   :  { %v1469_v29 = vstv %s1468_s20 }
 0x449   :  { %3528 = vrsqrt.f32 %v1469_v29 }
 0x456   :  { %v3529_v56 = vpop.eup %3528 }
 0x457   :  { %3467 = vpush %v3529_v56 }
 0x458   :  { %3469 = vpush %v1492_v44 }
 0x459   :  { %3471 = vpush %v1504_v20 }
 0x488   :  { %s3468_s25 = spop %3467 }
 0x489   :  { %s1473_s3 = smul.f32 %s3468_s25, %s3397_s23  ;;  %s3470_s5 = spop %3469 }
 0x48a   :  { %s1494_s26 = smul.f32 0.001953125, %s3470_s5  ;;  %s3472_s27 = spop %3471 }
 0x48b   :  { %s1475_s28 = smul.f32 %s1473_s3, %s5185_s4  ;;  %v1477_v63 = vstv %s1473_s3 }
 0x48c   :  { %v1478_v11 = vmul.f32 %v1477_v63, %v4681_v5  ;;  %s1507_s29 = smul.f32 %s1494_s26, %s1494_s26 }
 0x48d   :  { %s1476_s30 = ssub.f32 %s3398_s24, %s1475_s28  ;;  %s1506_s2 = smul.f32 0.001953125, %s3472_s27 }
 0x48e   :  { %v1479_v51 = vadd.f32 %v1478_v11, %v1438_v59 }
 0x48f   :  { %v1480_v54 = vstv %s1476_s30  ;;  %s1508_s11 = ssub.f32 %s1506_s2, %s1507_s29 }
 0x490   :  { %v1481_v1 = vmul.f32 %v1480_v54, %v4681_v5  ;;  %s3441_s29 = sld [smem:[#allocation11 + $0x2]] }
 0x491   :  { %s1509_s12 = sadd.f32 0.001, %s1508_s11 }
 0x492   :  { %v1482_v7 = vadd.f32 %v1481_v1, %v1441_v50  ;;  %s3442_s30 = sld [smem:[#allocation12 + $0x2]] }
 0x493   :  { %v1510_v57 = vstv %s1509_s12 }
 0x494   :  { %3530 = vrsqrt.f32 %v1510_v57 }
 0x4a1   :  { %v3531_v15 = vpop.eup %3530 }
 0x4a2   :  { %3473 = vpush %v3531_v15  ;;  %v5249_v15 = vpop.permute.xlu0 %1543 }
 0x4d3   :  { %s3474_s4 = spop %3473 }
 0x4d4   :  { %s1514_s18 = smul.f32 %s3474_s4, %s3399_s6 }
 0x4d6   :  { %s1516_s10 = smul.f32 %s1514_s18, %s1494_s26  ;;  %v1518_v40 = vstv %s1514_s18 }
 0x4d7   :  { %v1519_v8 = vmul.f32 %v1518_v40, %v6652_v4 }
 0x4d8   :  { %s1517_s21 = ssub.f32 %s3400_s19, %s1516_s10 }
 0x4d9   :  { %v1520_v59 = vadd.f32 %v1519_v8, %v1479_v51 }
 0x4da   :  { %v1521_v60 = vstv %s1517_s21 }
 0x4db   :  { %v1522_v29 = vmul.f32 %v1521_v60, %v6652_v4  ;;  %v1524_v50 = vmul.f32 %v1520_v59, %v4902_v27  ;;  %v1525_v53 = vmul.f32 %v1520_v59, %v4905_v13  ;;  %v1526_v10 = vmul.f32 %v1520_v59, %v4908_v38  ;;  %v5257_v59 = vpop.permute.xlu1 %2641  ;;  %v5261_v60 = vpop.permute.xlu0 %1573 }
 0x4dd   :  { %v1523_v14 = vadd.f32 %v1522_v29, %v1482_v7 }
 0x4df   :  { %v1527_v31 = vadd.f32 %v1524_v50, %v1523_v14  ;;  %v1528_v34 = vadd.f32 %v1525_v53, %v1523_v14  ;;  %v1529_v0 = vadd.f32 %v1526_v10, %v1523_v14  ;;  %v5269_v14 = vpop.permute.xlu1 %1558  ;;  %v5275_v10 = vpop.permute.xlu0 %1614 }
 0x4e1   :  { %v5207_v56 = vmul.f32 %v1527_v31, %v4891_v32  ;;  %v5210_v44 = vmul.f32 %v1528_v34, %v4895_v33  ;;  %v5213_v20 = vmul.f32 %v1529_v0, %v4899_v30 }
 0x4e3   :  { %v1608_v63 = vmul.f32 %v5038_v6, %v5210_v44  ;;  %v1607_v27 = vmul.f32 %v5038_v6, %v5207_v56  ;;  %v1642_v13 = vmul.f32 %v5051_v18, %v5210_v44  ;;  %v1609_v38 = vmul.f32 %v5038_v6, %v5213_v20  ;;  %v5283_v34 = vpop.permute.xlu1 %1588  ;;  %v5287_v0 = vpop.permute.xlu0 %1648 }
 0x4e4   :  { %v1676_v11 = vmul.f32 %v5046_v17, %v5210_v44  ;;  %v1641_v51 = vmul.f32 %v5051_v18, %v5207_v56  ;;  %v1744_v54 = vmul.f32 %v5053_v37, %v5210_v44  ;;  %v1643_v6 = vmul.f32 %v5051_v18, %v5213_v20 }
 0x4e5   :  { %1618 = vrot.lane.b32.xlu0 %v1608_v63, %s3649_s1  ;;  %1616 = vrot.lane.b32.xlu1 %v1607_v27, %s3649_s1  ;;  %v1778_v1 = vmul.f32 %v5061_v46, %v5210_v44  ;;  %v1675_v7 = vmul.f32 %v5046_v17, %v5207_v56  ;;  %v1710_v57 = vmul.f32 %v5063_v23, %v5210_v44 }
 0x4e6   :  { %v1677_v18 = vmul.f32 %v5046_v17, %v5213_v20  ;;  %v1812_v40 = vmul.f32 %v5066_v12, %v5210_v44  ;;  %v1743_v8 = vmul.f32 %v5053_v37, %v5207_v56  ;;  %v1880_v17 = vmul.f32 %v5068_v19, %v5210_v44 }
 0x4e7   :  { %v1745_v29 = vmul.f32 %v5053_v37, %v5213_v20  ;;  %v1914_v50 = vmul.f32 %v5075_v35, %v5210_v44  ;;  %v1777_v53 = vmul.f32 %v5061_v46, %v5207_v56  ;;  %v1846_v37 = vmul.f32 %v5077_v24, %v5210_v44 }
 0x4e8   :  { %v1779_v31 = vmul.f32 %v5061_v46, %v5213_v20  ;;  %v1948_v63 = vmul.f32 %v5091_v55, %v5210_v44  ;;  %v1709_v27 = vmul.f32 %v5063_v23, %v5207_v56  ;;  %v2014_v46 = vmul.f32 %v5084_v41, %v5207_v56 }
 0x4e9   :  { %1652 = vrot.lane.b32.xlu0 %v1642_v13, %s3649_s1  ;;  %1620 = vrot.lane.b32.xlu1 %v1609_v38, %s3649_s1  ;;  %v5293_v13 = vpop.permute.xlu1 %2216  ;;  %v1711_v38 = vmul.f32 %v5063_v23, %v5213_v20  ;;  %v2101_v2 = vmul.f32 %v5105_v47, %v5207_v56  ;;  %v2440_v30 = vmul.f32 %v5154_v16, %v5207_v56 }
 0x4ea   :  { %6659 = vst [vmem:[#allocation31_spill] sm:$0xff] %v5293_v13  ;;  %v2442_v33 = vmul.f32 %v5154_v16, %v5213_v20 }
 0x4ed   :  { %1686 = vrot.lane.b32.xlu0 %v1676_v11, %s3649_s1  ;;  %1650 = vrot.lane.b32.xlu1 %v1641_v51, %s3649_s1  ;;  %v5301_v11 = vpop.permute.xlu0 %1682  ;;  %v5305_v51 = vpop.permute.xlu1 %2284 }
 0x4f1   :  { %1754 = vrot.lane.b32.xlu0 %v1744_v54, %s3650_s7  ;;  %1654 = vrot.lane.b32.xlu1 %v1643_v6, %s3649_s1  ;;  %v2016_v54 = vmul.f32 %v5084_v41, %v5213_v20  ;;  %v1811_v6 = vmul.f32 %v5066_v12, %v5207_v56  ;;  %v5315_v23 = vpop.permute.xlu1 %2318 }
 0x4f2   :  { %6660 = vst [vmem:[#allocation32_spill] sm:$0xff] %v5315_v23 }
 0x4f5   :  { %1788 = vrot.lane.b32.xlu0 %v1778_v1, %s3650_s7  ;;  %1684 = vrot.lane.b32.xlu1 %v1675_v7, %s3649_s1  ;;  %v5313_v1 = vpop.permute.xlu0 %1750  ;;  %v2044_v7 = vmul.f32 %v5095_v28, %v5210_v44 }
 0x4f9   :  { %1720 = vrot.lane.b32.xlu0 %v1710_v57, %s3649_s1  ;;  %1688 = vrot.lane.b32.xlu1 %v1677_v18, %s3649_s1  ;;  %v1813_v57 = vmul.f32 %v5066_v12, %v5213_v20  ;;  %v1982_v18 = vmul.f32 %v5089_v48, %v5210_v44  ;;  %v2072_v12 = vmul.f32 %v5101_v62, %v5207_v56 }
 0x4fd   :  { %1822 = vrot.lane.b32.xlu0 %v1812_v40, %s3650_s7  ;;  %1752 = vrot.lane.b32.xlu1 %v1743_v8, %s3650_s7  ;;  %v1879_v40 = vmul.f32 %v5068_v19, %v5207_v56  ;;  %v5327_v8 = vpop.permute.xlu0 %1784 }
 0x501   :  { %1890 = vrot.lane.b32.xlu0 %v1880_v17, %s3651_s8  ;;  %1756 = vrot.lane.b32.xlu1 %v1745_v29, %s3650_s7  ;;  %v5329_v17 = vpop.permute.xlu1 %2250  ;;  %v1881_v29 = vmul.f32 %v5068_v19, %v5213_v20  ;;  %v2135_v19 = vmul.f32 %v5098_v61, %v5210_v44 }
 0x502   :  { %6661 = vst [vmem:[#allocation34_spill] sm:$0xff] %v5329_v17 }
 0x505   :  { %1924 = vrot.lane.b32.xlu0 %v1914_v50, %s3651_s8  ;;  %1786 = vrot.lane.b32.xlu1 %v1777_v53, %s3650_s7  ;;  %v5339_v50 = vpop.permute.xlu0 %1716  ;;  %v5341_v53 = vpop.permute.xlu1 %2352 }
 0x506   :  { %6662 = vst [vmem:[#allocation36_spill] sm:$0xff] %v5341_v53 }
 0x509   :  { %1856 = vrot.lane.b32.xlu0 %v1846_v37, %s3650_s7  ;;  %1790 = vrot.lane.b32.xlu1 %v1779_v31, %s3650_s7  ;;  %v2074_v37 = vmul.f32 %v5101_v62, %v5213_v20  ;;  %v1913_v31 = vmul.f32 %v5075_v35, %v5207_v56 }
 0x50d   :  { %1958 = vrot.lane.b32.xlu0 %v1948_v63, %s3651_s8  ;;  %1718 = vrot.lane.b32.xlu1 %v1709_v27, %s3649_s1  ;;  %v1915_v63 = vmul.f32 %v5075_v35, %v5213_v20  ;;  %v5353_v27 = vpop.permute.xlu0 %1818 }
 0x511   :  { %2020 = vrot.lane.b32.xlu0 %v2014_v46, %s3652_s13  ;;  %1722 = vrot.lane.b32.xlu1 %v1711_v38, %s3649_s1  ;;  %v5355_v46 = vpop.permute.xlu1 %2420  ;;  %v2169_v38 = vmul.f32 %v5107_v22, %v5210_v44  ;;  %s3658_s1 = smov 19  }
 0x515   :  { %2024 = vrot.lane.b32.xlu0 %v2016_v54, %s3652_s13  ;;  %1820 = vrot.lane.b32.xlu1 %v1811_v6, %s3650_s7  ;;  %v1845_v54 = vmul.f32 %v5077_v24, %v5207_v56  ;;  %v5365_v6 = vpop.permute.xlu0 %1886  ;;  %v5367_v35 = vpop.permute.xlu1 %2454 }
 0x516   :  { %6663 = vst [vmem:[#allocation33_spill] sm:$0xff] %v5367_v35 }
 0x519   :  { %2051 = vrot.lane.b32.xlu0 %v2044_v7, %s3652_s13  ;;  %1824 = vrot.lane.b32.xlu1 %v1813_v57, %s3650_s7  ;;  %v2102_v7 = vmul.f32 %v5105_v47, %v5210_v44  ;;  %v1847_v57 = vmul.f32 %v5077_v24, %v5213_v20  ;;  %v2204_v24 = vmul.f32 %v5111_v45, %v5213_v20 }
 0x51d   :  { %1992 = vrot.lane.b32.xlu0 %v1982_v18, %s3651_s8  ;;  %1888 = vrot.lane.b32.xlu1 %v1879_v40, %s3651_s8  ;;  %v2202_v18 = vmul.f32 %v5111_v45, %v5207_v56  ;;  %v1947_v40 = vmul.f32 %v5091_v55, %v5207_v56 }
 0x521   :  { %2078 = vrot.lane.b32.xlu0 %v2072_v12, %s3652_s13  ;;  %1892 = vrot.lane.b32.xlu1 %v1881_v29, %s3651_s8  ;;  %v5379_v12 = vpop.permute.xlu0 %1920  ;;  %v5381_v29 = vpop.permute.xlu1 %2386 }
 0x522   :  { %6664 = vst [vmem:[#allocation35_spill] sm:$0xff] %v5379_v12  ;;  %6665 = vst [vmem:[#allocation37_spill] sm:$0xff] %v5381_v29 }
 0x525   :  { %2082 = vrot.lane.b32.xlu0 %v2074_v37, %s3652_s13  ;;  %1922 = vrot.lane.b32.xlu1 %v1913_v31, %s3651_s8  ;;  %v1949_v37 = vmul.f32 %v5091_v55, %v5213_v20  ;;  %v5391_v31 = vpop.permute.xlu0 %1852  ;;  %v2043_v55 = vmul.f32 %v5095_v28, %v5207_v56 }
 0x526   :  { %6666 = vst [vmem:[#allocation38_spill] sm:$0xff] %v5391_v31 }
 0x529   :  { %2144 = vrot.lane.b32.xlu0 %v2135_v19, %s3653_s14  ;;  %1926 = vrot.lane.b32.xlu1 %v1915_v63, %s3651_s8  ;;  %v5393_v19 = vpop.permute.xlu1 %2488  ;;  %v2015_v63 = vmul.f32 %v5084_v41, %v5210_v44  ;;  %v2045_v41 = vmul.f32 %v5095_v28, %v5213_v20  ;;  %v2236_v28 = vmul.f32 %v5142_v49, %v5207_v56 }
 0x52a   :  { %6667 = vst [vmem:[#allocation40_spill] sm:$0xff] %v5393_v19 }
 0x52d   :  { %2178 = vrot.lane.b32.xlu0 %v2169_v38, %s3653_s14  ;;  %1854 = vrot.lane.b32.xlu1 %v1845_v54, %s3650_s7  ;;  %v2270_v38 = vmul.f32 %v5115_v43, %v5207_v56  ;;  %v2272_v54 = vmul.f32 %v5115_v43, %v5213_v20 }
 0x531   :  { %2109 = vrot.lane.b32.xlu0 %v2102_v7, %s3652_s13  ;;  %1858 = vrot.lane.b32.xlu1 %v1847_v57, %s3650_s7  ;;  %v5405_v7 = vpop.permute.xlu0 %1954  ;;  %v5407_v57 = vpop.permute.xlu1 %2556  ;;  %s2760_s7 = sld [smem:[#allocation9]] }
 0x532   :  { %6668 = vst [vmem:[#allocation42_spill] sm:$0xff] %v5405_v7  ;;  %6669 = vst [vmem:[#allocation39_spill] sm:$0xff] %v5407_v57 }
 0x535   :  { %2210 = vrot.lane.b32.xlu0 %v2202_v18, %s3653_s14  ;;  %1956 = vrot.lane.b32.xlu1 %v1947_v40, %s3651_s8  ;;  %v2304_v18 = vmul.f32 %v5139_v42, %v5207_v56  ;;  %v5417_v40 = vpop.permute.xlu0 %1988 }
 0x536   :  { %6670 = vst [vmem:[#allocation41_spill] sm:$0xff] %v5417_v40 }
 0x539   :  { %2214 = vrot.lane.b32.xlu0 %v2204_v24, %s3653_s14  ;;  %1960 = vrot.lane.b32.xlu1 %v1949_v37, %s3651_s8  ;;  %v5419_v24 = vpop.permute.xlu1 %2590  ;;  %v2306_v37 = vmul.f32 %v5139_v42, %v5213_v20 }
 0x53a   :  { %6671 = vst [vmem:[#allocation43_spill] sm:$0xff] %v5419_v24 }
 0x53d   :  { %2278 = vrot.lane.b32.xlu0 %v2270_v38, %s3654_s15  ;;  %2022 = vrot.lane.b32.xlu1 %v2015_v63, %s3652_s13  ;;  %v1981_v63 = vmul.f32 %v5089_v48, %v5207_v56  ;;  %v1983_v38 = vmul.f32 %v5089_v48, %v5213_v20 }
 0x541   :  { %2282 = vrot.lane.b32.xlu0 %v2272_v54, %s3654_s15  ;;  %2049 = vrot.lane.b32.xlu1 %v2043_v55, %s3652_s13  ;;  %v5431_v55 = vpop.permute.xlu0 %2148  ;;  %v5433_v54 = vpop.permute.xlu1 %2522 }
 0x542   :  { %6672 = vst [vmem:[#allocation44_spill] sm:$0xff] %v5433_v54 }
 0x545   :  { %2312 = vrot.lane.b32.xlu0 %v2304_v18, %s3654_s15  ;;  %2053 = vrot.lane.b32.xlu1 %v2045_v41, %s3652_s13  ;;  %v2073_v41 = vmul.f32 %v5101_v62, %v5210_v44  ;;  %v2238_v18 = vmul.f32 %v5142_v49, %v5213_v20  ;;  %v5445_v48 = vpop.permute.xlu1 %2624 }
 0x546   :  { %6673 = vst [vmem:[#allocation45_spill] sm:$0xff] %v5445_v48 }
 0x549   :  { %2316 = vrot.lane.b32.xlu0 %v2306_v37, %s3654_s15  ;;  %1990 = vrot.lane.b32.xlu1 %v1981_v63, %s3651_s8  ;;  %v5443_v37 = vpop.permute.xlu0 %2182  ;;  %v2338_v63 = vmul.f32 %v5146_v39, %v5207_v56 }
 0x54d   :  { %2244 = vrot.lane.b32.xlu0 %v2236_v28, %s3653_s14  ;;  %1994 = vrot.lane.b32.xlu1 %v1983_v38, %s3651_s8  ;;  %v2134_v28 = vmul.f32 %v5098_v61, %v5207_v56  ;;  %s3436_s8 = sld [smem:[#allocation9 + $0x1]] }
 0x551   :  { %2248 = vrot.lane.b32.xlu0 %v2238_v18, %s3653_s14  ;;  %2080 = vrot.lane.b32.xlu1 %v2073_v41, %s3652_s13  ;;  %v2340_v41 = vmul.f32 %v5146_v39, %v5213_v20  ;;  %v2136_v18 = vmul.f32 %v5098_v61, %v5213_v20 }
 0x555   :  { %2346 = vrot.lane.b32.xlu0 %v2338_v63, %s3654_s15  ;;  %2142 = vrot.lane.b32.xlu1 %v2134_v28, %s3653_s14  ;;  %v2406_v63 = vmul.f32 %v5150_v21, %v5207_v56  ;;  %v2168_v28 = vmul.f32 %v5107_v22, %v5207_v56 }
 0x557   :  { %v5453_v62 = vpop.permute.xlu1 %1616  ;;  %v5455_v38 = vpop.permute.xlu0 %1618 }
 0x559   :  { %2350 = vrot.lane.b32.xlu0 %v2340_v41, %s3654_s15  ;;  %2146 = vrot.lane.b32.xlu1 %v2136_v18, %s3653_s14  ;;  %v2408_v41 = vmul.f32 %v5150_v21, %v5213_v20  ;;  %v2170_v18 = vmul.f32 %v5107_v22, %v5213_v20  ;;  %v2103_v22 = vmul.f32 %v5105_v47, %v5213_v20 }
 0x55b   :  { %v5463_v4 = vpop.permute.xlu1 %1620  ;;  %v5465_v5 = vpop.permute.xlu0 %1652 }
 0x55d   :  { %2414 = vrot.lane.b32.xlu0 %v2406_v63, %s3655_s16  ;;  %2176 = vrot.lane.b32.xlu1 %v2168_v28, %s3653_s14 }
 0x55f   :  { %v5473_v3 = vpop.permute.xlu1 %1650  ;;  %v5475_v61 = vpop.permute.xlu0 %1686 }
 0x561   :  { %2418 = vrot.lane.b32.xlu0 %v2408_v41, %s3655_s16  ;;  %2180 = vrot.lane.b32.xlu1 %v2170_v18, %s3653_s14 }
 0x563   :  { %v5485_v63 = vpop.permute.xlu1 %1654  ;;  %v5487_v28 = vpop.permute.xlu0 %1754 }
 0x565   :  { %2107 = vrot.lane.b32.xlu1 %v2101_v2, %s3652_s13  ;;  %2448 = vrot.lane.b32.xlu0 %v2440_v30, %s3655_s16  ;;  %v2203_v2 = vmul.f32 %v5111_v45, %v5210_v44  ;;  %v2372_v30 = vmul.f32 %v5158_v58, %v5207_v56 }
 0x567   :  { %v5495_v41 = vpop.permute.xlu1 %1684  ;;  %v5497_v18 = vpop.permute.xlu0 %1788 }
 0x569   :  { %2111 = vrot.lane.b32.xlu1 %v2103_v22, %s3652_s13  ;;  %2452 = vrot.lane.b32.xlu0 %v2442_v33, %s3655_s16  ;;  %v2271_v33 = vmul.f32 %v5115_v43, %v5210_v44  ;;  %v2374_v22 = vmul.f32 %v5158_v58, %v5213_v20 }
 0x56b   :  { %v5503_v32 = vpop.permute.xlu1 %1688  ;;  %v5505_v54 = vpop.permute.xlu0 %1720 }
 0x56d   :  { %2212 = vrot.lane.b32.xlu1 %v2203_v2, %s3653_s14  ;;  %2380 = vrot.lane.b32.xlu0 %v2372_v30, %s3654_s15  ;;  %v2305_v2 = vmul.f32 %v5139_v42, %v5210_v44  ;;  %v2474_v30 = vmul.f32 %v5162_v26, %v5207_v56 }
 0x56f   :  { %v5513_v47 = vpop.permute.xlu1 %1752  ;;  %v5515_v29 = vpop.permute.xlu0 %1822 }
 0x570   :  { %6674 = vst [vmem:[#allocation46_spill] sm:$0xff] %v5515_v29 }
 0x571   :  { %2280 = vrot.lane.b32.xlu1 %v2271_v33, %s3654_s15  ;;  %2384 = vrot.lane.b32.xlu0 %v2374_v22, %s3654_s15  ;;  %v2237_v33 = vmul.f32 %v5142_v49, %v5210_v44  ;;  %v2476_v22 = vmul.f32 %v5162_v26, %v5213_v20 }
 0x573   :  { %v5523_v45 = vpop.permute.xlu1 %1756  ;;  %v5525_v17 = vpop.permute.xlu0 %1890 }
 0x574   :  { %6675 = vst [vmem:[#allocation47_spill] sm:$0xff] %v5525_v17  ;;  %v1561_v17 = vmul.f32 0.0, %v5269_v14 }
 0x575   :  { %2314 = vrot.lane.b32.xlu1 %v2305_v2, %s3654_s15  ;;  %2482 = vrot.lane.b32.xlu0 %v2474_v30, %s3655_s16  ;;  %v2339_v2 = vmul.f32 %v5146_v39, %v5210_v44  ;;  %v2542_v30 = vmul.f32 %v5166_v52, %v5207_v56 }
 0x577   :  { %v5533_v43 = vpop.permute.xlu1 %1786  ;;  %v5535_v48 = vpop.permute.xlu0 %1924 }
 0x578   :  { %6676 = vst [vmem:[#allocation48_spill] sm:$0xff] %v5535_v48 }
 0x579   :  { %2246 = vrot.lane.b32.xlu1 %v2237_v33, %s3653_s14  ;;  %2486 = vrot.lane.b32.xlu0 %v2476_v22, %s3655_s16  ;;  %v2407_v33 = vmul.f32 %v5150_v21, %v5210_v44  ;;  %v2544_v22 = vmul.f32 %v5166_v52, %v5213_v20  ;;  %s3437_s14 = sld [smem:[#allocation9 + $0x2]] }
 0x57b   :  { %v5543_v42 = vpop.permute.xlu1 %1790  ;;  %v5545_v19 = vpop.permute.xlu0 %1856 }
 0x57c   :  { %6677 = vst [vmem:[#allocation50_spill] sm:$0xff] %v5545_v19 }
 0x57d   :  { %2348 = vrot.lane.b32.xlu1 %v2339_v2, %s3654_s15  ;;  %2550 = vrot.lane.b32.xlu0 %v2542_v30, %s3656_s17  ;;  %v2441_v2 = vmul.f32 %v5154_v16, %v5210_v44  ;;  %v2576_v30 = vmul.f32 %v5170_v36, %v5207_v56 }
 0x57f   :  { %v5553_v49 = vpop.permute.xlu1 %1718  ;;  %v5555_v53 = vpop.permute.xlu0 %1958 }
 0x580   :  { %6678 = vst [vmem:[#allocation52_spill] sm:$0xff] %v5555_v53 }
 0x581   :  { %2416 = vrot.lane.b32.xlu1 %v2407_v33, %s3655_s16  ;;  %2554 = vrot.lane.b32.xlu0 %v2544_v22, %s3656_s17  ;;  %v2373_v33 = vmul.f32 %v5158_v58, %v5210_v44  ;;  %v2578_v22 = vmul.f32 %v5170_v36, %v5213_v20 }
 0x583   :  { %v5563_v39 = vpop.permute.xlu1 %1722  ;;  %v5565_v40 = vpop.permute.xlu0 %2020 }
 0x584   :  { %6679 = vst [vmem:[#allocation49_spill] sm:$0xff] %v5565_v40 }
 0x585   :  { %2450 = vrot.lane.b32.xlu1 %v2441_v2, %s3655_s16  ;;  %2584 = vrot.lane.b32.xlu0 %v2576_v30, %s3656_s17  ;;  %v2475_v2 = vmul.f32 %v5162_v26, %v5210_v44  ;;  %v2508_v30 = vmul.f32 %v5174_v9, %v5207_v56 }
 0x587   :  { %v5573_v21 = vpop.permute.xlu1 %1820  ;;  %v5575_v13 = vpop.permute.xlu0 %2024 }
 0x589   :  { %2382 = vrot.lane.b32.xlu1 %v2373_v33, %s3654_s15  ;;  %2588 = vrot.lane.b32.xlu0 %v2578_v22, %s3656_s17  ;;  %v2543_v33 = vmul.f32 %v5166_v52, %v5210_v44  ;;  %v2510_v22 = vmul.f32 %v5174_v9, %v5213_v20  ;;  %s3438_s15 = sld [smem:[#allocation9 + $0x3]] }
 0x58b   :  { %v5583_v16 = vpop.permute.xlu1 %1824  ;;  %v5585_v24 = vpop.permute.xlu0 %2051 }
 0x58c   :  { %6680 = vst [vmem:[#allocation51_spill] sm:$0xff] %v5583_v16  ;;  %6681 = vst [vmem:[#allocation53_spill] sm:$0xff] %v5585_v24 }
 0x58d   :  { %2484 = vrot.lane.b32.xlu1 %v2475_v2, %s3655_s16  ;;  %2516 = vrot.lane.b32.xlu0 %v2508_v30, %s3655_s16  ;;  %v2577_v2 = vmul.f32 %v5170_v36, %v5210_v44  ;;  %v2610_v30 = vmul.f32 %v5178_v25, %v5207_v56 }
 0x58f   :  { %v5593_v58 = vpop.permute.xlu1 %1888  ;;  %v5595_v53 = vpop.permute.xlu0 %1992 }
 0x590   :  { %6682 = vst [vmem:[#allocation54_spill] sm:$0xff] %v5593_v58  ;;  %6683 = vst [vmem:[#allocation56_spill] sm:$0xff] %v5595_v53 }
 0x591   :  { %2552 = vrot.lane.b32.xlu1 %v2543_v33, %s3656_s17  ;;  %2520 = vrot.lane.b32.xlu0 %v2510_v22, %s3655_s16  ;;  %v2509_v33 = vmul.f32 %v5174_v9, %v5210_v44  ;;  %v2612_v22 = vmul.f32 %v5178_v25, %v5213_v20 }
 0x593   :  { %v5603_v26 = vpop.permute.xlu1 %1892  ;;  %v5605_v24 = vpop.permute.xlu0 %2078 }
 0x594   :  { %6684 = vst [vmem:[#allocation58_spill] sm:$0xff] %v5605_v24 }
 0x595   :  { %2586 = vrot.lane.b32.xlu1 %v2577_v2, %s3656_s17  ;;  %2618 = vrot.lane.b32.xlu0 %v2610_v30, %s3656_s17  ;;  %v2611_v2 = vmul.f32 %v5178_v25, %v5210_v44  ;;  %v2644_v30 = vmul.f32 %v5257_v59, %v5207_v56 }
 0x597   :  { %v5613_v52 = vpop.permute.xlu1 %1922  ;;  %v5615_v53 = vpop.permute.xlu0 %2082 }
 0x598   :  { %6685 = vst [vmem:[#allocation55_spill] sm:$0xff] %v5613_v52  ;;  %6686 = vst [vmem:[#allocation57_spill] sm:$0xff] %v5615_v53 }
 0x599   :  { %2518 = vrot.lane.b32.xlu1 %v2509_v33, %s3655_s16  ;;  %2622 = vrot.lane.b32.xlu0 %v2612_v22, %s3656_s17  ;;  %v2645_v33 = vmul.f32 %v5257_v59, %v5210_v44  ;;  %v2646_v22 = vmul.f32 %v5257_v59, %v5213_v20 }
 0x59b   :  { %v5623_v36 = vpop.permute.xlu1 %1926  ;;  %v5625_v24 = vpop.permute.xlu0 %2144 }
 0x59c   :  { %6687 = vst [vmem:[#allocation59_spill] sm:$0xff] %v5625_v24 }
 0x59d   :  { %2620 = vrot.lane.b32.xlu1 %v2611_v2, %s3656_s17  ;;  %2652 = vrot.lane.b32.xlu0 %v2644_v30, %s3656_s17  ;;  %v2647_v2 = vmul.f32 0.0, %v5257_v59 }
 0x59f   :  { %v5633_v9 = vpop.permute.xlu1 %1854  ;;  %v5635_v53 = vpop.permute.xlu0 %2178 }
 0x5a0   :  { %6688 = vst [vmem:[#allocation69_spill] sm:$0xff] %v5633_v9  ;;  %6689 = vst [vmem:[#allocation70_spill] sm:$0xff] %v5635_v53 }
 0x5a1   :  { %2654 = vrot.lane.b32.xlu1 %v2645_v33, %s3656_s17  ;;  %2656 = vrot.lane.b32.xlu0 %v2646_v22, %s3656_s17 }
 0x5a3   :  { %v5643_v25 = vpop.permute.xlu1 %1858  ;;  %v5645_v24 = vpop.permute.xlu0 %2109 }
 0x5a4   :  { %6690 = vst [vmem:[#allocation60_spill] sm:$0xff] %v5643_v25  ;;  %6691 = vst [vmem:[#allocation61_spill] sm:$0xff] %v5645_v24 }
 0x5a5   :  { %2658 = vrot.lane.b32.xlu1 %v2647_v2, %s3656_s17 }
 0x5a7   :  { %v5649_v30 = vpop.permute.xlu1 %1956  ;;  %v5651_v53 = vpop.permute.xlu0 %2210 }
 0x5a8   :  { %6692 = vst [vmem:[#allocation62_spill] sm:$0xff] %v5649_v30  ;;  %6693 = vst [vmem:[#allocation63_spill] sm:$0xff] %v5651_v53 }
 0x5ab   :  { %v5653_v19 = vpop.permute.xlu1 %1960  ;;  %v5655_v31 = vpop.permute.xlu0 %2214 }
 0x5ac   :  { %6694 = vst [vmem:[#allocation64_spill] sm:$0xff] %v5653_v19  ;;  %6695 = vst [vmem:[#allocation66_spill] sm:$0xff] %v5655_v31 }
 0x5af   :  { %v5657_v9 = vpop.permute.xlu1 %2022  ;;  %v5659_v33 = vpop.permute.xlu0 %2278 }
 0x5b0   :  { %6696 = vst [vmem:[#allocation71_spill] sm:$0xff] %v5657_v9 }
 0x5b3   :  { %v5661_v22 = vpop.permute.xlu1 %2049  ;;  %v5663_v25 = vpop.permute.xlu0 %2282 }
 0x5b4   :  { %6697 = vst [vmem:[#allocation68_spill] sm:$0xff] %v5661_v22 }
 0x5b7   :  { %v5665_v24 = vpop.permute.xlu1 %2053  ;;  %v5667_v59 = vpop.permute.xlu0 %2312 }
 0x5b8   :  { %6698 = vst [vmem:[#allocation65_spill] sm:$0xff] %v5665_v24  ;;  %6699 = vst [vmem:[#allocation72_spill] sm:$0xff] %v5667_v59 }
 0x5bb   :  { %v5669_v2 = vpop.permute.xlu1 %1990  ;;  %v5671_v35 = vpop.permute.xlu0 %2316 }
 0x5bc   :  { %6700 = vst [vmem:[#allocation67_spill] sm:$0xff] %v5669_v2  ;;  %6701 = vst [vmem:[#allocation27_spill] sm:$0xff] %v5671_v35 }
 0x5bf   :  { %v5673_v53 = vpop.permute.xlu1 %1994  ;;  %v5675_v19 = vpop.permute.xlu0 %2244 }
 0x5c0   :  { %6702 = vst [vmem:[#allocation20_spill] sm:$0xff] %v5673_v53  ;;  %6703 = vst [vmem:[#allocation21_spill] sm:$0xff] %v5675_v19 }
 0x5c3   :  { %v5677_v31 = vpop.permute.xlu1 %2080  ;;  %v5679_v9 = vpop.permute.xlu0 %2248 }
 0x5c4   :  { %6704 = vst [vmem:[#allocation25_spill] sm:$0xff] %v5677_v31  ;;  %6705 = vst [vmem:[#allocation73_spill] sm:$0xff] %v5679_v9  ;;  %v1622_v9 = vsel %vm242_vm0, %v5275_v10, %v5453_v62 }
 0x5c7   :  { %v5681_v23 = vpop.permute.xlu1 %2142  ;;  %v5683_v22 = vpop.permute.xlu0 %2346 }
 0x5c8   :  { %6706 = vst [vmem:[#allocation74_spill] sm:$0xff] %v5683_v22 }
 0x5cb   :  { %v5685_v48 = vpop.permute.xlu1 %2146  ;;  %v5687_v12 = vpop.permute.xlu0 %2350 }
 0x5cc   :  { %6707 = vst [vmem:[#allocation75_spill] sm:$0xff] %v5687_v12  ;;  %v1546_v12 = vmul.f32 0.0, %v5249_v15 }
 0x5ce   :  { %v1629_v7 = vadd.f32 %v1622_v9, %v1546_v12 }
 0x5cf   :  { %v5689_v59 = vpop.permute.xlu1 %2176  ;;  %v5691_v2 = vpop.permute.xlu0 %2414 }
 0x5d0   :  { %6708 = vst [vmem:[#allocation76_spill] sm:$0xff] %v5689_v59  ;;  %v1758_v59 = vsel %vm371_vm1, %v5313_v1, %v5513_v47  ;;  %v5724_v1 = vmul.f32 0.0, %v5283_v34 }
 0x5d1   :  { %v1765_v10 = vadd.f32 %v1758_v59, %v1629_v7  ;;  %v1548_v7 = vmul.f32 %v5249_v15, %v5210_v44  ;;  %v1563_v59 = vmul.f32 %v5269_v14, %v5210_v44 }
 0x5d3   :  { %v5693_v35 = vpop.permute.xlu1 %2180  ;;  %v5695_v53 = vpop.permute.xlu0 %2418 }
 0x5d7   :  { %v5697_v19 = vpop.permute.xlu1 %2107  ;;  %v5699_v31 = vpop.permute.xlu0 %2448 }
 0x5d8   :  { %6709 = vst [vmem:[#allocation77_spill] sm:$0xff] %v5697_v19  ;;  %6710 = vst [vmem:[#allocation78_spill] sm:$0xff] %v5699_v31  ;;  %v1894_v19 = vsel %vm500_vm2, %v5365_v6, %v5593_v58  ;;  %v1547_v6 = vmul.f32 %v5249_v15, %v5207_v56 }
 0x5db   :  { %v5704_v22 = vpop.permute.xlu1 %2111  ;;  %v5706_v52 = vpop.permute.xlu0 %2452 }
 0x5dc   :  { %6711 = vst [vmem:[#allocation79_spill] sm:$0xff] %v5704_v22  ;;  %6712 = vst [vmem:[#allocation80_spill] sm:$0xff] %v5706_v52  ;;  %v1549_v22 = vmul.f32 %v5249_v15, %v5213_v20  ;;  %v1901_v52 = vadd.f32 %v1894_v19, %v1765_v10  ;;  %v1562_v19 = vmul.f32 %v5269_v14, %v5207_v56 }
 0x5dd   :  { %v1564_v10 = vmul.f32 %v5269_v14, %v5213_v20  ;;  %v1623_v15 = vsel %vm242_vm0, %v5453_v62, %v5455_v38  ;;  %v1656_v14 = vsel %vm242_vm0, %v5287_v0, %v5473_v3  ;;  %v1579_v62 = vmul.f32 %v5261_v60, %v5213_v20 }
 0x5de   :  { %v1632_v57 = vadd.f32 %v5463_v4, %v1549_v22  ;;  %v1576_v22 = vmul.f32 0.0, %v5261_v60  ;;  %v2032_v58 = vadd.f32 %v5565_v40, %v1901_v52  ;;  %v1593_v52 = vmul.f32 %v5283_v34, %v5210_v44 }
 0x5df   :  { %v5715_v31 = vpop.permute.xlu1 %2212  ;;  %v5717_v30 = vpop.permute.xlu0 %2380  ;;  %v1594_v0 = vmul.f32 %v5283_v34, %v5213_v20  ;;  %v1630_v40 = vadd.f32 %v1623_v15, %v1547_v6  ;;  %v2152_v20 = vsel %vm758_vm7, %v5685_v48, %v5431_v55  ;;  %v1760_v55 = vsel %vm371_vm1, %v5487_v28, %v5523_v45 }
 0x5e0   :  { %6713 = vst [vmem:[#allocation81_spill] sm:$0xff] %v5715_v31  ;;  %6714 = vst [vmem:[#allocation82_spill] sm:$0xff] %v5717_v30  ;;  %v1768_v30 = vadd.f32 %v5523_v45, %v1632_v57  ;;  %v1624_v31 = vsel %vm242_vm0, %v5455_v38, %v5463_v4  ;;  %v1657_v57 = vsel %vm242_vm0, %v5473_v3, %v5465_v5 }
 0x5e1   :  { %v1592_v38 = vmul.f32 %v5283_v34, %v5207_v56  ;;  %v2157_v3 = vadd.f32 %v5681_v23, %v2032_v58  ;;  %v1631_v29 = vadd.f32 %v1624_v31, %v1548_v7  ;;  %v1666_v34 = vadd.f32 %v5485_v63, %v1564_v10 }
 0x5e2   :  { %v1904_v16 = vadd.f32 %v5603_v26, %v1768_v30  ;;  %v1690_v30 = vsel %vm242_vm0, %v5301_v11, %v5495_v41  ;;  %v1759_v11 = vsel %vm371_vm1, %v5513_v47, %v5487_v28  ;;  %v1792_v47 = vsel %vm371_vm1, %v5327_v8, %v5533_v43 }
 0x5e3   :  { %v5726_v12 = vpop.permute.xlu1 %2280  ;;  %v5728_v9 = vpop.permute.xlu0 %2384  ;;  %v1697_v6 = vadd.f32 %v1690_v30, %v1576_v22  ;;  %v1766_v10 = vadd.f32 %v1759_v11, %v1630_v40  ;;  %v1793_v22 = vsel %vm371_vm1, %v5533_v43, %v5497_v18  ;;  %v1767_v15 = vadd.f32 %v1760_v55, %v1631_v29  ;;  %v6723_v11 = vld [vmem:[#allocation39_spill] sm:$0xff] }
 0x5e4   :  { %6715 = vst [vmem:[#allocation83_spill] sm:$0xff] %v5726_v12  ;;  %6716 = vst [vmem:[#allocation84_spill] sm:$0xff] %v5728_v9  ;;  %v1577_v9 = vmul.f32 %v5261_v60, %v5207_v56  ;;  %v1578_v12 = vmul.f32 %v5261_v60, %v5210_v44  ;;  %v1658_v60 = vsel %vm242_vm0, %v5465_v5, %v5485_v63 }
 0x5e5   :  { %v1664_v56 = vadd.f32 %v1657_v57, %v1562_v19  ;;  %v1691_v44 = vsel %vm242_vm0, %v5495_v41, %v5475_v61  ;;  %v1692_v5 = vsel %vm242_vm0, %v5475_v61, %v5503_v32  ;;  %v1665_v41 = vadd.f32 %v1658_v60, %v1563_v59 }
 0x5e6   :  { %v2293_v63 = vadd.f32 %v5659_v33, %v2157_v3  ;;  %v1698_v7 = vadd.f32 %v1691_v44, %v1577_v9  ;;  %v1700_v61 = vadd.f32 %v5503_v32, %v1579_v62  ;;  %v1699_v19 = vadd.f32 %v1692_v5, %v1578_v12  ;;  %v6719_v3 = vld [vmem:[#allocation65_spill] sm:$0xff]  ;;  %v6720_v44 = vld [vmem:[#allocation51_spill] sm:$0xff]  ;;  %v6722_v5 = vld [vmem:[#allocation54_spill] sm:$0xff] }
 0x5e7   :  { %v5762_v24 = vpop.permute.xlu1 %2314  ;;  %v5764_v4 = vpop.permute.xlu0 %2482  ;;  %v1794_v28 = vsel %vm371_vm1, %v5497_v18, %v5543_v42  ;;  %v1802_v32 = vadd.f32 %v5543_v42, %v1666_v34  ;;  %v1724_v8 = vsel %vm242_vm0, %v5339_v50, %v5553_v49  ;;  %v2288_v43 = vsel %vm887_vm12, %v5663_v25, %v5305_v51  ;;  %v6721_v34 = vld [vmem:[#allocation47_spill] sm:$0xff] }
 0x5e8   :  { %6717 = vst [vmem:[#allocation85_spill] sm:$0xff] %v5764_v4  ;;  %v1663_v4 = vadd.f32 %v1656_v14, %v1561_v17  ;;  %v2035_v17 = vadd.f32 %v5575_v13, %v1904_v16  ;;  %v2429_v59 = vadd.f32 %v5691_v2, %v2293_v63  ;;  %v2424_v29 = vsel %vm1016_vm14, %v5695_v53, %v5355_v46 }
 0x5e9   :  { %v1800_v42 = vadd.f32 %v1793_v22, %v1664_v56  ;;  %v1725_v50 = vsel %vm242_vm0, %v5553_v49, %v5505_v54  ;;  %v1938_v9 = vadd.f32 %v5623_v36, %v1802_v32  ;;  %v1801_v57 = vadd.f32 %v1794_v28, %v1665_v41  ;;  %v6724_v22 = vld [vmem:[#allocation62_spill] sm:$0xff] }
 0x5ea   :  { %v2160_v16 = vadd.f32 %v2152_v20, %v2035_v17  ;;  %v1799_v12 = vadd.f32 %v1792_v47, %v1663_v4  ;;  %v1731_v62 = vadd.f32 %v1724_v8, %v5724_v1  ;;  %v1726_v51 = vsel %vm242_vm0, %v5505_v54, %v5563_v39  ;;  %v6718_v4 = vld [vmem:[#allocation46_spill] sm:$0xff] }
 0x5eb   :  { %v5793_v31 = vpop.permute.xlu1 %2246  ;;  %v5795_v58 = vpop.permute.xlu0 %2486  ;;  %v2186_v46 = vsel %vm758_vm7, %v5693_v35, %v5443_v37  ;;  %v1826_v49 = vsel %vm371_vm1, %v5353_v27, %v5573_v21  ;;  %v1827_v1 = vsel %vm371_vm1, %v5573_v21, %v6718_v4  ;;  %v2064_v60 = vadd.f32 %v6719_v3, %v1938_v9  ;;  %v6731_v9 = vld [vmem:[#allocation33_spill] sm:$0xff] }
 0x5ec   :  { %v2296_v14 = vadd.f32 %v2288_v43, %v2160_v16  ;;  %v1732_v37 = vadd.f32 %v1725_v50, %v1592_v38  ;;  %v1828_v20 = vsel %vm371_vm1, %v6718_v4, %v6720_v44  ;;  %v1895_v27 = vsel %vm500_vm2, %v6722_v5, %v6721_v34  ;;  %v6734_v4 = vld [vmem:[#allocation38_spill] sm:$0xff] }
 0x5ed   :  { %v1733_v17 = vadd.f32 %v1726_v51, %v1593_v52  ;;  %v1734_v41 = vadd.f32 %v5563_v39, %v1594_v0  ;;  %v2194_v55 = vadd.f32 %v2186_v46, %v2064_v60  ;;  %v1833_v47 = vadd.f32 %v1826_v49, %v1697_v6  ;;  %v6726_v52 = vld [vmem:[#allocation55_spill] sm:$0xff]  ;;  %v6733_v49 = vld [vmem:[#allocation69_spill] sm:$0xff] }
 0x5ee   :  { %v2432_v30 = vadd.f32 %v2424_v29, %v2296_v14  ;;  %v1834_v38 = vadd.f32 %v1827_v1, %v1698_v7  ;;  %v1896_v16 = vsel %vm500_vm2, %v6721_v34, %v5603_v26  ;;  %v1835_v32 = vadd.f32 %v1828_v20, %v1699_v19  ;;  %v6727_v29 = vld [vmem:[#allocation35_spill] sm:$0xff]  ;;  %v6728_v26 = vld [vmem:[#allocation48_spill] sm:$0xff]  ;;  %v6735_v20 = vld [vmem:[#allocation50_spill] sm:$0xff] }
 0x5ef   :  { %v5816_v45 = vpop.permute.xlu1 %2348  ;;  %v5818_v40 = vpop.permute.xlu0 %2550  ;;  %v1836_v8 = vadd.f32 %v6720_v44, %v1700_v61  ;;  %v1902_v43 = vadd.f32 %v1895_v27, %v1766_v10  ;;  %v1928_v39 = vsel %vm500_vm2, %v6727_v29, %v6726_v52  ;;  %v1929_v7 = vsel %vm500_vm2, %v6726_v52, %v6728_v26  ;;  %v6729_v19 = vld [vmem:[#allocation32_spill] sm:$0xff]  ;;  %v6730_v10 = vld [vmem:[#allocation27_spill] sm:$0xff] }
 0x5f0   :  { %v5827_v18 = vadd.f32 %v5818_v40, %v2429_v59  ;;  %v6725_v59 = vld [vmem:[#allocation42_spill] sm:$0xff]  ;;  %v1930_v61 = vsel %vm500_vm2, %v6728_v26, %v5623_v36  ;;  %v2322_v50 = vsel %vm887_vm12, %v6730_v10, %v6729_v19  ;;  %v6732_v14 = vld [vmem:[#allocation80_spill] sm:$0xff]  ;;  %v1903_v46 = vadd.f32 %v1896_v16, %v1767_v15  ;;  %v6737_v27 = vld [vmem:[#allocation71_spill] sm:$0xff] }
 0x5f1   :  { %v1962_v28 = vsel %vm500_vm2, %v6725_v59, %v6724_v22  ;;  %v2458_v51 = vsel %vm1016_vm14, %v6732_v14, %v6731_v9  ;;  %v1860_v1 = vsel %vm371_vm1, %v6734_v4, %v6733_v49  ;;  %v1935_v44 = vadd.f32 %v1928_v39, %v1799_v12  ;;  %v6736_v34 = vld [vmem:[#allocation64_spill] sm:$0xff]  ;;  %v6740_v29 = vld [vmem:[#allocation59_spill] sm:$0xff]  ;;  %v6742_v26 = vld [vmem:[#allocation58_spill] sm:$0xff] }
 0x5f2   :  { %2675 = vrot.lane.b32.xlu0 %v5827_v18, %s3658_s1  ;;  %v1969_v60 = vadd.f32 %v1962_v28, %v1833_v47  ;;  %v1861_v36 = vsel %vm371_vm1, %v6733_v49, %v6735_v20  ;;  %v1972_v5 = vadd.f32 %v6736_v34, %v1836_v8  ;;  %v1937_v59 = vadd.f32 %v1930_v61, %v1801_v57  ;;  %v6738_v15 = vld [vmem:[#allocation60_spill] sm:$0xff]  ;;  %v6744_v9 = vld [vmem:[#allocation57_spill] sm:$0xff] }
 0x5f3   :  { %v5849_v54 = vpop.permute.xlu1 %2416  ;;  %v5851_v56 = vpop.permute.xlu0 %2554  ;;  %v1862_v16 = vsel %vm371_vm1, %v6735_v20, %v6738_v15  ;;  %v6739_v28 = vld [vmem:[#allocation52_spill] sm:$0xff]  ;;  %v1868_v39 = vadd.f32 %v1861_v36, %v1732_v37  ;;  %v6749_v36 = vld [vmem:[#allocation63_spill] sm:$0xff]  ;;  %vm2683_vm0 = vcmask 154624  }
 0x5f4   :  { %v2560_v21 = vsel %vm1145_vm15, %v5851_v56, %v6723_v11  ;;  %v2027_v11 = vsel %vm629_vm3, %v6737_v27, %v5575_v13  ;;  %v1963_v8 = vsel %vm500_vm2, %v6724_v22, %v6739_v28  ;;  %v2151_v13 = vsel %vm758_vm7, %v6740_v29, %v5685_v48  ;;  %v6745_v22 = vld [vmem:[#allocation83_spill] sm:$0xff]  ;;  %v6746_v37 = vld [vmem:[#allocation68_spill] sm:$0xff] }
 0x5f5   :  { %v5863_v63 = vadd.f32 %v2560_v21, %v2432_v30  ;;  %v2330_v30 = vadd.f32 %v2322_v50, %v2194_v55  ;;  %v1936_v21 = vadd.f32 %v1929_v7, %v1800_v42  ;;  %v1867_v55 = vadd.f32 %v1860_v1, %v1731_v62  ;;  %v6741_v42 = vld [vmem:[#allocation43_spill] sm:$0xff] }
 0x5f6   :  { %v2090_v7 = vadd.f32 %v6742_v26, %v1969_v60  ;;  %v2034_v61 = vadd.f32 %v2027_v11, %v1903_v46  ;;  %v1869_v50 = vadd.f32 %v1862_v16, %v1733_v17  ;;  %v1870_v62 = vadd.f32 %v6738_v15, %v1734_v41  ;;  %v6747_v41 = vld [vmem:[#allocation49_spill] sm:$0xff]  ;;  %v6751_v11 = vld [vmem:[#allocation66_spill] sm:$0xff]  ;;  %v6752_v16 = vld [vmem:[#allocation76_spill] sm:$0xff] }
 0x5f7   :  { %v5875_v0 = vpop.permute.xlu1 %2450  ;;  %2681 = vrot.lane.b32.xlu1 %v5863_v63, %s3658_s1  ;;  %v5879_v6 = vpop.permute.xlu0 %2584  ;;  %v2466_v52 = vadd.f32 %v2458_v51, %v2330_v30  ;;  %v2093_v51 = vadd.f32 %v6744_v9, %v1972_v5  ;;  %v2287_v49 = vsel %vm887_vm12, %v6745_v22, %v5663_v25  ;;  %v1970_v48 = vadd.f32 %v1963_v8, %v1834_v38  ;;  %v6748_v25 = vld [vmem:[#allocation53_spill] sm:$0xff]  ;;  %v6750_v5 = vld [vmem:[#allocation31_spill] sm:$0xff] }
 0x5f8   :  { %v1964_v4 = vsel %vm500_vm2, %v6739_v28, %v6736_v34  ;;  %v2061_v1 = vadd.f32 %v6746_v37, %v1935_v44  ;;  %v2159_v60 = vadd.f32 %v2151_v13, %v2034_v61  ;;  %v2026_v30 = vsel %vm629_vm3, %v6747_v41, %v6737_v27  ;;  %v6753_v13 = vld [vmem:[#allocation67_spill] sm:$0xff] }
 0x5f9   :  { %v2055_v38 = vsel %vm629_vm3, %v6746_v37, %v6748_v25  ;;  %v2056_v44 = vsel %vm629_vm3, %v6748_v25, %v6719_v3  ;;  %v2423_v20 = vsel %vm1016_vm14, %v5849_v54, %v5695_v53  ;;  %v2225_v34 = vadd.f32 %v6749_v36, %v2090_v7  ;;  %v6755_v3 = vld [vmem:[#allocation56_spill] sm:$0xff] }
 0x5fa   :  { %v2220_v15 = vsel %vm758_vm7, %v6751_v11, %v6750_v5  ;;  %v2191_v27 = vadd.f32 %v6752_v16, %v2061_v1  ;;  %v1971_v28 = vadd.f32 %v1964_v4, %v1835_v32  ;;  %v1997_v61 = vsel %vm500_vm2, %v6753_v13, %v6755_v3  ;;  %v6756_v5 = vld [vmem:[#allocation20_spill] sm:$0xff]  ;;  %v6758_v4 = vld [vmem:[#allocation70_spill] sm:$0xff] }
 0x5fb   :  { %v5906_v47 = vpop.permute.xlu1 %2382  ;;  %v5908_v12 = vpop.permute.xlu0 %2588  ;;  %v2228_v8 = vadd.f32 %v2220_v15, %v2093_v51  ;;  %v2033_v53 = vadd.f32 %v2026_v30, %v1902_v43  ;;  %v2062_v37 = vadd.f32 %v2055_v38, %v1936_v21  ;;  %v2063_v7 = vadd.f32 %v2056_v44, %v1937_v59  ;;  %v6757_v51 = vld [vmem:[#allocation25_spill] sm:$0xff]  ;;  %v6761_v15 = vld [vmem:[#allocation75_spill] sm:$0xff] }
 0x5fc   :  { %v2594_v57 = vsel %vm1145_vm15, %v5908_v12, %v6741_v42  ;;  %v6754_v42 = vld [vmem:[#allocation41_spill] sm:$0xff]  ;;  %v1998_v32 = vsel %vm500_vm2, %v6755_v3, %v6756_v5  ;;  %v2185_v1 = vsel %vm758_vm7, %v6758_v4, %v5693_v35  ;;  %v2004_v59 = vadd.f32 %v1997_v61, %v1868_v39 }
 0x5fd   :  { %v5920_v19 = vadd.f32 %v2594_v57, %v2466_v52  ;;  %v2295_v52 = vadd.f32 %v2287_v49, %v2159_v60  ;;  %v1996_v57 = vsel %vm500_vm2, %v6754_v42, %v6753_v13  ;;  %v2084_v49 = vsel %vm629_vm3, %v6742_v26, %v6757_v51  ;;  %v6759_v60 = vld [vmem:[#allocation72_spill] sm:$0xff] }
 0x5fe   :  { %v2003_v21 = vadd.f32 %v1996_v57, %v1867_v55  ;;  %v2327_v30 = vadd.f32 %v6759_v60, %v2191_v27  ;;  %v5977_v44 = vadd.f32 %v6756_v5, %v1870_v62  ;;  %v2085_v26 = vsel %vm629_vm3, %v6757_v51, %v6744_v9  ;;  %v6764_v5 = vld [vmem:[#allocation74_spill] sm:$0xff] }
 0x5ff   :  { %6743 = vst [vmem:[#allocation46_spill] sm:$0xff] %v5920_v19  ;;  %v5931_v46 = vpop.permute.xlu1 %2484  ;;  %2774 = vrot.lane.b32.xlu1 %v5920_v19, %s3658_s1  ;;  %v5935_v17 = vpop.permute.xlu0 %2516  ;;  %v2431_v41 = vadd.f32 %v2423_v20, %v2295_v52  ;;  %v6760_v20 = vld [vmem:[#allocation36_spill] sm:$0xff]  ;;  %v2005_v55 = vadd.f32 %v1998_v32, %v1869_v50  ;;  %v2091_v39 = vadd.f32 %v2084_v49, %v1970_v48  ;;  %v6762_v52 = vld [vmem:[#allocation78_spill] sm:$0xff]  ;;  %v6766_v32 = vld [vmem:[#allocation77_spill] sm:$0xff] }
 0x600   :  { %v2356_v35 = vsel %vm887_vm12, %v6761_v15, %v6760_v20  ;;  %v2193_v27 = vadd.f32 %v2185_v1, %v2063_v7  ;;  %v2463_v13 = vadd.f32 %v6762_v52, %v2327_v30  ;;  %v2150_v9 = vsel %vm758_vm7, %v5681_v23, %v6740_v29  ;;  %v6765_v29 = vld [vmem:[#allocation61_spill] sm:$0xff] }
 0x601   :  { %v2184_v57 = vsel %vm758_vm7, %v6752_v16, %v6758_v4  ;;  %v2457_v48 = vsel %vm1016_vm14, %v5875_v0, %v6732_v14  ;;  %v2092_v3 = vadd.f32 %v2085_v26, %v1971_v28  ;;  %v2364_v61 = vadd.f32 %v2356_v35, %v2228_v8  ;;  %v6767_v30 = vld [vmem:[#allocation81_spill] sm:$0xff] }
 0x602   :  { %v2361_v23 = vadd.f32 %v6764_v5, %v2225_v34  ;;  %v2113_v16 = vsel %vm629_vm3, %v6766_v32, %v6765_v29  ;;  %v2286_v51 = vsel %vm887_vm12, %v5659_v33, %v6745_v22  ;;  %v2158_v14 = vadd.f32 %v2150_v9, %v2033_v53 }
 0x603   :  { %v2553_v25 = vpop.permute.xlu1 %2552  ;;  %v5960_v19 = vpop.permute.xlu0 %2520  ;;  %v2192_v28 = vadd.f32 %v2184_v57, %v2062_v37  ;;  %v2219_v26 = vsel %vm758_vm7, %v6767_v30, %v6751_v11  ;;  %v2422_v33 = vsel %vm1016_vm14, %v5691_v2, %v5849_v54  ;;  %v2120_v53 = vadd.f32 %v2113_v16, %v2004_v59 }
 0x604   :  { %v2559_v43 = vsel %vm1145_vm15, %v2553_v25, %v5851_v56  ;;  %v2321_v56 = vsel %vm887_vm12, %v5762_v24, %v6730_v10  ;;  %v6763_v10 = vld [vmem:[#allocation40_spill] sm:$0xff]  ;;  %v2294_v37 = vadd.f32 %v2286_v51, %v2158_v14  ;;  %v2320_v11 = vsel %vm887_vm12, %v6759_v60, %v5762_v24  ;;  %v6771_v60 = vld [vmem:[#allocation21_spill] sm:$0xff] }
 0x605   :  { %v5974_v38 = vadd.f32 %v2559_v43, %v2431_v41  ;;  %v2492_v50 = vsel %vm1016_vm14, %v5795_v58, %v6763_v10  ;;  %v2329_v7 = vadd.f32 %v2321_v56, %v2193_v27  ;;  %v6006_v41 = vadd.f32 %v5879_v6, %v2463_v13  ;;  %v6769_v56 = vld [vmem:[#allocation85_spill] sm:$0xff] }
 0x606   :  { %v2500_v8 = vadd.f32 %v2492_v50, %v2364_v61  ;;  %v2119_v43 = vadd.f32 %v6766_v32, %v2003_v21  ;;  %v2218_v21 = vsel %vm758_vm7, %v6749_v36, %v6767_v30  ;;  %v2355_v2 = vsel %vm887_vm12, %v5816_v45, %v6761_v15  ;;  %v6770_v36 = vld [vmem:[#allocation79_spill] sm:$0xff]  ;;  %v6773_v32 = vld [vmem:[#allocation82_spill] sm:$0xff] }
 0x607   :  { %v2587_v42 = vpop.permute.xlu1 %2586  ;;  %2679 = vrot.lane.b32.xlu0 %v5974_v38, %s3658_s1  ;;  %v5991_v62 = vpop.permute.xlu0 %2618  ;;  %v2465_v4 = vadd.f32 %v2457_v48, %v2329_v7  ;;  %v2558_v54 = vsel %vm1145_vm15, %v5818_v40, %v2553_v25  ;;  %v2227_v59 = vadd.f32 %v2219_v26, %v2092_v3  ;;  %v2497_v27 = vadd.f32 %v6769_v56, %v2361_v23 }
 0x608   :  { %v2593_v49 = vsel %vm1145_vm15, %v2587_v42, %v5908_v12  ;;  %v6768_v12 = vld [vmem:[#allocation45_spill] sm:$0xff]  ;;  %v2430_v13 = vadd.f32 %v2422_v33, %v2294_v37  ;;  %v2114_v24 = vsel %vm629_vm3, %v6765_v29, %v6770_v36  ;;  %v2259_v15 = vadd.f32 %v6771_v60, %v2119_v43 }
 0x609   :  { %v6028_v20 = vadd.f32 %v2593_v49, %v2465_v4  ;;  %v2456_v40 = vsel %vm1016_vm14, %v6762_v52, %v5875_v0  ;;  %v2491_v25 = vsel %vm1016_vm14, %v5931_v46, %v5795_v58  ;;  %v2328_v57 = vadd.f32 %v2320_v11, %v2192_v28 }
 0x60a   :  { %v2363_v10 = vadd.f32 %v2355_v2, %v2227_v59  ;;  %v6058_v50 = vadd.f32 %v2558_v54, %v2430_v13  ;;  %v6061_v48 = vadd.f32 %v5991_v62, %v2497_v27  ;;  %v2226_v61 = vadd.f32 %v2218_v21, %v2091_v39  ;;  %v6776_v21 = vld [vmem:[#allocation37_spill] sm:$0xff]  ;;  %v6777_v27 = vld [vmem:[#allocation44_spill] sm:$0xff] }
 0x60b   :  { %v2519_v1 = vpop.permute.xlu1 %2518  ;;  %2768 = vrot.lane.b32.xlu0 %v6006_v41, %s3658_s1  ;;  %v2623_v34 = vpop.permute.xlu0 %2622  ;;  %v2354_v7 = vsel %vm887_vm12, %v6764_v5, %v5816_v45  ;;  %v2592_v0 = vsel %vm1145_vm15, %v5879_v6, %v2587_v42  ;;  %v2252_v58 = vsel %vm758_vm7, %v6771_v60, %v5793_v31  ;;  %v2464_v23 = vadd.f32 %v2456_v40, %v2328_v57  ;;  %v6772_v5 = vld [vmem:[#allocation73_spill] sm:$0xff] }
 0x60c   :  { %v2628_v22 = vsel %vm1145_vm15, %v2623_v34, %v6768_v12  ;;  %v2499_v29 = vadd.f32 %v2491_v25, %v2363_v10  ;;  %v2121_v39 = vadd.f32 %v2114_v24, %v2005_v55  ;;  %v2122_v45 = vadd.f32 %v6770_v36, %v5977_v44 }
 0x60d   :  { %v6030_v35 = vadd.f32 %v2628_v22, %v2500_v8  ;;  %v2253_v6 = vsel %vm758_vm7, %v5793_v31, %v6772_v5  ;;  %v2490_v42 = vsel %vm1016_vm14, %v6769_v56, %v5931_v46  ;;  %v2395_v16 = vadd.f32 %v6773_v32, %v2259_v15  ;;  %v6774_v8 = vld [vmem:[#allocation84_spill] sm:$0xff] }
 0x60e   :  { %v2362_v51 = vadd.f32 %v2354_v7, %v2226_v61  ;;  %v6085_v49 = vadd.f32 %v2592_v0, %v2464_v23  ;;  %v2260_v55 = vadd.f32 %v2252_v58, %v2120_v53  ;;  %v2388_v44 = vsel %vm887_vm12, %v6773_v32, %v5906_v47  ;;  %v6775_v53 = vld [vmem:[#allocation34_spill] sm:$0xff] }
 0x60f   :  { %v2621_v9 = vpop.permute.xlu1 %2620  ;;  %2772 = vrot.lane.b32.xlu0 %v6028_v20, %s3658_s1  ;;  %2866 = vrot.lane.b32.xlu1 %v6030_v35, %s3658_s1  ;;  %v2653_v3 = vpop.permute.xlu0 %2652  ;;  %v2389_v31 = vsel %vm887_vm12, %v5906_v47, %v6774_v8  ;;  %v2261_v4 = vadd.f32 %v2253_v6, %v2121_v39  ;;  %v2531_v43 = vadd.f32 %v5935_v17, %v2395_v16 }
 0x610   :  { %v2627_v52 = vsel %vm1145_vm15, %v2621_v9, %v2623_v34  ;;  %v2626_v46 = vsel %vm1145_vm15, %v5991_v62, %v2621_v9  ;;  %v2498_v34 = vadd.f32 %v2490_v42, %v2362_v51  ;;  %v2524_v26 = vsel %vm1016_vm14, %v5935_v17, %v2519_v1 }
 0x611   :  { %v6087_v14 = vadd.f32 %v2627_v52, %v2499_v29  ;;  %v2525_v47 = vsel %vm1016_vm14, %v2519_v1, %v5960_v19  ;;  %v2396_v33 = vadd.f32 %v2388_v44, %v2260_v55  ;;  %v2397_v12 = vadd.f32 %v2389_v31, %v2261_v4 }
 0x612   :  { %v6106_v62 = vadd.f32 %v2626_v46, %v2498_v34  ;;  %v6108_v22 = vadd.f32 %v2653_v3, %v2531_v43  ;;  %v2254_v37 = vsel %vm758_vm7, %v6772_v5, %v6775_v53  ;;  %v2390_v11 = vsel %vm887_vm12, %v6774_v8, %v6776_v21 }
 0x613   :  { %2860 = vrot.lane.b32.xlu0 %v6061_v48, %s3658_s1  ;;  %2677 = vrot.lane.b32.xlu1 %v6058_v50, %s3658_s1  ;;  %v2655_v28 = vpop.permute.xlu1 %2654  ;;  %v2657_v30 = vpop.permute.xlu0 %2656  ;;  %v2262_v54 = vadd.f32 %v2254_v37, %v2122_v45  ;;  %v2532_v1 = vadd.f32 %v2524_v26, %v2396_v33  ;;  %v2533_v59 = vadd.f32 %v2525_v47, %v2397_v12 }
 0x614   :  { %v2660_v2 = vsel %vm1145_vm15, %v2653_v3, %v2655_v28  ;;  %v2661_v17 = vsel %vm1145_vm15, %v2655_v28, %v2657_v30  ;;  %v2526_v13 = vsel %vm1016_vm14, %v5960_v19, %v6777_v27 }
 0x615   :  { %v2398_v9 = vadd.f32 %v2390_v11, %v2262_v54  ;;  %v6125_v36 = vadd.f32 %v2660_v2, %v2532_v1  ;;  %v6127_v24 = vadd.f32 %v2661_v17, %v2533_v59 }
 0x617   :  { %2770 = vrot.lane.b32.xlu1 %v6085_v49, %s3658_s1  ;;  %2864 = vrot.lane.b32.xlu0 %v6087_v14, %s3658_s1  ;;  %v2659_v56 = vpop.permute.xlu1 %2658  ;;  %v2534_v15 = vadd.f32 %v2526_v13, %v2398_v9 }
 0x618   :  { %v2662_v60 = vsel %vm1145_vm15, %v2657_v30, %v2659_v56 }
 0x619   :  { %v6134_v40 = vadd.f32 %v2662_v60, %v2534_v15  ;;  %v6778_v15 = vld [vmem:[#allocation46_spill] sm:$0xff] }
 0x61b   :  { %2862 = vrot.lane.b32.xlu1 %v6106_v62, %s3658_s1  ;;  %2952 = vrot.lane.b32.xlu0 %v6108_v22, %s3658_s1 }
 0x61f   :  { %2954 = vrot.lane.b32.xlu1 %v6125_v36, %s3658_s1  ;;  %2956 = vrot.lane.b32.xlu0 %v6127_v24, %s3658_s1 }
 0x623   :  { %2958 = vrot.lane.b32.xlu1 %v6134_v40, %s3658_s1 }
 0x664   :  { %v2676_v19 = vpop.permute.xlu0 %2675 }
 0x669   :  { %v2682_v25 = vpop.permute.xlu1 %2681 }
 0x671   :  { %v2775_v10 = vpop.permute.xlu1 %2774 }
 0x679   :  { %v2680_v57 = vpop.permute.xlu0 %2679 }
 0x67a   :  { %v2686_v45 = vsel %vm2683_vm0, %v2680_v57, %v2682_v25 }
 0x67b   :  { %v2692_v32 = vrot.slane %v2686_v45, 4 }
 0x67d   :  { %v2769_v3 = vpop.permute.xlu0 %2768 }
 0x681   :  { %v2867_v61 = vpop.permute.xlu1 %2866  ;;  %v2773_v7 = vpop.permute.xlu0 %2772 }
 0x682   :  { %v2778_v51 = vsel %vm2683_vm0, %v2773_v7, %v2775_v10 }
 0x683   :  { %v2784_v44 = vrot.slane %v2778_v51, 4 }
 0x685   :  { %v2678_v0 = vpop.permute.xlu1 %2677  ;;  %v2861_v52 = vpop.permute.xlu0 %2860 }
 0x686   :  { %v2684_v58 = vsel %vm2683_vm0, %v2676_v19, %v2678_v0  ;;  %v2685_v23 = vsel %vm2683_vm0, %v2678_v0, %v2680_v57 }
 0x687   :  { %v2690_v29 = vrot.slane %v2684_v58, 4  ;;  %v2691_v39 = vrot.slane %v2685_v23, 4 }
 0x689   :  { %v2771_v5 = vpop.permute.xlu1 %2770  ;;  %2696 = vrot.lane.b32.xlu0 %v2690_v29, %s3652_s13  ;;  %2698 = vrot.lane.b32.xlu1 %v2691_v39, %s3652_s13  ;;  %v2865_v6 = vpop.permute.xlu0 %2864 }
 0x68a   :  { %v2776_v42 = vsel %vm2683_vm0, %v2769_v3, %v2771_v5  ;;  %v2777_v28 = vsel %vm2683_vm0, %v2771_v5, %v2773_v7  ;;  %v2870_v26 = vsel %vm2683_vm0, %v2865_v6, %v2867_v61 }
 0x68b   :  { %v2782_v16 = vrot.slane %v2776_v42, 4  ;;  %v2783_v8 = vrot.slane %v2777_v28, 4  ;;  %v2876_v53 = vrot.slane %v2870_v26, 4 }
 0x68d   :  { %v2863_v55 = vpop.permute.xlu1 %2862  ;;  %2700 = vrot.lane.b32.xlu0 %v2692_v32, %s3652_s13  ;;  %2788 = vrot.lane.b32.xlu1 %v2782_v16, %s3652_s13  ;;  %v2953_v31 = vpop.permute.xlu0 %2952 }
 0x68e   :  { %v2868_v46 = vsel %vm2683_vm0, %v2861_v52, %v2863_v55  ;;  %v2869_v4 = vsel %vm2683_vm0, %v2863_v55, %v2865_v6 }
 0x68f   :  { %v2874_v43 = vrot.slane %v2868_v46, 4  ;;  %v2875_v30 = vrot.slane %v2869_v4, 4 }
 0x691   :  { %v2955_v34 = vpop.permute.xlu1 %2954  ;;  %2792 = vrot.lane.b32.xlu1 %v2784_v44, %s3652_s13  ;;  %2790 = vrot.lane.b32.xlu0 %v2783_v8, %s3652_s13  ;;  %v2957_v33 = vpop.permute.xlu0 %2956 }
 0x692   :  { %v2960_v47 = vsel %vm2683_vm0, %v2953_v31, %v2955_v34  ;;  %v2961_v21 = vsel %vm2683_vm0, %v2955_v34, %v2957_v33 }
 0x693   :  { %v2966_v37 = vrot.slane %v2960_v47, 4  ;;  %v2967_v2 = vrot.slane %v2961_v21, 4 }
 0x695   :  { %v2959_v12 = vpop.permute.xlu1 %2958  ;;  %2880 = vrot.lane.b32.xlu0 %v2874_v43, %s3652_s13  ;;  %2882 = vrot.lane.b32.xlu1 %v2875_v30, %s3652_s13 }
 0x696   :  { %v2962_v11 = vsel %vm2683_vm0, %v2957_v33, %v2959_v12 }
 0x697   :  { %v2968_v17 = vrot.slane %v2962_v11, 4 }
 0x699   :  { %2884 = vrot.lane.b32.xlu0 %v2876_v53, %s3652_s13  ;;  %2972 = vrot.lane.b32.xlu1 %v2966_v37, %s3652_s13 }
 0x69d   :  { %2976 = vrot.lane.b32.xlu1 %v2968_v17, %s3652_s13  ;;  %2974 = vrot.lane.b32.xlu0 %v2967_v2, %s3652_s13 }
 0x6fb   :  { %v2699_v54 = vpop.permute.xlu1 %2698  ;;  %v2697_v1 = vpop.permute.xlu0 %2696 }
 0x6fc   :  { %v6163_v59 = vadd.f32 %v2697_v1, %v5827_v18  ;;  %v2702_v7 = vsel %vm629_vm3, %v2697_v1, %v2699_v54 }
 0x6fe   :  { %2716 = vrot.lane.b32.xlu0 %v6163_v59, %s3658_s1 }
 0x6ff   :  { %v2789_v56 = vpop.permute.xlu1 %2788  ;;  %v2701_v27 = vpop.permute.xlu0 %2700 }
 0x700   :  { %v6168_v13 = vadd.f32 %v2789_v56, %v6006_v41  ;;  %v6171_v9 = vadd.f32 %v2701_v27, %v5863_v63  ;;  %v2703_v0 = vsel %vm629_vm3, %v2699_v54, %v2701_v27 }
 0x701   :  { %v6203_v52 = vadd.f32 %v2703_v0, %v5974_v38 }
 0x702   :  { %2808 = vrot.lane.b32.xlu0 %v6168_v13, %s3658_s1  ;;  %2722 = vrot.lane.b32.xlu1 %v6171_v9, %s3658_s1 }
 0x703   :  { %v2793_v60 = vpop.permute.xlu1 %2792  ;;  %v2791_v18 = vpop.permute.xlu0 %2790 }
 0x704   :  { %v6178_v19 = vadd.f32 %v2793_v60, %v6778_v15 }
 0x706   :  { %2814 = vrot.lane.b32.xlu1 %v6178_v19, %s3658_s1 }
 0x707   :  { %v2883_v25 = vpop.permute.xlu1 %2882  ;;  %v2881_v41 = vpop.permute.xlu0 %2880 }
 0x708   :  { %v6183_v57 = vadd.f32 %v2881_v41, %v6061_v48  ;;  %v6200_v48 = vadd.f32 %v2702_v7, %v6058_v50  ;;  %v2886_v50 = vsel %vm629_vm3, %v2881_v41, %v2883_v25 }
 0x709   :  { %v6224_v45 = vadd.f32 %v2886_v50, %v6106_v62 }
 0x70a   :  { %2900 = vrot.lane.b32.xlu0 %v6183_v57, %s3658_s1 }
 0x70b   :  { %v2973_v63 = vpop.permute.xlu1 %2972  ;;  %v2885_v10 = vpop.permute.xlu0 %2884 }
 0x70c   :  { %v6188_v3 = vadd.f32 %v2973_v63, %v6108_v22  ;;  %v6191_v61 = vadd.f32 %v2885_v10, %v6030_v35  ;;  %v2794_v22 = vsel %vm629_vm3, %v2789_v56, %v2791_v18  ;;  %v2795_v35 = vsel %vm629_vm3, %v2791_v18, %v2793_v60 }
 0x70d   :  { %v6212_v58 = vadd.f32 %v2794_v22, %v6085_v49  ;;  %v6215_v23 = vadd.f32 %v2795_v35, %v6028_v20  ;;  %v2887_v38 = vsel %vm629_vm3, %v2883_v25, %v2885_v10  ;;  %v6779_v22 = vld [vmem:[#allocation28_spill] sm:$0xff]  ;;  %v6780_v35 = vld [vmem:[#allocation29_spill] sm:$0xff] }
 0x70e   :  { %2992 = vrot.lane.b32.xlu0 %v6188_v3, %s3658_s1  ;;  %2906 = vrot.lane.b32.xlu1 %v6191_v61, %s3658_s1  ;;  %v6227_v49 = vadd.f32 %v2887_v38, %v6087_v14  ;;  %v3519_v50 = vpack.i.bf16 %v6780_v35, %v6779_v22  ;;  %v6781_v38 = vld [vmem:[#allocation30_spill] sm:$0xff] }
 0x70f   :  { %v2977_v29 = vpop.permute.xlu1 %2976  ;;  %v2975_v39 = vpop.permute.xlu0 %2974 }
 0x710   :  { %v2978_v20 = vsel %vm629_vm3, %v2973_v63, %v2975_v39  ;;  %v2979_v5 = vsel %vm629_vm3, %v2975_v39, %v2977_v29  ;;  %v6246_v14 = vadd.f32 %v2977_v29, %v6134_v40 }
 0x711   :  { %v6236_v6 = vadd.f32 %v2978_v20, %v6125_v36  ;;  %v6239_v42 = vadd.f32 %v2979_v5, %v6127_v24 }
 0x712   :  { %2720 = vrot.lane.b32.xlu0 %v6203_v52, %s3658_s1  ;;  %2718 = vrot.lane.b32.xlu1 %v6200_v48, %s3658_s1 }
 0x716   :  { %2812 = vrot.lane.b32.xlu0 %v6215_v23, %s3658_s1  ;;  %2810 = vrot.lane.b32.xlu1 %v6212_v58, %s3658_s1 }
 0x71a   :  { %2902 = vrot.lane.b32.xlu1 %v6224_v45, %s3658_s1  ;;  %2904 = vrot.lane.b32.xlu0 %v6227_v49, %s3658_s1 }
 0x71e   :  { %2996 = vrot.lane.b32.xlu0 %v6239_v42, %s3658_s1  ;;  %2994 = vrot.lane.b32.xlu1 %v6236_v6, %s3658_s1 }
 0x722   :  { %2998 = vrot.lane.b32.xlu1 %v6246_v14, %s3658_s1 }
 0x770   :  { %v2717_v62 = vpop.permute.xlu0 %2716 }
 0x774   :  { %v2723_v32 = vpop.permute.xlu1 %2722  ;;  %v2809_v16 = vpop.permute.xlu0 %2808 }
 0x778   :  { %v2815_v36 = vpop.permute.xlu1 %2814 }
 0x77c   :  { %v2901_v51 = vpop.permute.xlu0 %2900 }
 0x780   :  { %v2907_v28 = vpop.permute.xlu1 %2906  ;;  %v2993_v24 = vpop.permute.xlu0 %2992 }
 0x784   :  { %v2719_v55 = vpop.permute.xlu1 %2718  ;;  %v2721_v44 = vpop.permute.xlu0 %2720 }
 0x785   :  { %v2724_v8 = vsel %vm2683_vm0, %v2717_v62, %v2719_v55  ;;  %v2725_v31 = vsel %vm2683_vm0, %v2719_v55, %v2721_v44  ;;  %v2726_v40 = vsel %vm2683_vm0, %v2721_v44, %v2723_v32  ;;  %v2761_v62 = vstv %s2760_s7  ;;  %s3147_s7 = sld [smem:[#allocation12]] }
 0x786   :  { %v2730_v46 = vrot.slane %v2724_v8, 6  ;;  %v2731_v4 = vrot.slane %v2725_v31, 6  ;;  %v2732_v26 = vrot.slane %v2726_v40, 6  ;;  %v2853_v32 = vstv %s3436_s8  ;;  %v6784_v31 = vld [vmem:[#allocation26_spill] sm:$0xff]  ;;  %s3439_s8 = sld [smem:[#allocation11 + $0x1]] }
 0x788   :  { %v2811_v34 = vpop.permute.xlu1 %2810  ;;  %2736 = vrot.lane.b32.xlu0 %v2730_v46, %s3652_s13  ;;  %2738 = vrot.lane.b32.xlu1 %v2731_v4, %s3652_s13  ;;  %v2813_v43 = vpop.permute.xlu0 %2812 }
 0x789   :  { %v2816_v30 = vsel %vm2683_vm0, %v2809_v16, %v2811_v34  ;;  %v2817_v33 = vsel %vm2683_vm0, %v2811_v34, %v2813_v43  ;;  %v2818_v12 = vsel %vm2683_vm0, %v2813_v43, %v2815_v36  ;;  %v6782_v16 = vld [vmem:[#allocation22_spill] sm:$0xff] }
 0x78a   :  { %v2822_v47 = vrot.slane %v2816_v30, 6  ;;  %v2823_v21 = vrot.slane %v2817_v33, 6  ;;  %v2824_v11 = vrot.slane %v2818_v12, 6  ;;  %v2762_v36 = vmul.f32 %v2761_v62, %v6782_v16 }
 0x78b   :  { %v3037_v12 = vstv %s3438_s15  ;;  %s3440_s15 = sld [smem:[#allocation12 + $0x1]] }
 0x78c   :  { %v2903_v53 = vpop.permute.xlu1 %2902  ;;  %2740 = vrot.lane.b32.xlu0 %v2732_v26, %s3652_s13  ;;  %2828 = vrot.lane.b32.xlu1 %v2822_v47, %s3652_s13  ;;  %v2905_v37 = vpop.permute.xlu0 %2904 }
 0x78d   :  { %v2908_v2 = vsel %vm2683_vm0, %v2901_v51, %v2903_v53  ;;  %v2909_v17 = vsel %vm2683_vm0, %v2903_v53, %v2905_v37  ;;  %v2910_v27 = vsel %vm2683_vm0, %v2905_v37, %v2907_v28  ;;  %v6783_v51 = vld [vmem:[#allocation23_spill] sm:$0xff] }
 0x78e   :  { %v2914_v1 = vrot.slane %v2908_v2, 6  ;;  %v2915_v56 = vrot.slane %v2909_v17, 6  ;;  %v2916_v25 = vrot.slane %v2910_v27, 6  ;;  %v2854_v28 = vmul.f32 %v2853_v32, %v6783_v51 }
 0x790   :  { %v2995_v54 = vpop.permute.xlu1 %2994  ;;  %2832 = vrot.lane.b32.xlu1 %v2824_v11, %s3652_s13  ;;  %2830 = vrot.lane.b32.xlu0 %v2823_v21, %s3652_s13  ;;  %v2997_v18 = vpop.permute.xlu0 %2996  ;;  %v2855_v43 = vadd.f32 %v2854_v28, %v2762_v36 }
 0x791   :  { %v3000_v60 = vsel %vm2683_vm0, %v2993_v24, %v2995_v54  ;;  %v3001_v63 = vsel %vm2683_vm0, %v2995_v54, %v2997_v18  ;;  %v2945_v24 = vstv %s3437_s14 }
 0x792   :  { %v3006_v41 = vrot.slane %v3000_v60, 6  ;;  %v3007_v7 = vrot.slane %v3001_v63, 6  ;;  %v2946_v46 = vmul.f32 %v2945_v24, %v6784_v31 }
 0x794   :  { %v2999_v15 = vpop.permute.xlu1 %2998  ;;  %2920 = vrot.lane.b32.xlu0 %v2914_v1, %s3652_s13  ;;  %2922 = vrot.lane.b32.xlu1 %v2915_v56, %s3652_s13  ;;  %v2947_v54 = vadd.f32 %v2946_v46, %v2855_v43  ;;  %v6785_v1 = vld [vmem:[#allocation24_spill] sm:$0xff] }
 0x795   :  { %v3002_v10 = vsel %vm2683_vm0, %v2997_v18, %v2999_v15  ;;  %v3038_v56 = vmul.f32 %v3037_v12, %v6785_v1 }
 0x796   :  { %v3008_v0 = vrot.slane %v3002_v10, 6 }
 0x797   :  { %v3039_v22 = vadd.f32 %v3038_v56, %v2947_v54 }
 0x798   :  { %2924 = vrot.lane.b32.xlu0 %v2916_v25, %s3652_s13  ;;  %3012 = vrot.lane.b32.xlu1 %v3006_v41, %s3652_s13 }
 0x79c   :  { %3016 = vrot.lane.b32.xlu1 %v3008_v0, %s3652_s13  ;;  %3014 = vrot.lane.b32.xlu0 %v3007_v7, %s3652_s13 }
 0x7a0   :  { %3520 = vrot.lane.b32.xlu0 %v3519_v50, %s3652_s13  ;;  %3055 = vrot.lane.b32.xlu1 %v6781_v38, %s3652_s13 }
 0x7fa   :  { %v2739_v29 = vpop.permute.xlu1 %2738  ;;  %v2737_v39 = vpop.permute.xlu0 %2736 }
 0x7fb   :  { %v2748_v4 = vadd.f32 %v2737_v39, %v6163_v59  ;;  %v2742_v30 = vsel %vm629_vm3, %v2737_v39, %v2739_v29 }
 0x7fc   :  { %v2749_v27 = vadd.f32 %v2742_v30, %v6200_v48 }
 0x7fd   :  { %v2752_v17 = vmul.f32 %v2748_v4, %v6782_v16 }
 0x7fe   :  { %v2829_v20 = vpop.permute.xlu1 %2828  ;;  %v2741_v5 = vpop.permute.xlu0 %2740 }
 0x7ff   :  { %v2840_v8 = vadd.f32 %v2829_v20, %v6168_v13  ;;  %v2743_v13 = vsel %vm629_vm3, %v2739_v29, %v2741_v5  ;;  %v2751_v21 = vadd.f32 %v2741_v5, %v6171_v9 }
 0x800   :  { %v2750_v60 = vadd.f32 %v2743_v13, %v6203_v52 }
 0x801   :  { %v2844_v53 = vmul.f32 %v2840_v8, %v6783_v51  ;;  %v2755_v63 = vmul.f32 %v2751_v21, %v6782_v16 }
 0x802   :  { %v2833_v55 = vpop.permute.xlu1 %2832  ;;  %v2831_v44 = vpop.permute.xlu0 %2830  ;;  %v2754_v35 = vmul.f32 %v2750_v60, %v6782_v16 }
 0x803   :  { %v2834_v40 = vsel %vm629_vm3, %v2829_v20, %v2831_v44  ;;  %v2835_v34 = vsel %vm629_vm3, %v2831_v44, %v2833_v55  ;;  %v2843_v26 = vadd.f32 %v2833_v55, %v6178_v19 }
 0x804   :  { %v2841_v11 = vadd.f32 %v2834_v40, %v6212_v58  ;;  %v2842_v2 = vadd.f32 %v2835_v34, %v6215_v23  ;;  %v2848_v58 = vadd.f32 %v2844_v53, %v2752_v17 }
 0x805   :  { %v2847_v18 = vmul.f32 %v2843_v26, %v6783_v51 }
 0x806   :  { %v2923_v47 = vpop.permute.xlu1 %2922  ;;  %v2921_v33 = vpop.permute.xlu0 %2920  ;;  %v2845_v10 = vmul.f32 %v2841_v11, %v6783_v51  ;;  %v2846_v48 = vmul.f32 %v2842_v2, %v6783_v51 }
 0x807   :  { %v2926_v37 = vsel %vm629_vm3, %v2921_v33, %v2923_v47  ;;  %v2932_v59 = vadd.f32 %v2921_v33, %v6183_v57  ;;  %v2851_v50 = vadd.f32 %v2847_v18, %v2755_v63 }
 0x808   :  { %v2933_v57 = vadd.f32 %v2926_v37, %v6224_v45  ;;  %v2850_v32 = vadd.f32 %v2846_v48, %v2754_v35 }
 0x809   :  { %v2936_v19 = vmul.f32 %v2932_v59, %v6784_v31 }
 0x80a   :  { %v3013_v9 = vpop.permute.xlu1 %3012  ;;  %v2925_v15 = vpop.permute.xlu0 %2924 }
 0x80b   :  { %v3024_v23 = vadd.f32 %v3013_v9, %v6188_v3  ;;  %v2927_v25 = vsel %vm629_vm3, %v2923_v47, %v2925_v15  ;;  %v2935_v41 = vadd.f32 %v2925_v15, %v6191_v61  ;;  %v2940_v7 = vadd.f32 %v2936_v19, %v2848_v58 }
 0x80c   :  { %v2934_v52 = vadd.f32 %v2927_v25, %v6227_v49  ;;  %v2753_v3 = vmul.f32 %v2749_v27, %v6782_v16  ;;  %v2937_v61 = vmul.f32 %v2933_v57, %v6784_v31 }
 0x80d   :  { %v3028_v45 = vmul.f32 %v3024_v23, %v6785_v1  ;;  %v2939_v0 = vmul.f32 %v2935_v41, %v6784_v31 }
 0x80e   :  { %v3017_v38 = vpop.permute.xlu1 %3016  ;;  %v3015_v29 = vpop.permute.xlu0 %3014  ;;  %v2938_v20 = vmul.f32 %v2934_v52, %v6784_v31  ;;  %v2849_v62 = vadd.f32 %v2845_v10, %v2753_v3 }
 0x80f   :  { %v3032_v39 = vadd.f32 %v3028_v45, %v2940_v7  ;;  %v3027_v49 = vadd.f32 %v3017_v38, %v6246_v14  ;;  %v3018_v5 = vsel %vm629_vm3, %v3013_v9, %v3015_v29  ;;  %v3019_v36 = vsel %vm629_vm3, %v3015_v29, %v3017_v38 }
 0x810   :  { %v3025_v28 = vadd.f32 %v3018_v5, %v6236_v6  ;;  %v2943_v24 = vadd.f32 %v2939_v0, %v2851_v50  ;;  %v3026_v44 = vadd.f32 %v3019_v36, %v6239_v42  ;;  %v2941_v46 = vadd.f32 %v2937_v61, %v2849_v62 }
 0x811   :  { %v3031_v55 = vmul.f32 %v3027_v49, %v6785_v1  ;;  %v3040_v8 = vadd.f32 %v3039_v22, %v3032_v39  ;;  %v2942_v34 = vadd.f32 %v2938_v20, %v2850_v32 }
 0x812   :  { %v3029_v4 = vmul.f32 %v3025_v28, %v6785_v1  ;;  %v3521_v40 = vpop.permute.xlu0 %3520  ;;  %v3030_v43 = vmul.f32 %v3026_v44, %v6785_v1  ;;  %v3056_v37 = vpop.permute.xlu1 %3055 }
 0x813   :  { %v3035_v14 = vadd.f32 %v3031_v55, %v2943_v24  ;;  %v3044_v30 = vmax.f32 %v3040_v8, 0.0  ;;  %v3522_v47 = vunpack.i.l.bf16 %v3521_v40  ;;  %v3523_v53 = vunpack.i.h.bf16 %v3521_v40 }
 0x814   :  { %v3033_v26 = vadd.f32 %v3029_v4, %v2941_v46  ;;  %v3034_v33 = vadd.f32 %v3030_v43, %v2942_v34 }
 0x815   :  { %v3043_v12 = vadd.f32 %v3039_v22, %v3035_v14  ;;  %v6323_v13 = vmul.f32 %v3522_v47, %v3044_v30  ;;  %v3058_v17 = vsel %vm629_vm3, %v3523_v53, %v3056_v37  ;;  %v3057_v54 = vsel %vm629_vm3, %v3522_v47, %v3523_v53 }
 0x816   :  { %v3041_v6 = vadd.f32 %v3039_v22, %v3033_v26  ;;  %v3042_v42 = vadd.f32 %v3039_v22, %v3034_v33 }
 0x817   :  { %v3047_v59 = vmax.f32 %v3043_v12, 0.0  ;;  %3071 = vrot.lane.b32.xlu0 %v6323_v13, %s3658_s1  ;;  %v3089_v27 = vmul.f32 %v6323_v13, %v6323_v13 }
 0x818   :  { %v3045_v21 = vmax.f32 %v3041_v6, 0.0  ;;  %v3046_v11 = vmax.f32 %v3042_v42, 0.0 }
 0x819   :  { %v6327_v2 = vmul.f32 %v3056_v37, %v3047_v59 }
 0x81a   :  { %v6330_v19 = vmul.f32 %v3058_v17, %v3046_v11  ;;  %v6335_v56 = vmul.f32 %v3057_v54, %v3045_v21 }
 0x81b   :  { %3077 = vrot.lane.b32.xlu1 %v6327_v2, %s3658_s1  ;;  %v3092_v57 = vmul.f32 %v6327_v2, %v6327_v2 }
 0x81c   :  { %3075 = vrot.lane.b32.xlu0 %v6330_v19, %s3658_s1  ;;  %v3090_v60 = vmul.f32 %v6335_v56, %v6335_v56  ;;  %v3091_v18 = vmul.f32 %v6330_v19, %v6330_v19 }
 0x81f   :  { %3073 = vrot.lane.b32.xlu1 %v6335_v56, %s3658_s1 }
 0x820   :  { %3097 = vrot.lane.b32.xlu0 %v3089_v27, %s3658_s1 }
 0x823   :  { %3099 = vrot.lane.b32.xlu1 %v3090_v60, %s3658_s1 }
 0x824   :  { %3101 = vrot.lane.b32.xlu0 %v3091_v18, %s3658_s1 }
 0x827   :  { %3103 = vrot.lane.b32.xlu1 %v3092_v57, %s3658_s1 }
 0x889   :  { %v3072_v9 = vpop.permute.xlu0 %3071 }
 0x88d   :  { %v3078_v15 = vpop.permute.xlu1 %3077 }
 0x88e   :  { %v3076_v58 = vpop.permute.xlu0 %3075 }
 0x88f   :  { %v3081_v48 = vsel %vm2683_vm0, %v3076_v58, %v3078_v15 }
 0x891   :  { %v3074_v23 = vpop.permute.xlu1 %3073 }
 0x892   :  { %v3079_v25 = vsel %vm2683_vm0, %v3072_v9, %v3074_v23  ;;  %v3080_v41 = vsel %vm2683_vm0, %v3074_v23, %v3076_v58  ;;  %v3098_v10 = vpop.permute.xlu0 %3097 }
 0x893   :  { %v3085_v63 = vadd.f32 %v3080_v41, %v3079_v25 }
 0x895   :  { %v3100_v52 = vpop.permute.xlu1 %3099  ;;  %v3086_v7 = vadd.f32 %v3085_v63, %v3081_v48 }
 0x896   :  { %v3105_v45 = vsel %vm2683_vm0, %v3098_v10, %v3100_v52  ;;  %v3102_v0 = vpop.permute.xlu0 %3101 }
 0x897   :  { %3087 = vadd.xlane.f32.xlu0 %v3086_v7  ;;  %v3106_v22 = vsel %vm2683_vm0, %v3100_v52, %v3102_v0  ;;  %v3287_v7 = vld [vmem:[%s6434_s0] sm:$0xff] }
 0x898   :  { %v3111_v3 = vadd.f32 %v3106_v22, %v3105_v45  ;;  %v3288_v45 = vld [vmem:[%s6434_s0 + $0x8] sm:$0xff]  ;;  %v3290_v22 = vld [vmem:[%s6434_s0 + $0x18] sm:$0xff] }
 0x899   :  { %v3104_v35 = vpop.permute.xlu1 %3103 }
 0x89a   :  { %v3107_v50 = vsel %vm2683_vm0, %v3102_v0, %v3104_v35  ;;  %v3289_v0 = vld [vmem:[%s6434_s0 + $0x10] sm:$0xff]  ;;  %s3145_s0 = sld [smem:[#allocation11]] }
 0x89b   :  { %v3112_v61 = vadd.f32 %v3111_v3, %v3107_v50 }
 0x89d   :  { %3113 = vadd.xlane.f32.xlu1 %v3112_v61 }
 0x920   :  { %v3088_v38 = vpop.xlane.xlu0 %3087 }
 0x921   :  { %v3115_v29 = vmul.f32 %v3088_v38, %v6782_v16  ;;  %v3156_v39 = vmul.f32 %v3088_v38, %v6783_v51  ;;  %v3197_v5 = vmul.f32 %v3088_v38, %v6784_v31  ;;  %v3238_v28 = vmul.f32 %v3088_v38, %v6785_v1 }
 0x923   :  { %v3116_v20 = vsel %vm1360_vm10, %v3115_v29, 0.0  ;;  %v3157_v49 = vsel %vm1360_vm10, %v3156_v39, 0.0  ;;  %v3198_v32 = vsel %vm1360_vm10, %v3197_v5, 0.0  ;;  %v3239_v44 = vsel %vm1360_vm10, %v3238_v28, 0.0 }
 0x924   :  { %3117 = vadd.xlane.f32.xlu0 %v3116_v20  ;;  %3158 = vadd.xlane.f32.xlu1 %v3157_v49 }
 0x926   :  { %v3114_v62 = vpop.xlane.xlu1 %3113 }
 0x927   :  { %v3127_v36 = vmul.f32 %v3114_v62, %v6782_v16  ;;  %v3168_v55 = vmul.f32 %v3114_v62, %v6783_v51  ;;  %v3209_v46 = vmul.f32 %v3114_v62, %v6784_v31  ;;  %v3250_v40 = vmul.f32 %v3114_v62, %v6785_v1 }
 0x928   :  { %3199 = vadd.xlane.f32.xlu1 %v3198_v32 }
 0x929   :  { %v3128_v24 = vsel %vm1360_vm10, %v3127_v36, 0.0  ;;  %v3169_v8 = vsel %vm1360_vm10, %v3168_v55, 0.0  ;;  %v3210_v4 = vsel %vm1360_vm10, %v3209_v46, 0.0  ;;  %v3251_v34 = vsel %vm1360_vm10, %v3250_v40, 0.0 }
 0x92a   :  { %3129 = vadd.xlane.f32.xlu0 %v3128_v24 }
 0x92c   :  { %3240 = vadd.xlane.f32.xlu1 %v3239_v44 }
 0x92e   :  { %3170 = vadd.xlane.f32.xlu0 %v3169_v8 }
 0x932   :  { %3211 = vadd.xlane.f32.xlu0 %v3210_v4 }
 0x936   :  { %3252 = vadd.xlane.f32.xlu0 %v3251_v34 }
 0x93d   :  { %3295 = vrot.lane.b32.xlu1 %v3287_v7, %s3656_s17 }
 0x941   :  { %3299 = vrot.lane.b32.xlu1 %v3289_v0, %s3656_s17 }
 0x945   :  { %3301 = vrot.lane.b32.xlu1 %v3290_v22, %s3656_s17 }
 0x94c   :  { %3297 = vrot.lane.b32.xlu0 %v3288_v45, %s3656_s17 }
 0x9ad   :  { %v3118_v14 = vpop.xlane.xlu0 %3117  ;;  %v3159_v17 = vpop.xlane.xlu1 %3158 }
 0x9ae   :  { %v3119_v43 = vrot.slane %v3118_v14, 4  ;;  %v3160_v27 = vrot.slane %v3159_v17, 4 }
 0x9b0   :  { %v3120_v30 = vadd.f32 %v3119_v43, %v3118_v14  ;;  %v3161_v18 = vadd.f32 %v3160_v27, %v3159_v17 }
 0x9b1   :  { %v3200_v3 = vpop.xlane.xlu1 %3199 }
 0x9b2   :  { %v3121_v26 = vrot.slane %v3120_v30, 2  ;;  %v3162_v15 = vrot.slane %v3161_v18, 2  ;;  %v3201_v50 = vrot.slane %v3200_v3, 4 }
 0x9b3   :  { %v3130_v47 = vpop.xlane.xlu0 %3129 }
 0x9b4   :  { %v3131_v33 = vrot.slane %v3130_v47, 4  ;;  %v3122_v12 = vadd.f32 %v3121_v26, %v3120_v30  ;;  %v3163_v23 = vadd.f32 %v3162_v15, %v3161_v18  ;;  %v3202_v38 = vadd.f32 %v3201_v50, %v3200_v3 }
 0x9b5   :  { %v3241_v8 = vpop.xlane.xlu1 %3240 }
 0x9b6   :  { %v3132_v6 = vadd.f32 %v3131_v33, %v3130_v47  ;;  %v3123_v53 = vrot.slane %v3122_v12, 1  ;;  %v3164_v41 = vrot.slane %v3163_v23, 1  ;;  %v3203_v20 = vrot.slane %v3202_v38, 2 }
 0x9b7   :  { %v3171_v54 = vpop.xlane.xlu0 %3170  ;;  %v3242_v14 = vrot.slane %v3241_v8, 4 }
 0x9b8   :  { %v3133_v37 = vrot.slane %v3132_v6, 2  ;;  %v3124_v42 = vadd.f32 %v3123_v53, %v3122_v12  ;;  %v3172_v60 = vrot.slane %v3171_v54, 4  ;;  %v3165_v48 = vadd.f32 %v3164_v41, %v3163_v23 }
 0x9b9   :  { %v3204_v5 = vadd.f32 %v3203_v20, %v3202_v38 }
 0x9ba   :  { %3475 = vpush %v3124_v42  ;;  %v3134_v59 = vadd.f32 %v3133_v37, %v3132_v6  ;;  %v3173_v57 = vadd.f32 %v3172_v60, %v3171_v54  ;;  %v3243_v6 = vadd.f32 %v3242_v14, %v3241_v8 }
 0x9bb   :  { %v3212_v35 = vpop.xlane.xlu0 %3211  ;;  %v3205_v32 = vrot.slane %v3204_v5, 1 }
 0x9bc   :  { %v3135_v21 = vrot.slane %v3134_v59, 1  ;;  %v3174_v58 = vrot.slane %v3173_v57, 2  ;;  %v3213_v61 = vrot.slane %v3212_v35, 4 }
 0x9bd   :  { %v3206_v24 = vadd.f32 %v3205_v32, %v3204_v5 }
 0x9be   :  { %v3136_v11 = vadd.f32 %v3135_v21, %v3134_v59  ;;  %v3175_v25 = vadd.f32 %v3174_v58, %v3173_v57  ;;  %v3214_v29 = vadd.f32 %v3213_v61, %v3212_v35  ;;  %v3244_v59 = vrot.slane %v3243_v6, 2 }
 0x9bf   :  { %v3253_v46 = vpop.xlane.xlu0 %3252 }
 0x9c0   :  { %3477 = vpush %v3136_v11  ;;  %v3176_v63 = vrot.slane %v3175_v25, 1  ;;  %v3215_v49 = vrot.slane %v3214_v29, 2  ;;  %v3254_v30 = vrot.slane %v3253_v46, 4  ;;  %v3245_v11 = vadd.f32 %v3244_v59, %v3243_v6 }
 0x9c2   :  { %v3177_v52 = vadd.f32 %v3176_v63, %v3175_v25  ;;  %v3216_v62 = vadd.f32 %v3215_v49, %v3214_v29  ;;  %v3255_v53 = vadd.f32 %v3254_v30, %v3253_v46  ;;  %v3246_v54 = vrot.slane %v3245_v11, 1  ;;  %v3296_v63 = vpop.permute.xlu1 %3295 }
 0x9c3   :  { %v3298_v3 = vpop.permute.xlu0 %3297 }
 0x9c4   :  { %v3217_v36 = vrot.slane %v3216_v62, 1  ;;  %v3256_v21 = vrot.slane %v3255_v53, 2  ;;  %v3247_v18 = vadd.f32 %v3246_v54, %v3245_v11  ;;  %v3303_v5 = vsel %vm1145_vm15, %v3296_v63, %v3298_v3 }
 0x9c6   :  { %v3218_v55 = vadd.f32 %v3217_v36, %v3216_v62  ;;  %v3257_v17 = vadd.f32 %v3256_v21, %v3255_v53 }
 0x9c8   :  { %v3258_v27 = vrot.slane %v3257_v17, 1 }
 0x9ca   :  { %v3259_v57 = vadd.f32 %v3258_v27, %v3257_v17 }
 0x9eb   :  { %s3476_s13 = spop %3475 }
 0x9ec   :  { %s6375_s16 = smul.f32 0.001953125, %s3476_s13 }
 0x9ee   :  { %s3139_s22 = smul.f32 %s6375_s16, %s6375_s16 }
 0x9f1   :  { %s3478_s20 = spop %3477 }
 0x9f2   :  { %s3138_s23 = smul.f32 0.001953125, %s3478_s20 }
 0x9f4   :  { %s3140_s24 = ssub.f32 %s3138_s23, %s3139_s22 }
 0x9f6   :  { %s3141_s25 = sadd.f32 0.001, %s3140_s24 }
 0x9f8   :  { %v3142_v9 = vstv %s3141_s25 }
 0x9f9   :  { %3532 = vrsqrt.f32 %v3142_v9 }
 0xa06   :  { %v3533_v10 = vpop.eup %3532 }
 0xa07   :  { %3479 = vpush %v3533_v10 }
 0xa08   :  { %3481 = vpush %v3165_v48 }
 0xa09   :  { %3483 = vpush %v3177_v52  ;;  %v3300_v52 = vpop.permute.xlu1 %3299 }
 0xa0a   :  { %v3304_v62 = vsel %vm1145_vm15, %v3298_v3, %v3300_v52 }
 0xa0d   :  { %v3302_v38 = vpop.permute.xlu1 %3301 }
 0xa38   :  { %s6395_s11 = spop %3479 }
 0xa39   :  { %s3482_s12 = spop %3481  ;;  %s3146_s17 = smul.f32 %s6395_s11, %s3145_s0 }
 0xa3a   :  { %s6397_s6 = smul.f32 0.001953125, %s3482_s12  ;;  %s3484_s19 = spop %3483 }
 0xa3b   :  { %s3179_s18 = smul.f32 0.001953125, %s3484_s19  ;;  %v3150_v44 = vstv %s3146_s17 }
 0xa3c   :  { %s3180_s4 = smul.f32 %s6397_s6, %s6397_s6  ;;  %v3151_v40 = vmul.f32 %v3150_v44, %v6782_v16 }
 0xa3d   :  { %s3148_s14 = smul.f32 %s3146_s17, %s6375_s16 }
 0xa3e   :  { %s3181_s10 = ssub.f32 %s3179_s18, %s3180_s4 }
 0xa3f   :  { %s3149_s13 = ssub.f32 %s3147_s7, %s3148_s14 }
 0xa40   :  { %s3182_s21 = sadd.f32 0.001, %s3181_s10 }
 0xa41   :  { %v3153_v43 = vstv %s3149_s13  ;;  %s3443_s7 = sld [smem:[#allocation11 + $0x3]] }
 0xa42   :  { %v3183_v39 = vstv %s3182_s21  ;;  %v3154_v33 = vmul.f32 %v3153_v43, %v6782_v16 }
 0xa43   :  { %3534 = vrsqrt.f32 %v3183_v39 }
 0xa50   :  { %v3535_v28 = vpop.eup %3534 }
 0xa51   :  { %3485 = vpush %v3535_v28 }
 0xa52   :  { %3487 = vpush %v3206_v24 }
 0xa53   :  { %3489 = vpush %v3218_v55 }
 0xa82   :  { %s3486_s22 = spop %3485 }
 0xa83   :  { %s3187_s20 = smul.f32 %s3486_s22, %s3439_s8  ;;  %s3488_s23 = spop %3487 }
 0xa84   :  { %s6403_s24 = smul.f32 0.001953125, %s3488_s23  ;;  %s3490_s25 = spop %3489 }
 0xa85   :  { %s3189_s3 = smul.f32 %s3187_s20, %s6397_s6  ;;  %v3191_v4 = vstv %s3187_s20  ;;  %s3444_s8 = sld [smem:[#allocation12 + $0x3]] }
 0xa86   :  { %v3192_v34 = vmul.f32 %v3191_v4, %v6783_v51  ;;  %s3221_s16 = smul.f32 %s6403_s24, %s6403_s24  ;;  %s3659_s20 = smov [#allocation14]  }
 0xa87   :  { %s3190_s5 = ssub.f32 %s3440_s15, %s3189_s3  ;;  %s3220_s26 = smul.f32 0.001953125, %s3490_s25 }
 0xa88   :  { %v3193_v26 = vadd.f32 %v3192_v34, %v3151_v40  ;;  %s3345_s23 = sshll.u32 %s3659_s20, 4  ;;  %s3346_s23 = int_to_ptr.vmem [resolvable:$true] %s3345_s23 }
 0xa89   :  { %v3194_v47 = vstv %s3190_s5  ;;  %s3222_s27 = ssub.f32 %s3220_s26, %s3221_s16  ;;  %p3617_p3 = scmp.lt.s32.totalorder %s3346_s23, %s3346_s23 }
 0xa8a   :  { %v3195_v12 = vmul.f32 %v3194_v47, %v6783_v51 }
 0xa8b   :  { %s3223_s28 = sadd.f32 0.001, %s3222_s27 }
 0xa8c   :  { %v3196_v37 = vadd.f32 %v3195_v12, %v3154_v33 }
 0xa8d   :  { %v3224_v42 = vstv %s3223_s28 }
 0xa8e   :  { %3536 = vrsqrt.f32 %v3224_v42 }
 0xa9b   :  { %v3537_v60 = vpop.eup %3536 }
 0xa9c   :  { %3491 = vpush %v3537_v60 }
 0xa9d   :  { %3493 = vpush %v3247_v18 }
 0xa9e   :  { %3495 = vpush %v3259_v57 }
 0xacd   :  { %s3492_s2 = spop %3491 }
 0xace   :  { %s3228_s11 = smul.f32 %s3492_s2, %s3441_s29  ;;  %s3494_s12 = spop %3493 }
 0xacf   :  { %s3249_s6 = smul.f32 0.001953125, %s3494_s12  ;;  %s3496_s19 = spop %3495 }
 0xad0   :  { %s3230_s4 = smul.f32 %s3228_s11, %s6403_s24  ;;  %v3232_v16 = vstv %s3228_s11  ;;  %s3612_s24 = scalar_lea.vmem %s3346_s23, 384 }
 0xad1   :  { %v3233_v51 = vmul.f32 %v3232_v16, %v6784_v31  ;;  %s3262_s18 = smul.f32 %s3249_s6, %s3249_s6  ;;  %p3613_p2 = scmp.ne.s32.totalorder %s3346_s23, %s3612_s24 }
 0xad2   :  { %s3231_s10 = ssub.f32 %s3442_s30, %s3230_s4  ;;  %s3261_s21 = smul.f32 0.001953125, %s3496_s19 }
 0xad3   :  { %v3234_v9 = vadd.f32 %v3233_v51, %v3193_v26  ;;  %p3618_p4 = scmp.lt.s32.totalorder %s3612_s24, %s3612_s24 }
 0xad4   :  { %v3235_v15 = vstv %s3231_s10  ;;  %s3263_s0 = ssub.f32 %s3261_s21, %s3262_s18 }
 0xad5   :  { %v3236_v58 = vmul.f32 %v3235_v15, %v6784_v31  ;;  %p3619_p5 = por %p3618_p4, %p3617_p3 }
 0xad6   :  { %s3264_s17 = sadd.f32 0.001, %s3263_s0 }
 0xad7   :  { %v3237_v23 = vadd.f32 %v3236_v58, %v3196_v37  ;;  %p3620_p6 = pnand %p3619_p5, %p3613_p2 }
 0xad8   :  { %v3265_v25 = vstv %s3264_s17 }
 0xad9   :  { %3538 = vrsqrt.f32 %v3265_v25 }
 0xae6   :  { %v3539_v41 = vpop.eup %3538 }
 0xae7   :  { %3497 = vpush %v3539_v41 }
 0xb18   :  { %s3498_s14 = spop %3497 }
 0xb19   :  { %s3269_s15 = smul.f32 %s3498_s14, %s3443_s7 }
 0xb1b   :  { %s3271_s13 = smul.f32 %s3269_s15, %s3249_s6  ;;  %v3273_v10 = vstv %s3269_s15 }
 0xb1c   :  { %v3274_v48 = vmul.f32 %v3273_v10, %v6785_v1 }
 0xb1d   :  { %s3272_s22 = ssub.f32 %s3444_s8, %s3271_s13 }
 0xb1e   :  { %v3275_v7 = vadd.f32 %v3274_v48, %v3234_v9 }
 0xb1f   :  { %v3276_v45 = vstv %s3272_s22 }
 0xb20   :  { %v3277_v31 = vmul.f32 %v3276_v45, %v6785_v1  ;;  %v3279_v0 = vmul.f32 %v3275_v7, %v6323_v13  ;;  %v3280_v35 = vmul.f32 %v3275_v7, %v6335_v56  ;;  %v3281_v50 = vmul.f32 %v3275_v7, %v6330_v19 }
 0xb21   :  { %v3282_v61 = vmul.f32 %v3275_v7, %v6327_v2  ;;  %v3305_v1 = vsel %vm1145_vm15, %v3300_v52, %v3302_v38 }
 0xb22   :  { %v3278_v22 = vadd.f32 %v3277_v31, %v3237_v23 }
 0xb24   :  { %v3283_v29 = vadd.f32 %v3279_v0, %v3278_v22  ;;  %v3284_v39 = vadd.f32 %v3280_v35, %v3278_v22  ;;  %v3285_v20 = vadd.f32 %v3281_v50, %v3278_v22  ;;  %v3286_v49 = vadd.f32 %v3282_v61, %v3278_v22 }
 0xb26   :  { %v3310_v13 = vadd.f32 %v3296_v63, %v3283_v29  ;;  %v3311_v32 = vadd.f32 %v3303_v5, %v3284_v39  ;;  %v3312_v56 = vadd.f32 %v3304_v62, %v3285_v20  ;;  %v3313_v24 = vadd.f32 %v3305_v1, %v3286_v49 }
 0xb28   :  { %v3314_v36 = vmax.f32 %v3310_v13, 0.0  ;;  %v3315_v28 = vmax.f32 %v3311_v32, 0.0  ;;  %v3316_v2 = vmax.f32 %v3312_v56, 0.0  ;;  %v3317_v19 = vmax.f32 %v3313_v24, 0.0 }
 0xb2a   :  { %3322 = vrot.lane.b32.xlu0 %v3314_v36, %s3658_s1  ;;  %3324 = vrot.lane.b32.xlu1 %v3315_v28, %s3658_s1 }
 0xb2e   :  { %3326 = vrot.lane.b32.xlu0 %v3316_v2, %s3658_s1  ;;  %3328 = vrot.lane.b32.xlu1 %v3317_v19, %s3658_s1 }
 0xb9c   :  { %v3323_v55 = vpop.permute.xlu0 %3322  ;;  %v3325_v44 = vpop.permute.xlu1 %3324 }
 0xb9d   :  { %v3330_v8 = vsel %vm2683_vm0, %v3323_v55, %v3325_v44 }
 0xb9e   :  { %3336 = vst [vmem:[#allocation14] sm:$0xff] %v3330_v8 }
 0xba0   :  { %v3327_v46 = vpop.permute.xlu0 %3326  ;;  %v3329_v4 = vpop.permute.xlu1 %3328 }
 0xba1   :  { %v3331_v40 = vsel %vm2683_vm0, %v3325_v44, %v3327_v46  ;;  %v3332_v34 = vsel %vm2683_vm0, %v3327_v46, %v3329_v4 }
 0xba2   :  { %3337 = vst [vmem:[#allocation14 + $0x8] sm:$0xff] %v3331_v40  ;;  %3338 = vst [vmem:[#allocation14 + $0x10] sm:$0xff] %v3332_v34 }
 0xba3   :  { %3623 = shalt.err (!%p3620_p6)
}
 0xba4   :  { %3348 = dma.vmem_to_hbm [thread:$0]  %s3346_s23, 384, %s6443_s9, [#allocation4]  }
 0xba5   :  { %3640 = dma.done.wait [#allocation4], 384  }
 0xba6   :  { %3641 = vsyncadd [#allocation4], 4294966912 }
 0xba7   :  { %3352 = vsyncpa [#allocation4], 1 }
 0xba8   :  { %3353 = vsyncpa [#allocation5], 1 }
 0xba9   :  { %3354 = vsyncpa [#allocation7], 1 }
 0xbaa   :  { %3355 = vsyncpa [#allocation10], 1 }
 0xbab   :  { %3356 = vsyncpa [#allocation13], 1 }

</bundles_post_ra>
